<compile_context>
chip_gen: v6e
topology: v6e:2x2x1
jax: 0.10.0
libtpu: 0.0.40
codegen_flags: <defaults>
</compile_context>

<pallas_src>
import functools
import math

import jax
import jax.numpy as jnp
from jax.experimental import pallas as pl
from jax.experimental.pallas import tpu as pltpu


# ----------------------------------------------------------------------------
# Config (consistent with the module's __init__)
# ----------------------------------------------------------------------------
class Configs:
    seq_len = 16
    pred_len = 8
    enc_in = 4                 # channels
    individual = 0
    dropout = 0.1              # eval mode -> F.dropout is identity
    gpu = 0
    hidden = 32                # self.d_model (GNN feature width)
    seg_len = 4
    num_layers = 2             # GIN layers
    pj_subgraph_size = 4
    scale_subgraph_size = 4
    gc_layer = 1
    patchvechidden = 8
    use_multi_scale = 1
    scale_seg_len = 4
    down_sampling_layers = 1
    down_sampling_window = 2
    d_model = 16               # patch-embedding / encoder width


# ----------------------------------------------------------------------------
# Pallas kernels
# ----------------------------------------------------------------------------
def _mm(a, b):
    return jnp.dot(a, b, preferred_element_type=jnp.float32)


def _learn_kernel(xT_ref,
                  e1_ref, e2_ref, e1t_ref, e2t_ref,
                  l1w_ref, l1b_ref, l1wt_ref, l1bt_ref,
                  l2w_ref, l2b_ref, l2wt_ref, l2bt_ref,
                  sw_ref, sb_ref,
                  g11w_ref, g11b_ref, g12w_ref, g12b_ref,
                  g21w_ref, g21b_ref, g22w_ref, g22b_ref,
                  rw_ref, rb_ref,
                  o_ref, *, alpha, k, eps):
    """Fused per-scale learning path: adjacency + start_linear + GINx2 +
    residual + re_linear.  All operands are 2-D; activations are node-major
    (N, M*D); per-token weights arrive pre-expanded as kron(I_M, W)."""
    # ---- graph_constructor ----
    # TODO(synk): graph_constructor source not provided; MTGNN-style
    # embedding-based adjacency stand-in (data argument unused, gc_layer=1).
    n1 = jnp.tanh(alpha * (_mm(e1_ref[...], l1w_ref[...]) + l1b_ref[...]))
    n2 = jnp.tanh(alpha * (_mm(e2_ref[...], l2w_ref[...]) + l2b_ref[...]))
    # transposed copies built with transposed weights -> no in-kernel transpose
    n1t = jnp.tanh(alpha * (_mm(l1wt_ref[...], e1t_ref[...]) + l1bt_ref[...]))
    n2t = jnp.tanh(alpha * (_mm(l2wt_ref[...], e2t_ref[...]) + l2bt_ref[...]))
    m = _mm(n1, n2t)                       # n1 @ n2.T
    mt = _mm(n2, n1t)                      # n2 @ n1.T == (n1 @ n2.T).T
    a = jnp.maximum(jnp.tanh(alpha * (m - mt)), 0.0)

    # in-kernel per-row top-k: k passes of (row-max + mask) give the k-th
    # largest value, then threshold.  Ties below the k-th positive value can
    # only be exactly 0 (post-ReLU) and contribute nothing, so this matches
    # adj * topk_mask numerically without leaving VMEM.
    neg = jnp.float32(-1e30)
    rem = a
    thr = jnp.max(rem, axis=-1, keepdims=True)
    for _ in range(k - 1):
        rem = jnp.where(rem >= thr, neg, rem)
        thr = jnp.max(rem, axis=-1, keepdims=True)
    adj = jnp.where(a >= thr, a, 0.0)

    # ---- start_linear (1 -> D):  xT @ kron(I_M, w_start) ----
    h0 = _mm(xT_ref[...], sw_ref[...]) + sb_ref[...]            # (N, M*D)

    # ---- GIN layer 1 ----
    agg = (1.0 + eps) * h0 + _mm(adj, h0)
    z = jnp.maximum(_mm(agg, g11w_ref[...]) + g11b_ref[...], 0.0)
    h = jnp.maximum(_mm(z, g12w_ref[...]) + g12b_ref[...], 0.0)  # inter-layer ReLU

    # ---- GIN layer 2 (no trailing ReLU) ----
    agg = (1.0 + eps) * h + _mm(adj, h)
    z = jnp.maximum(_mm(agg, g21w_ref[...]) + g21b_ref[...], 0.0)
    h = _mm(z, g22w_ref[...]) + g22b_ref[...]

    # ---- residual + re_linear (D -> 1):  @ kron(I_M, w_re) ----
    o_ref[...] = _mm(h + h0, rw_ref[...]) + rb_ref[...]          # (N, M)


def _predict_kernel(x_ref, pew_ref, peb_ref, e1w_ref, e1b_ref,
                    e2w_ref, e2b_ref, rpw_ref, rpb_ref,
                    hw_ref, hb_ref, o_ref):
    """Fused per-scale prediction path on rows R = batch*channels.
    Patch-wise linears arrive as kron(I_P, W) so the (R, L) <-> (R*P, seg)
    reshapes never happen in-kernel."""
    e = _mm(x_ref[...], pew_ref[...]) + peb_ref[...]             # (R, P*dm)
    # TODO(synk): PMambaEncoder (Mamba selective scan) source not provided;
    # stand-in is a token-wise residual MLP block.
    h = jnp.maximum(_mm(e, e1w_ref[...]) + e1b_ref[...], 0.0)
    e = e + _mm(h, e2w_ref[...]) + e2b_ref[...]
    y = _mm(e, rpw_ref[...]) + rpb_ref[...]                      # (R, L)
    o_ref[...] = _mm(y, hw_ref[...]) + hb_ref[...]               # (R, pred_len)


def _full_call(kernel, out_shape, *arrays, **static_kwargs):
    """pallas_call with every operand as a single full-extent VMEM block."""
    def spec(a):
        return pl.BlockSpec(a.shape, lambda i, _nd=a.ndim: (0,) * _nd)
    body = functools.partial(kernel, **static_kwargs) if static_kwargs else kernel
    return pl.pallas_call(
        body,
        out_shape=jax.ShapeDtypeStruct(out_shape, jnp.float32),
        grid=(1,),
        in_specs=[spec(a) for a in arrays],
        out_specs=pl.BlockSpec(out_shape, lambda i: (0,) * len(out_shape)),
        compiler_params=pltpu.CompilerParams(
            dimension_semantics=("arbitrary",)),
    )(*arrays)


# ----------------------------------------------------------------------------
# Parameters (deterministic init, nn.Linear-shaped: W stored as (in, out))
# ----------------------------------------------------------------------------
def _init_linear(key, fan_in, fan_out):
    k1, k2 = jax.random.split(key)
    bound = 1.0 / math.sqrt(max(fan_in, 1))
    w = jax.random.uniform(k1, (fan_in, fan_out), jnp.float32, -bound, bound)
    b = jax.random.uniform(k2, (fan_out,), jnp.float32, -bound, bound)
    return w, b


def init_params(key, cfg):
    keys = iter(jax.random.split(key, 128))
    lin = lambda fi, fo: _init_linear(next(keys), fi, fo)
    p = {}
    p['start_linear'] = lin(1, cfg.hidden)
    p['re_linear'] = lin(cfg.hidden, 1)
    p['Linear'] = lin(cfg.seq_len, cfg.pred_len)
    p['patch_embedding'] = lin(cfg.seg_len, cfg.d_model)
    p['re_patch_embedding'] = lin(cfg.d_model, cfg.seg_len)
    p['scale_patch_embedding'] = lin(cfg.scale_seg_len, cfg.d_model)
    p['scale_patch_embedding_re'] = lin(cfg.d_model, cfg.scale_seg_len)

    gin = []
    for _ in range(cfg.num_layers):
        w1, b1 = lin(cfg.hidden, cfg.hidden)
        w2, b2 = lin(cfg.hidden, cfg.hidden)
        gin.append(dict(w1=w1, b1=b1, w2=w2, b2=b2))
    p['gin'] = gin

    pj_num = cfg.enc_in * cfg.seq_len // cfg.seg_len
    pj_num_scales = [cfg.enc_in * cfg.seq_len // 2 ** i // cfg.scale_seg_len
                     for i in range(cfg.down_sampling_layers + 1)]

    def make_gc(n):
        k1, k2 = jax.random.split(next(keys))
        return dict(
            emb1=0.1 * jax.random.normal(k1, (n, cfg.patchvechidden), jnp.float32),
            emb2=0.1 * jax.random.normal(k2, (n, cfg.patchvechidden), jnp.float32),
            lin1=lin(cfg.patchvechidden, cfg.patchvechidden),
            lin2=lin(cfg.patchvechidden, cfg.patchvechidden))

    p['pj_gc'] = make_gc(pj_num)
    p['scale_gcs'] = [make_gc(n) for n in pj_num_scales]
    p['pred_linear'] = [lin(cfg.seq_len // 2 ** i, cfg.pred_len)
                        for i in range(cfg.down_sampling_layers + 1)]

    def make_enc():
        w1, b1 = lin(cfg.d_model, cfg.d_model)
        w2, b2 = lin(cfg.d_model, cfg.d_model)
        return dict(w1=w1, b1=b1, w2=w2, b2=b2)

    p['encoder'] = make_enc()
    p['scale_encoder'] = make_enc()
    return p


# ----------------------------------------------------------------------------
# Full forward (multi-scale path; `use_multi_scale == 1`)
# ----------------------------------------------------------------------------
def forward(params, x, cfg):
    assert cfg.use_multi_scale == 1 and cfg.num_layers == 2
    B, _, C = x.shape
    D = cfg.hidden
    alpha = 3.0

    # ---- multi_scale_process_inputs: AvgPool1d over the time axis ----
    x_list = [x]
    cur = jnp.transpose(x, (0, 2, 1))                     # (B, C, L)
    for _ in range(cfg.down_sampling_layers):
        Bc, Cc, Lc = cur.shape
        cur = cur.reshape(Bc, Cc, Lc // cfg.down_sampling_window,
                          cfg.down_sampling_window).mean(-1)
        x_list.append(jnp.transpose(cur, (0, 2, 1)))

    # ---- kernel-ready weight packing (block-diagonal kron expansion) ----
    def gin_pack(M):
        eye_m = jnp.eye(M, dtype=jnp.float32)
        pk = [jnp.kron(eye_m, params['start_linear'][0].reshape(1, D)),
              jnp.tile(params['start_linear'][1].reshape(1, D), (1, M))]
        for layer in params['gin']:
            pk += [jnp.kron(eye_m, layer['w1']),
                   jnp.tile(layer['b1'].reshape(1, D), (1, M)),
                   jnp.kron(eye_m, layer['w2']),
                   jnp.tile(layer['b2'].reshape(1, D), (1, M))]
        pk += [jnp.kron(eye_m, params['re_linear'][0].reshape(D, 1)),
               params['re_linear'][1].reshape(1, 1)]
        return tuple(pk)

    def gc_pack(gc):
        w1, b1 = gc['lin1']
        w2, b2 = gc['lin2']
        return (gc['emb1'], gc['emb2'], gc['emb1'].T, gc['emb2'].T,
                w1, b1.reshape(1, -1), w1.T, b1.reshape(-1, 1),
                w2, b2.reshape(1, -1), w2.T, b2.reshape(-1, 1))

    def pred_pack(pe, enc, rpe, head, P):
        eye_p = jnp.eye(P, dtype=jnp.float32)
        return (jnp.kron(eye_p, pe[0]), jnp.tile(pe[1].reshape(1, -1), (1, P)),
                jnp.kron(eye_p, enc['w1']),
                jnp.tile(enc['b1'].reshape(1, -1), (1, P)),
                jnp.kron(eye_p, enc['w2']),
                jnp.tile(enc['b2'].reshape(1, -1), (1, P)),
                jnp.kron(eye_p, rpe[0]), jnp.tile(rpe[1].reshape(1, -1), (1, P)),
                head[0], head[1].reshape(1, -1))

    gin_cache = {}
    preds = []
    for i, x_in in enumerate(x_list):
        L_i = cfg.seq_len // 2 ** i
        if i == 0:
            N_i = C * cfg.seq_len // cfg.seg_len
            seg_i = cfg.seg_len
            gc = params['pj_gc']
            k = cfg.pj_subgraph_size
        else:
            # NOTE: matches the PyTorch forward(): scale_gcs[i] for i > 0
            # (scale_gcs[0] is constructed but never used there either).
            N_i = C * cfg.seq_len // 2 ** i // cfg.scale_seg_len
            seg_i = cfg.scale_seg_len
            gc = params['scale_gcs'][i]
            k = cfg.scale_subgraph_size
        P_i = L_i // seg_i

        x_oj = x_in.reshape(B, -1).reshape(B, -1, N_i)     # (B, S, N)
        S_i = x_oj.shape[1]
        M = B * S_i
        xT = jnp.transpose(x_oj.reshape(M, N_i))           # (N, M)

        if M not in gin_cache:
            gin_cache[M] = gin_pack(M)

        # fused: adjacency + start_linear + GINx2 + residual + re_linear
        r = _full_call(_learn_kernel, (N_i, M),
                       xT, *gc_pack(gc), *gin_cache[M],
                       alpha=alpha, k=k, eps=0.0)           # (N, M)

        # re-order the re_linear scalars exactly like the PyTorch
        # reshape/permute chain: (B,S,N) -> (B,L,C) -> (B,C,L) -> (B*C, L)
        xr = jnp.transpose(r).reshape(B, S_i, N_i).reshape(B, L_i, C)
        xr = jnp.transpose(xr, (0, 2, 1)).reshape(B * C, L_i)

        if i == 0:
            pw = pred_pack(params['patch_embedding'], params['encoder'],
                           params['re_patch_embedding'], params['Linear'], P_i)
        else:
            pw = pred_pack(params['scale_patch_embedding'],
                           params['scale_encoder'],
                           params['scale_patch_embedding_re'],
                           params['pred_linear'][i], P_i)

        # fused: patch_embedding + encoder + re_patch_embedding + pred head
        pred = _full_call(_predict_kernel, (B * C, cfg.pred_len), xr, *pw)
        preds.append(jnp.transpose(pred.reshape(B, C, cfg.pred_len), (0, 2, 1)))

    out = sum(preds) / len(preds)
    # F.dropout(p=cfg.dropout, training=False) -> identity in eval mode
    return out


# ----------------------------------------------------------------------------
if __name__ == "__main__":
    cfg = Configs()
    key = jax.random.PRNGKey(0)
    pkey, xkey = jax.random.split(key)

    params = init_params(pkey, cfg)
    x = jax.random.normal(xkey, (2, cfg.seq_len, cfg.enc_in), jnp.float32)

    fwd = jax.jit(lambda p, xx: forward(p, xx, cfg))
    out = fwd(params, x)
    jax.block_until_ready(out)

    assert out.shape == (2, cfg.pred_len, cfg.enc_in), out.shape
    assert bool(jnp.all(jnp.isfinite(out)))
    print("KERNEL_OK")
</pallas_src>

<mosaic_0001>
module attributes {stable_mosaic.version = 11 : i64} {
  func.func @_learn_kernel(%arg0: i32, %arg1: memref<8x8xf32, #tpu.memory_space<vmem>>, %arg2: memref<8x8xf32, #tpu.memory_space<vmem>>, %arg3: memref<8x8xf32, #tpu.memory_space<vmem>>, %arg4: memref<8x8xf32, #tpu.memory_space<vmem>>, %arg5: memref<8x8xf32, #tpu.memory_space<vmem>>, %arg6: memref<8x8xf32, #tpu.memory_space<vmem>>, %arg7: memref<1x8xf32, #tpu.memory_space<vmem>>, %arg8: memref<8x8xf32, #tpu.memory_space<vmem>>, %arg9: memref<8x1xf32, #tpu.memory_space<vmem>>, %arg10: memref<8x8xf32, #tpu.memory_space<vmem>>, %arg11: memref<1x8xf32, #tpu.memory_space<vmem>>, %arg12: memref<8x8xf32, #tpu.memory_space<vmem>>, %arg13: memref<8x1xf32, #tpu.memory_space<vmem>>, %arg14: memref<8x256xf32, #tpu.memory_space<vmem>>, %arg15: memref<1x256xf32, #tpu.memory_space<vmem>>, %arg16: memref<256x256xf32, #tpu.memory_space<vmem>>, %arg17: memref<1x256xf32, #tpu.memory_space<vmem>>, %arg18: memref<256x256xf32, #tpu.memory_space<vmem>>, %arg19: memref<1x256xf32, #tpu.memory_space<vmem>>, %arg20: memref<256x256xf32, #tpu.memory_space<vmem>>, %arg21: memref<1x256xf32, #tpu.memory_space<vmem>>, %arg22: memref<256x256xf32, #tpu.memory_space<vmem>>, %arg23: memref<1x256xf32, #tpu.memory_space<vmem>>, %arg24: memref<256x8xf32, #tpu.memory_space<vmem>>, %arg25: memref<1x1xf32, #tpu.memory_space<vmem>>, %arg26: memref<8x8xf32, #tpu.memory_space<vmem>>) attributes {dimension_semantics = [#tpu.dimension_semantics<arbitrary>], iteration_bounds = array<i64: 1>, scalar_prefetch = 0 : i64, scratch_operands = 0 : i64, tpu.core_type = #tpu.core_type<tc>, window_params = [{pipeline_mode = #tpu.pipeline_mode<synchronous>, transform_indices = @transform_0, window_bounds = array<i64: 8, 8>}, {pipeline_mode = #tpu.pipeline_mode<synchronous>, transform_indices = @transform_1, window_bounds = array<i64: 8, 8>}, {pipeline_mode = #tpu.pipeline_mode<synchronous>, transform_indices = @transform_2, window_bounds = array<i64: 8, 8>}, {pipeline_mode = #tpu.pipeline_mode<synchronous>, transform_indices = @transform_3, window_bounds = array<i64: 8, 8>}, {pipeline_mode = #tpu.pipeline_mode<synchronous>, transform_indices = @transform_4, window_bounds = array<i64: 8, 8>}, {pipeline_mode = #tpu.pipeline_mode<synchronous>, transform_indices = @transform_5, window_bounds = array<i64: 8, 8>}, {pipeline_mode = #tpu.pipeline_mode<synchronous>, transform_indices = @transform_6, window_bounds = array<i64: 1, 8>}, {pipeline_mode = #tpu.pipeline_mode<synchronous>, transform_indices = @transform_7, window_bounds = array<i64: 8, 8>}, {pipeline_mode = #tpu.pipeline_mode<synchronous>, transform_indices = @transform_8, window_bounds = array<i64: 8, 1>}, {pipeline_mode = #tpu.pipeline_mode<synchronous>, transform_indices = @transform_9, window_bounds = array<i64: 8, 8>}, {pipeline_mode = #tpu.pipeline_mode<synchronous>, transform_indices = @transform_10, window_bounds = array<i64: 1, 8>}, {pipeline_mode = #tpu.pipeline_mode<synchronous>, transform_indices = @transform_11, window_bounds = array<i64: 8, 8>}, {pipeline_mode = #tpu.pipeline_mode<synchronous>, transform_indices = @transform_12, window_bounds = array<i64: 8, 1>}, {pipeline_mode = #tpu.pipeline_mode<synchronous>, transform_indices = @transform_13, window_bounds = array<i64: 8, 256>}, {pipeline_mode = #tpu.pipeline_mode<synchronous>, transform_indices = @transform_14, window_bounds = array<i64: 1, 256>}, {pipeline_mode = #tpu.pipeline_mode<synchronous>, transform_indices = @transform_15, window_bounds = array<i64: 256, 256>}, {pipeline_mode = #tpu.pipeline_mode<synchronous>, transform_indices = @transform_16, window_bounds = array<i64: 1, 256>}, {pipeline_mode = #tpu.pipeline_mode<synchronous>, transform_indices = @transform_17, window_bounds = array<i64: 256, 256>}, {pipeline_mode = #tpu.pipeline_mode<synchronous>, transform_indices = @transform_18, window_bounds = array<i64: 1, 256>}, {pipeline_mode = #tpu.pipeline_mode<synchronous>, transform_indices = @transform_19, window_bounds = array<i64: 256, 256>}, {pipeline_mode = #tpu.pipeline_mode<synchronous>, transform_indices = @transform_20, window_bounds = array<i64: 1, 256>}, {pipeline_mode = #tpu.pipeline_mode<synchronous>, transform_indices = @transform_21, window_bounds = array<i64: 256, 256>}, {pipeline_mode = #tpu.pipeline_mode<synchronous>, transform_indices = @transform_22, window_bounds = array<i64: 1, 256>}, {pipeline_mode = #tpu.pipeline_mode<synchronous>, transform_indices = @transform_23, window_bounds = array<i64: 256, 8>}, {pipeline_mode = #tpu.pipeline_mode<synchronous>, transform_indices = @transform_24, window_bounds = array<i64: 1, 1>}, {pipeline_mode = #tpu.pipeline_mode<synchronous>, transform_indices = @transform_25, window_bounds = array<i64: 8, 8>}]} {
    %c0 = arith.constant 0 : index
    %c0_0 = arith.constant 0 : index
    %0 = vector.load %arg2[%c0, %c0_0] : memref<8x8xf32, #tpu.memory_space<vmem>>, vector<8x8xf32>
    %c0_1 = arith.constant 0 : index
    %c0_2 = arith.constant 0 : index
    %1 = vector.load %arg6[%c0_1, %c0_2] : memref<8x8xf32, #tpu.memory_space<vmem>>, vector<8x8xf32>
    %cst = arith.constant dense<0.000000e+00> : vector<8x8xf32>
    %2 = tpu.matmul %0, %1, %cst {dimension_numbers = #tpu.dot_dimension_numbers<[1], [0], [0], [1], [0, 0, 1, 1], [], []>} : vector<8x8xf32>, vector<8x8xf32>, vector<8x8xf32> -> vector<8x8xf32>
    %c0_3 = arith.constant 0 : index
    %c0_4 = arith.constant 0 : index
    %3 = vector.load %arg7[%c0_3, %c0_4] : memref<1x8xf32, #tpu.memory_space<vmem>>, vector<1x8xf32>
    %4 = vector.broadcast %3 : vector<1x8xf32> to vector<8x8xf32>
    %5 = arith.addf %2, %4 : vector<8x8xf32>
    %cst_5 = arith.constant 3.000000e+00 : f32
    %6 = vector.broadcast %cst_5 : f32 to vector<8x8xf32>
    %7 = arith.mulf %6, %5 : vector<8x8xf32>
    %8 = math.tanh %7 : vector<8x8xf32>
    %c0_6 = arith.constant 0 : index
    %c0_7 = arith.constant 0 : index
    %9 = vector.load %arg3[%c0_6, %c0_7] : memref<8x8xf32, #tpu.memory_space<vmem>>, vector<8x8xf32>
    %c0_8 = arith.constant 0 : index
    %c0_9 = arith.constant 0 : index
    %10 = vector.load %arg10[%c0_8, %c0_9] : memref<8x8xf32, #tpu.memory_space<vmem>>, vector<8x8xf32>
    %cst_10 = arith.constant dense<0.000000e+00> : vector<8x8xf32>
    %11 = tpu.matmul %9, %10, %cst_10 {dimension_numbers = #tpu.dot_dimension_numbers<[1], [0], [0], [1], [0, 0, 1, 1], [], []>} : vector<8x8xf32>, vector<8x8xf32>, vector<8x8xf32> -> vector<8x8xf32>
    %c0_11 = arith.constant 0 : index
    %c0_12 = arith.constant 0 : index
    %12 = vector.load %arg11[%c0_11, %c0_12] : memref<1x8xf32, #tpu.memory_space<vmem>>, vector<1x8xf32>
    %13 = vector.broadcast %12 : vector<1x8xf32> to vector<8x8xf32>
    %14 = arith.addf %11, %13 : vector<8x8xf32>
    %cst_13 = arith.constant 3.000000e+00 : f32
    %15 = vector.broadcast %cst_13 : f32 to vector<8x8xf32>
    %16 = arith.mulf %15, %14 : vector<8x8xf32>
    %17 = math.tanh %16 : vector<8x8xf32>
    %c0_14 = arith.constant 0 : index
    %c0_15 = arith.constant 0 : index
    %18 = vector.load %arg8[%c0_14, %c0_15] : memref<8x8xf32, #tpu.memory_space<vmem>>, vector<8x8xf32>
    %c0_16 = arith.constant 0 : index
    %c0_17 = arith.constant 0 : index
    %19 = vector.load %arg4[%c0_16, %c0_17] : memref<8x8xf32, #tpu.memory_space<vmem>>, vector<8x8xf32>
    %cst_18 = arith.constant dense<0.000000e+00> : vector<8x8xf32>
    %20 = tpu.matmul %18, %19, %cst_18 {dimension_numbers = #tpu.dot_dimension_numbers<[1], [0], [0], [1], [0, 0, 1, 1], [], []>} : vector<8x8xf32>, vector<8x8xf32>, vector<8x8xf32> -> vector<8x8xf32>
    %c0_19 = arith.constant 0 : index
    %c0_20 = arith.constant 0 : index
    %21 = vector.load %arg9[%c0_19, %c0_20] : memref<8x1xf32, #tpu.memory_space<vmem>>, vector<8x1xf32>
    %22 = vector.broadcast %21 : vector<8x1xf32> to vector<8x8xf32>
    %23 = arith.addf %20, %22 : vector<8x8xf32>
    %cst_21 = arith.constant 3.000000e+00 : f32
    %24 = vector.broadcast %cst_21 : f32 to vector<8x8xf32>
    %25 = arith.mulf %24, %23 : vector<8x8xf32>
    %26 = math.tanh %25 : vector<8x8xf32>
    %c0_22 = arith.constant 0 : index
    %c0_23 = arith.constant 0 : index
    %27 = vector.load %arg12[%c0_22, %c0_23] : memref<8x8xf32, #tpu.memory_space<vmem>>, vector<8x8xf32>
    %c0_24 = arith.constant 0 : index
    %c0_25 = arith.constant 0 : index
    %28 = vector.load %arg5[%c0_24, %c0_25] : memref<8x8xf32, #tpu.memory_space<vmem>>, vector<8x8xf32>
    %cst_26 = arith.constant dense<0.000000e+00> : vector<8x8xf32>
    %29 = tpu.matmul %27, %28, %cst_26 {dimension_numbers = #tpu.dot_dimension_numbers<[1], [0], [0], [1], [0, 0, 1, 1], [], []>} : vector<8x8xf32>, vector<8x8xf32>, vector<8x8xf32> -> vector<8x8xf32>
    %c0_27 = arith.constant 0 : index
    %c0_28 = arith.constant 0 : index
    %30 = vector.load %arg13[%c0_27, %c0_28] : memref<8x1xf32, #tpu.memory_space<vmem>>, vector<8x1xf32>
    %31 = vector.broadcast %30 : vector<8x1xf32> to vector<8x8xf32>
    %32 = arith.addf %29, %31 : vector<8x8xf32>
    %cst_29 = arith.constant 3.000000e+00 : f32
    %33 = vector.broadcast %cst_29 : f32 to vector<8x8xf32>
    %34 = arith.mulf %33, %32 : vector<8x8xf32>
    %35 = math.tanh %34 : vector<8x8xf32>
    %cst_30 = arith.constant dense<0.000000e+00> : vector<8x8xf32>
    %36 = tpu.matmul %8, %35, %cst_30 {dimension_numbers = #tpu.dot_dimension_numbers<[1], [0], [0], [1], [0, 0, 1, 1], [], []>} : vector<8x8xf32>, vector<8x8xf32>, vector<8x8xf32> -> vector<8x8xf32>
    %cst_31 = arith.constant dense<0.000000e+00> : vector<8x8xf32>
    %37 = tpu.matmul %17, %26, %cst_31 {dimension_numbers = #tpu.dot_dimension_numbers<[1], [0], [0], [1], [0, 0, 1, 1], [], []>} : vector<8x8xf32>, vector<8x8xf32>, vector<8x8xf32> -> vector<8x8xf32>
    %38 = arith.subf %36, %37 : vector<8x8xf32>
    %cst_32 = arith.constant 3.000000e+00 : f32
    %39 = vector.broadcast %cst_32 : f32 to vector<8x8xf32>
    %40 = arith.mulf %39, %38 : vector<8x8xf32>
    %41 = math.tanh %40 : vector<8x8xf32>
    %cst_33 = arith.constant 0.000000e+00 : f32
    %42 = vector.broadcast %cst_33 : f32 to vector<8x8xf32>
    %43 = arith.maximumf %41, %42 : vector<8x8xf32>
    %cst_34 = arith.constant dense<0xFF800000> : vector<8xf32>
    %44 = vector.multi_reduction <maximumf>, %43, %cst_34 [1] : vector<8x8xf32> to vector<8xf32>
    %45 = vector.shape_cast %44 : vector<8xf32> to vector<8x1xf32>
    %46 = vector.broadcast %45 : vector<8x1xf32> to vector<8x8xf32>
    %47 = arith.cmpf oge, %43, %46 : vector<8x8xf32>
    %cst_35 = arith.constant -1.000000e+30 : f32
    %48 = vector.broadcast %cst_35 : f32 to vector<8x8xf32>
    %49 = arith.select %47, %48, %43 : vector<8x8xi1>, vector<8x8xf32>
    %cst_36 = arith.constant dense<0xFF800000> : vector<8xf32>
    %50 = vector.multi_reduction <maximumf>, %49, %cst_36 [1] : vector<8x8xf32> to vector<8xf32>
    %51 = vector.shape_cast %50 : vector<8xf32> to vector<8x1xf32>
    %52 = vector.broadcast %51 : vector<8x1xf32> to vector<8x8xf32>
    %53 = arith.cmpf oge, %49, %52 : vector<8x8xf32>
    %cst_37 = arith.constant -1.000000e+30 : f32
    %54 = vector.broadcast %cst_37 : f32 to vector<8x8xf32>
    %55 = arith.select %53, %54, %49 : vector<8x8xi1>, vector<8x8xf32>
    %cst_38 = arith.constant dense<0xFF800000> : vector<8xf32>
    %56 = vector.multi_reduction <maximumf>, %55, %cst_38 [1] : vector<8x8xf32> to vector<8xf32>
    %57 = vector.shape_cast %56 : vector<8xf32> to vector<8x1xf32>
    %58 = vector.broadcast %57 : vector<8x1xf32> to vector<8x8xf32>
    %59 = arith.cmpf oge, %55, %58 : vector<8x8xf32>
    %cst_39 = arith.constant -1.000000e+30 : f32
    %60 = vector.broadcast %cst_39 : f32 to vector<8x8xf32>
    %61 = arith.select %59, %60, %55 : vector<8x8xi1>, vector<8x8xf32>
    %cst_40 = arith.constant dense<0xFF800000> : vector<8xf32>
    %62 = vector.multi_reduction <maximumf>, %61, %cst_40 [1] : vector<8x8xf32> to vector<8xf32>
    %63 = vector.shape_cast %62 : vector<8xf32> to vector<8x1xf32>
    %64 = vector.broadcast %63 : vector<8x1xf32> to vector<8x8xf32>
    %65 = arith.cmpf oge, %43, %64 : vector<8x8xf32>
    %cst_41 = arith.constant 0.000000e+00 : f32
    %66 = vector.broadcast %cst_41 : f32 to vector<8x8xf32>
    %67 = arith.select %65, %43, %66 : vector<8x8xi1>, vector<8x8xf32>
    %c0_42 = arith.constant 0 : index
    %c0_43 = arith.constant 0 : index
    %68 = vector.load %arg1[%c0_42, %c0_43] : memref<8x8xf32, #tpu.memory_space<vmem>>, vector<8x8xf32>
    %c0_44 = arith.constant 0 : index
    %c0_45 = arith.constant 0 : index
    %69 = vector.load %arg14[%c0_44, %c0_45] : memref<8x256xf32, #tpu.memory_space<vmem>>, vector<8x256xf32>
    %cst_46 = arith.constant dense<0.000000e+00> : vector<8x256xf32>
    %70 = tpu.matmul %68, %69, %cst_46 {dimension_numbers = #tpu.dot_dimension_numbers<[1], [0], [0], [1], [0, 0, 1, 1], [], []>} : vector<8x8xf32>, vector<8x256xf32>, vector<8x256xf32> -> vector<8x256xf32>
    %c0_47 = arith.constant 0 : index
    %c0_48 = arith.constant 0 : index
    %71 = vector.load %arg15[%c0_47, %c0_48] : memref<1x256xf32, #tpu.memory_space<vmem>>, vector<1x256xf32>
    %72 = vector.broadcast %71 : vector<1x256xf32> to vector<8x256xf32>
    %73 = arith.addf %70, %72 : vector<8x256xf32>
    %cst_49 = arith.constant 1.000000e+00 : f32
    %74 = vector.broadcast %cst_49 : f32 to vector<8x256xf32>
    %75 = arith.mulf %74, %73 : vector<8x256xf32>
    %cst_50 = arith.constant dense<0.000000e+00> : vector<8x256xf32>
    %76 = tpu.matmul %67, %73, %cst_50 {dimension_numbers = #tpu.dot_dimension_numbers<[1], [0], [0], [1], [0, 0, 1, 1], [], []>} : vector<8x8xf32>, vector<8x256xf32>, vector<8x256xf32> -> vector<8x256xf32>
    %77 = arith.addf %75, %76 : vector<8x256xf32>
    %c0_51 = arith.constant 0 : index
    %c0_52 = arith.constant 0 : index
    %78 = vector.load %arg16[%c0_51, %c0_52] : memref<256x256xf32, #tpu.memory_space<vmem>>, vector<256x256xf32>
    %cst_53 = arith.constant dense<0.000000e+00> : vector<8x256xf32>
    %79 = tpu.matmul %77, %78, %cst_53 {dimension_numbers = #tpu.dot_dimension_numbers<[1], [0], [0], [1], [0, 0, 1, 1], [], []>} : vector<8x256xf32>, vector<256x256xf32>, vector<8x256xf32> -> vector<8x256xf32>
    %c0_54 = arith.constant 0 : index
    %c0_55 = arith.constant 0 : index
    %80 = vector.load %arg17[%c0_54, %c0_55] : memref<1x256xf32, #tpu.memory_space<vmem>>, vector<1x256xf32>
    %81 = vector.broadcast %80 : vector<1x256xf32> to vector<8x256xf32>
    %82 = arith.addf %79, %81 : vector<8x256xf32>
    %cst_56 = arith.constant 0.000000e+00 : f32
    %83 = vector.broadcast %cst_56 : f32 to vector<8x256xf32>
    %84 = arith.maximumf %82, %83 : vector<8x256xf32>
    %c0_57 = arith.constant 0 : index
    %c0_58 = arith.constant 0 : index
    %85 = vector.load %arg18[%c0_57, %c0_58] : memref<256x256xf32, #tpu.memory_space<vmem>>, vector<256x256xf32>
    %cst_59 = arith.constant dense<0.000000e+00> : vector<8x256xf32>
    %86 = tpu.matmul %84, %85, %cst_59 {dimension_numbers = #tpu.dot_dimension_numbers<[1], [0], [0], [1], [0, 0, 1, 1], [], []>} : vector<8x256xf32>, vector<256x256xf32>, vector<8x256xf32> -> vector<8x256xf32>
    %c0_60 = arith.constant 0 : index
    %c0_61 = arith.constant 0 : index
    %87 = vector.load %arg19[%c0_60, %c0_61] : memref<1x256xf32, #tpu.memory_space<vmem>>, vector<1x256xf32>
    %88 = vector.broadcast %87 : vector<1x256xf32> to vector<8x256xf32>
    %89 = arith.addf %86, %88 : vector<8x256xf32>
    %cst_62 = arith.constant 0.000000e+00 : f32
    %90 = vector.broadcast %cst_62 : f32 to vector<8x256xf32>
    %91 = arith.maximumf %89, %90 : vector<8x256xf32>
    %cst_63 = arith.constant 1.000000e+00 : f32
    %92 = vector.broadcast %cst_63 : f32 to vector<8x256xf32>
    %93 = arith.mulf %92, %91 : vector<8x256xf32>
    %cst_64 = arith.constant dense<0.000000e+00> : vector<8x256xf32>
    %94 = tpu.matmul %67, %91, %cst_64 {dimension_numbers = #tpu.dot_dimension_numbers<[1], [0], [0], [1], [0, 0, 1, 1], [], []>} : vector<8x8xf32>, vector<8x256xf32>, vector<8x256xf32> -> vector<8x256xf32>
    %95 = arith.addf %93, %94 : vector<8x256xf32>
    %c0_65 = arith.constant 0 : index
    %c0_66 = arith.constant 0 : index
    %96 = vector.load %arg20[%c0_65, %c0_66] : memref<256x256xf32, #tpu.memory_space<vmem>>, vector<256x256xf32>
    %cst_67 = arith.constant dense<0.000000e+00> : vector<8x256xf32>
    %97 = tpu.matmul %95, %96, %cst_67 {dimension_numbers = #tpu.dot_dimension_numbers<[1], [0], [0], [1], [0, 0, 1, 1], [], []>} : vector<8x256xf32>, vector<256x256xf32>, vector<8x256xf32> -> vector<8x256xf32>
    %c0_68 = arith.constant 0 : index
    %c0_69 = arith.constant 0 : index
    %98 = vector.load %arg21[%c0_68, %c0_69] : memref<1x256xf32, #tpu.memory_space<vmem>>, vector<1x256xf32>
    %99 = vector.broadcast %98 : vector<1x256xf32> to vector<8x256xf32>
    %100 = arith.addf %97, %99 : vector<8x256xf32>
    %cst_70 = arith.constant 0.000000e+00 : f32
    %101 = vector.broadcast %cst_70 : f32 to vector<8x256xf32>
    %102 = arith.maximumf %100, %101 : vector<8x256xf32>
    %c0_71 = arith.constant 0 : index
    %c0_72 = arith.constant 0 : index
    %103 = vector.load %arg22[%c0_71, %c0_72] : memref<256x256xf32, #tpu.memory_space<vmem>>, vector<256x256xf32>
    %cst_73 = arith.constant dense<0.000000e+00> : vector<8x256xf32>
    %104 = tpu.matmul %102, %103, %cst_73 {dimension_numbers = #tpu.dot_dimension_numbers<[1], [0], [0], [1], [0, 0, 1, 1], [], []>} : vector<8x256xf32>, vector<256x256xf32>, vector<8x256xf32> -> vector<8x256xf32>
    %c0_74 = arith.constant 0 : index
    %c0_75 = arith.constant 0 : index
    %105 = vector.load %arg23[%c0_74, %c0_75] : memref<1x256xf32, #tpu.memory_space<vmem>>, vector<1x256xf32>
    %106 = vector.broadcast %105 : vector<1x256xf32> to vector<8x256xf32>
    %107 = arith.addf %104, %106 : vector<8x256xf32>
    %108 = arith.addf %107, %73 : vector<8x256xf32>
    %c0_76 = arith.constant 0 : index
    %c0_77 = arith.constant 0 : index
    %109 = vector.load %arg24[%c0_76, %c0_77] : memref<256x8xf32, #tpu.memory_space<vmem>>, vector<256x8xf32>
    %cst_78 = arith.constant dense<0.000000e+00> : vector<8x8xf32>
    %110 = tpu.matmul %108, %109, %cst_78 {dimension_numbers = #tpu.dot_dimension_numbers<[1], [0], [0], [1], [0, 0, 1, 1], [], []>} : vector<8x256xf32>, vector<256x8xf32>, vector<8x8xf32> -> vector<8x8xf32>
    %c0_79 = arith.constant 0 : index
    %c0_80 = arith.constant 0 : index
    %111 = vector.load %arg25[%c0_79, %c0_80] : memref<1x1xf32, #tpu.memory_space<vmem>>, vector<1x1xf32>
    %112 = vector.broadcast %111 : vector<1x1xf32> to vector<8x8xf32>
    %113 = arith.addf %110, %112 : vector<8x8xf32>
    %c0_81 = arith.constant 0 : index
    %c0_82 = arith.constant 0 : index
    %114 = vector.load %arg26[%c0_81, %c0_82] : memref<8x8xf32, #tpu.memory_space<vmem>>, vector<8x8xf32>
    tpu.vector_store %arg26[%c0_81, %c0_82], %113 {strides = array<i32>} : memref<8x8xf32, #tpu.memory_space<vmem>>, vector<8x8xf32>,
    return
  }
  func.func @transform_0(%arg0: i32) -> (i32, i32) {
    %c0_i32 = arith.constant 0 : i32
    %c0_i32_0 = arith.constant 0 : i32
    %c0_i32_1 = arith.constant 0 : i32
    return %c0_i32, %c0_i32_0 : i32, i32
  }
  func.func @transform_1(%arg0: i32) -> (i32, i32) {
    %c0_i32 = arith.constant 0 : i32
    %c0_i32_0 = arith.constant 0 : i32
    %c0_i32_1 = arith.constant 0 : i32
    return %c0_i32, %c0_i32_0 : i32, i32
  }
  func.func @transform_2(%arg0: i32) -> (i32, i32) {
    %c0_i32 = arith.constant 0 : i32
    %c0_i32_0 = arith.constant 0 : i32
    %c0_i32_1 = arith.constant 0 : i32
    return %c0_i32, %c0_i32_0 : i32, i32
  }
  func.func @transform_3(%arg0: i32) -> (i32, i32) {
    %c0_i32 = arith.constant 0 : i32
    %c0_i32_0 = arith.constant 0 : i32
    %c0_i32_1 = arith.constant 0 : i32
    return %c0_i32, %c0_i32_0 : i32, i32
  }
  func.func @transform_4(%arg0: i32) -> (i32, i32) {
    %c0_i32 = arith.constant 0 : i32
    %c0_i32_0 = arith.constant 0 : i32
    %c0_i32_1 = arith.constant 0 : i32
    return %c0_i32, %c0_i32_0 : i32, i32
  }
  func.func @transform_5(%arg0: i32) -> (i32, i32) {
    %c0_i32 = arith.constant 0 : i32
    %c0_i32_0 = arith.constant 0 : i32
    %c0_i32_1 = arith.constant 0 : i32
    return %c0_i32, %c0_i32_0 : i32, i32
  }
  func.func @transform_6(%arg0: i32) -> (i32, i32) {
    %c0_i32 = arith.constant 0 : i32
    %c0_i32_0 = arith.constant 0 : i32
    %c0_i32_1 = arith.constant 0 : i32
    return %c0_i32, %c0_i32_0 : i32, i32
  }
  func.func @transform_7(%arg0: i32) -> (i32, i32) {
    %c0_i32 = arith.constant 0 : i32
    %c0_i32_0 = arith.constant 0 : i32
    %c0_i32_1 = arith.constant 0 : i32
    return %c0_i32, %c0_i32_0 : i32, i32
  }
  func.func @transform_8(%arg0: i32) -> (i32, i32) {
    %c0_i32 = arith.constant 0 : i32
    %c0_i32_0 = arith.constant 0 : i32
    %c0_i32_1 = arith.constant 0 : i32
    return %c0_i32, %c0_i32_0 : i32, i32
  }
  func.func @transform_9(%arg0: i32) -> (i32, i32) {
    %c0_i32 = arith.constant 0 : i32
    %c0_i32_0 = arith.constant 0 : i32
    %c0_i32_1 = arith.constant 0 : i32
    return %c0_i32, %c0_i32_0 : i32, i32
  }
  func.func @transform_10(%arg0: i32) -> (i32, i32) {
    %c0_i32 = arith.constant 0 : i32
    %c0_i32_0 = arith.constant 0 : i32
    %c0_i32_1 = arith.constant 0 : i32
    return %c0_i32, %c0_i32_0 : i32, i32
  }
  func.func @transform_11(%arg0: i32) -> (i32, i32) {
    %c0_i32 = arith.constant 0 : i32
    %c0_i32_0 = arith.constant 0 : i32
    %c0_i32_1 = arith.constant 0 : i32
    return %c0_i32, %c0_i32_0 : i32, i32
  }
  func.func @transform_12(%arg0: i32) -> (i32, i32) {
    %c0_i32 = arith.constant 0 : i32
    %c0_i32_0 = arith.constant 0 : i32
    %c0_i32_1 = arith.constant 0 : i32
    return %c0_i32, %c0_i32_0 : i32, i32
  }
  func.func @transform_13(%arg0: i32) -> (i32, i32) {
    %c0_i32 = arith.constant 0 : i32
    %c0_i32_0 = arith.constant 0 : i32
    %c0_i32_1 = arith.constant 0 : i32
    return %c0_i32, %c0_i32_0 : i32, i32
  }
  func.func @transform_14(%arg0: i32) -> (i32, i32) {
    %c0_i32 = arith.constant 0 : i32
    %c0_i32_0 = arith.constant 0 : i32
    %c0_i32_1 = arith.constant 0 : i32
    return %c0_i32, %c0_i32_0 : i32, i32
  }
  func.func @transform_15(%arg0: i32) -> (i32, i32) {
    %c0_i32 = arith.constant 0 : i32
    %c0_i32_0 = arith.constant 0 : i32
    %c0_i32_1 = arith.constant 0 : i32
    return %c0_i32, %c0_i32_0 : i32, i32
  }
  func.func @transform_16(%arg0: i32) -> (i32, i32) {
    %c0_i32 = arith.constant 0 : i32
    %c0_i32_0 = arith.constant 0 : i32
    %c0_i32_1 = arith.constant 0 : i32
    return %c0_i32, %c0_i32_0 : i32, i32
  }
  func.func @transform_17(%arg0: i32) -> (i32, i32) {
    %c0_i32 = arith.constant 0 : i32
    %c0_i32_0 = arith.constant 0 : i32
    %c0_i32_1 = arith.constant 0 : i32
    return %c0_i32, %c0_i32_0 : i32, i32
  }
  func.func @transform_18(%arg0: i32) -> (i32, i32) {
    %c0_i32 = arith.constant 0 : i32
    %c0_i32_0 = arith.constant 0 : i32
    %c0_i32_1 = arith.constant 0 : i32
    return %c0_i32, %c0_i32_0 : i32, i32
  }
  func.func @transform_19(%arg0: i32) -> (i32, i32) {
    %c0_i32 = arith.constant 0 : i32
    %c0_i32_0 = arith.constant 0 : i32
    %c0_i32_1 = arith.constant 0 : i32
    return %c0_i32, %c0_i32_0 : i32, i32
  }
  func.func @transform_20(%arg0: i32) -> (i32, i32) {
    %c0_i32 = arith.constant 0 : i32
    %c0_i32_0 = arith.constant 0 : i32
    %c0_i32_1 = arith.constant 0 : i32
    return %c0_i32, %c0_i32_0 : i32, i32
  }
  func.func @transform_21(%arg0: i32) -> (i32, i32) {
    %c0_i32 = arith.constant 0 : i32
    %c0_i32_0 = arith.constant 0 : i32
    %c0_i32_1 = arith.constant 0 : i32
    return %c0_i32, %c0_i32_0 : i32, i32
  }
  func.func @transform_22(%arg0: i32) -> (i32, i32) {
    %c0_i32 = arith.constant 0 : i32
    %c0_i32_0 = arith.constant 0 : i32
    %c0_i32_1 = arith.constant 0 : i32
    return %c0_i32, %c0_i32_0 : i32, i32
  }
  func.func @transform_23(%arg0: i32) -> (i32, i32) {
    %c0_i32 = arith.constant 0 : i32
    %c0_i32_0 = arith.constant 0 : i32
    %c0_i32_1 = arith.constant 0 : i32
    return %c0_i32, %c0_i32_0 : i32, i32
  }
  func.func @transform_24(%arg0: i32) -> (i32, i32) {
    %c0_i32 = arith.constant 0 : i32
    %c0_i32_0 = arith.constant 0 : i32
    %c0_i32_1 = arith.constant 0 : i32
    return %c0_i32, %c0_i32_0 : i32, i32
  }
  func.func @transform_25(%arg0: i32) -> (i32, i32) {
    %c0_i32 = arith.constant 0 : i32
    %c0_i32_0 = arith.constant 0 : i32
    %c0_i32_1 = arith.constant 0 : i32
    return %c0_i32, %c0_i32_0 : i32, i32
  }
}

module attributes {stable_mosaic.version = 11 : i64} {
  func.func @_learn_kernel(%arg0: i32, %arg1: memref<16x8xf32, #tpu.memory_space<vmem>>, %arg2: memref<16x8xf32, #tpu.memory_space<vmem>>, %arg3: memref<16x8xf32, #tpu.memory_space<vmem>>, %arg4: memref<8x16xf32, #tpu.memory_space<vmem>>, %arg5: memref<8x16xf32, #tpu.memory_space<vmem>>, %arg6: memref<8x8xf32, #tpu.memory_space<vmem>>, %arg7: memref<1x8xf32, #tpu.memory_space<vmem>>, %arg8: memref<8x8xf32, #tpu.memory_space<vmem>>, %arg9: memref<8x1xf32, #tpu.memory_space<vmem>>, %arg10: memref<8x8xf32, #tpu.memory_space<vmem>>, %arg11: memref<1x8xf32, #tpu.memory_space<vmem>>, %arg12: memref<8x8xf32, #tpu.memory_space<vmem>>, %arg13: memref<8x1xf32, #tpu.memory_space<vmem>>, %arg14: memref<8x256xf32, #tpu.memory_space<vmem>>, %arg15: memref<1x256xf32, #tpu.memory_space<vmem>>, %arg16: memref<256x256xf32, #tpu.memory_space<vmem>>, %arg17: memref<1x256xf32, #tpu.memory_space<vmem>>, %arg18: memref<256x256xf32, #tpu.memory_space<vmem>>, %arg19: memref<1x256xf32, #tpu.memory_space<vmem>>, %arg20: memref<256x256xf32, #tpu.memory_space<vmem>>, %arg21: memref<1x256xf32, #tpu.memory_space<vmem>>, %arg22: memref<256x256xf32, #tpu.memory_space<vmem>>, %arg23: memref<1x256xf32, #tpu.memory_space<vmem>>, %arg24: memref<256x8xf32, #tpu.memory_space<vmem>>, %arg25: memref<1x1xf32, #tpu.memory_space<vmem>>, %arg26: memref<16x8xf32, #tpu.memory_space<vmem>>) attributes {dimension_semantics = [#tpu.dimension_semantics<arbitrary>], iteration_bounds = array<i64: 1>, scalar_prefetch = 0 : i64, scratch_operands = 0 : i64, tpu.core_type = #tpu.core_type<tc>, window_params = [{pipeline_mode = #tpu.pipeline_mode<synchronous>, transform_indices = @transform_0, window_bounds = array<i64: 16, 8>}, {pipeline_mode = #tpu.pipeline_mode<synchronous>, transform_indices = @transform_1, window_bounds = array<i64: 16, 8>}, {pipeline_mode = #tpu.pipeline_mode<synchronous>, transform_indices = @transform_2, window_bounds = array<i64: 16, 8>}, {pipeline_mode = #tpu.pipeline_mode<synchronous>, transform_indices = @transform_3, window_bounds = array<i64: 8, 16>}, {pipeline_mode = #tpu.pipeline_mode<synchronous>, transform_indices = @transform_4, window_bounds = array<i64: 8, 16>}, {pipeline_mode = #tpu.pipeline_mode<synchronous>, transform_indices = @transform_5, window_bounds = array<i64: 8, 8>}, {pipeline_mode = #tpu.pipeline_mode<synchronous>, transform_indices = @transform_6, window_bounds = array<i64: 1, 8>}, {pipeline_mode = #tpu.pipeline_mode<synchronous>, transform_indices = @transform_7, window_bounds = array<i64: 8, 8>}, {pipeline_mode = #tpu.pipeline_mode<synchronous>, transform_indices = @transform_8, window_bounds = array<i64: 8, 1>}, {pipeline_mode = #tpu.pipeline_mode<synchronous>, transform_indices = @transform_9, window_bounds = array<i64: 8, 8>}, {pipeline_mode = #tpu.pipeline_mode<synchronous>, transform_indices = @transform_10, window_bounds = array<i64: 1, 8>}, {pipeline_mode = #tpu.pipeline_mode<synchronous>, transform_indices = @transform_11, window_bounds = array<i64: 8, 8>}, {pipeline_mode = #tpu.pipeline_mode<synchronous>, transform_indices = @transform_12, window_bounds = array<i64: 8, 1>}, {pipeline_mode = #tpu.pipeline_mode<synchronous>, transform_indices = @transform_13, window_bounds = array<i64: 8, 256>}, {pipeline_mode = #tpu.pipeline_mode<synchronous>, transform_indices = @transform_14, window_bounds = array<i64: 1, 256>}, {pipeline_mode = #tpu.pipeline_mode<synchronous>, transform_indices = @transform_15, window_bounds = array<i64: 256, 256>}, {pipeline_mode = #tpu.pipeline_mode<synchronous>, transform_indices = @transform_16, window_bounds = array<i64: 1, 256>}, {pipeline_mode = #tpu.pipeline_mode<synchronous>, transform_indices = @transform_17, window_bounds = array<i64: 256, 256>}, {pipeline_mode = #tpu.pipeline_mode<synchronous>, transform_indices = @transform_18, window_bounds = array<i64: 1, 256>}, {pipeline_mode = #tpu.pipeline_mode<synchronous>, transform_indices = @transform_19, window_bounds = array<i64: 256, 256>}, {pipeline_mode = #tpu.pipeline_mode<synchronous>, transform_indices = @transform_20, window_bounds = array<i64: 1, 256>}, {pipeline_mode = #tpu.pipeline_mode<synchronous>, transform_indices = @transform_21, window_bounds = array<i64: 256, 256>}, {pipeline_mode = #tpu.pipeline_mode<synchronous>, transform_indices = @transform_22, window_bounds = array<i64: 1, 256>}, {pipeline_mode = #tpu.pipeline_mode<synchronous>, transform_indices = @transform_23, window_bounds = array<i64: 256, 8>}, {pipeline_mode = #tpu.pipeline_mode<synchronous>, transform_indices = @transform_24, window_bounds = array<i64: 1, 1>}, {pipeline_mode = #tpu.pipeline_mode<synchronous>, transform_indices = @transform_25, window_bounds = array<i64: 16, 8>}]} {
    %c0 = arith.constant 0 : index
    %c0_0 = arith.constant 0 : index
    %0 = vector.load %arg2[%c0, %c0_0] : memref<16x8xf32, #tpu.memory_space<vmem>>, vector<16x8xf32>
    %c0_1 = arith.constant 0 : index
    %c0_2 = arith.constant 0 : index
    %1 = vector.load %arg6[%c0_1, %c0_2] : memref<8x8xf32, #tpu.memory_space<vmem>>, vector<8x8xf32>
    %cst = arith.constant dense<0.000000e+00> : vector<16x8xf32>
    %2 = tpu.matmul %0, %1, %cst {dimension_numbers = #tpu.dot_dimension_numbers<[1], [0], [0], [1], [0, 0, 1, 1], [], []>} : vector<16x8xf32>, vector<8x8xf32>, vector<16x8xf32> -> vector<16x8xf32>
    %c0_3 = arith.constant 0 : index
    %c0_4 = arith.constant 0 : index
    %3 = vector.load %arg7[%c0_3, %c0_4] : memref<1x8xf32, #tpu.memory_space<vmem>>, vector<1x8xf32>
    %4 = vector.broadcast %3 : vector<1x8xf32> to vector<16x8xf32>
    %5 = arith.addf %2, %4 : vector<16x8xf32>
    %cst_5 = arith.constant 3.000000e+00 : f32
    %6 = vector.broadcast %cst_5 : f32 to vector<16x8xf32>
    %7 = arith.mulf %6, %5 : vector<16x8xf32>
    %8 = math.tanh %7 : vector<16x8xf32>
    %c0_6 = arith.constant 0 : index
    %c0_7 = arith.constant 0 : index
    %9 = vector.load %arg3[%c0_6, %c0_7] : memref<16x8xf32, #tpu.memory_space<vmem>>, vector<16x8xf32>
    %c0_8 = arith.constant 0 : index
    %c0_9 = arith.constant 0 : index
    %10 = vector.load %arg10[%c0_8, %c0_9] : memref<8x8xf32, #tpu.memory_space<vmem>>, vector<8x8xf32>
    %cst_10 = arith.constant dense<0.000000e+00> : vector<16x8xf32>
    %11 = tpu.matmul %9, %10, %cst_10 {dimension_numbers = #tpu.dot_dimension_numbers<[1], [0], [0], [1], [0, 0, 1, 1], [], []>} : vector<16x8xf32>, vector<8x8xf32>, vector<16x8xf32> -> vector<16x8xf32>
    %c0_11 = arith.constant 0 : index
    %c0_12 = arith.constant 0 : index
    %12 = vector.load %arg11[%c0_11, %c0_12] : memref<1x8xf32, #tpu.memory_space<vmem>>, vector<1x8xf32>
    %13 = vector.broadcast %12 : vector<1x8xf32> to vector<16x8xf32>
    %14 = arith.addf %11, %13 : vector<16x8xf32>
    %cst_13 = arith.constant 3.000000e+00 : f32
    %15 = vector.broadcast %cst_13 : f32 to vector<16x8xf32>
    %16 = arith.mulf %15, %14 : vector<16x8xf32>
    %17 = math.tanh %16 : vector<16x8xf32>
    %c0_14 = arith.constant 0 : index
    %c0_15 = arith.constant 0 : index
    %18 = vector.load %arg8[%c0_14, %c0_15] : memref<8x8xf32, #tpu.memory_space<vmem>>, vector<8x8xf32>
    %c0_16 = arith.constant 0 : index
    %c0_17 = arith.constant 0 : index
    %19 = vector.load %arg4[%c0_16, %c0_17] : memref<8x16xf32, #tpu.memory_space<vmem>>, vector<8x16xf32>
    %cst_18 = arith.constant dense<0.000000e+00> : vector<8x16xf32>
    %20 = tpu.matmul %18, %19, %cst_18 {dimension_numbers = #tpu.dot_dimension_numbers<[1], [0], [0], [1], [0, 0, 1, 1], [], []>} : vector<8x8xf32>, vector<8x16xf32>, vector<8x16xf32> -> vector<8x16xf32>
    %c0_19 = arith.constant 0 : index
    %c0_20 = arith.constant 0 : index
    %21 = vector.load %arg9[%c0_19, %c0_20] : memref<8x1xf32, #tpu.memory_space<vmem>>, vector<8x1xf32>
    %22 = vector.broadcast %21 : vector<8x1xf32> to vector<8x16xf32>
    %23 = arith.addf %20, %22 : vector<8x16xf32>
    %cst_21 = arith.constant 3.000000e+00 : f32
    %24 = vector.broadcast %cst_21 : f32 to vector<8x16xf32>
    %25 = arith.mulf %24, %23 : vector<8x16xf32>
    %26 = math.tanh %25 : vector<8x16xf32>
    %c0_22 = arith.constant 0 : index
    %c0_23 = arith.constant 0 : index
    %27 = vector.load %arg12[%c0_22, %c0_23] : memref<8x8xf32, #tpu.memory_space<vmem>>, vector<8x8xf32>
    %c0_24 = arith.constant 0 : index
    %c0_25 = arith.constant 0 : index
    %28 = vector.load %arg5[%c0_24, %c0_25] : memref<8x16xf32, #tpu.memory_space<vmem>>, vector<8x16xf32>
    %cst_26 = arith.constant dense<0.000000e+00> : vector<8x16xf32>
    %29 = tpu.matmul %27, %28, %cst_26 {dimension_numbers = #tpu.dot_dimension_numbers<[1], [0], [0], [1], [0, 0, 1, 1], [], []>} : vector<8x8xf32>, vector<8x16xf32>, vector<8x16xf32> -> vector<8x16xf32>
    %c0_27 = arith.constant 0 : index
    %c0_28 = arith.constant 0 : index
    %30 = vector.load %arg13[%c0_27, %c0_28] : memref<8x1xf32, #tpu.memory_space<vmem>>, vector<8x1xf32>
    %31 = vector.broadcast %30 : vector<8x1xf32> to vector<8x16xf32>
    %32 = arith.addf %29, %31 : vector<8x16xf32>
    %cst_29 = arith.constant 3.000000e+00 : f32
    %33 = vector.broadcast %cst_29 : f32 to vector<8x16xf32>
    %34 = arith.mulf %33, %32 : vector<8x16xf32>
    %35 = math.tanh %34 : vector<8x16xf32>
    %cst_30 = arith.constant dense<0.000000e+00> : vector<16x16xf32>
    %36 = tpu.matmul %8, %35, %cst_30 {dimension_numbers = #tpu.dot_dimension_numbers<[1], [0], [0], [1], [0, 0, 1, 1], [], []>} : vector<16x8xf32>, vector<8x16xf32>, vector<16x16xf32> -> vector<16x16xf32>
    %cst_31 = arith.constant dense<0.000000e+00> : vector<16x16xf32>
    %37 = tpu.matmul %17, %26, %cst_31 {dimension_numbers = #tpu.dot_dimension_numbers<[1], [0], [0], [1], [0, 0, 1, 1], [], []>} : vector<16x8xf32>, vector<8x16xf32>, vector<16x16xf32> -> vector<16x16xf32>
    %38 = arith.subf %36, %37 : vector<16x16xf32>
    %cst_32 = arith.constant 3.000000e+00 : f32
    %39 = vector.broadcast %cst_32 : f32 to vector<16x16xf32>
    %40 = arith.mulf %39, %38 : vector<16x16xf32>
    %41 = math.tanh %40 : vector<16x16xf32>
    %cst_33 = arith.constant 0.000000e+00 : f32
    %42 = vector.broadcast %cst_33 : f32 to vector<16x16xf32>
    %43 = arith.maximumf %41, %42 : vector<16x16xf32>
    %cst_34 = arith.constant dense<0xFF800000> : vector<16xf32>
    %44 = vector.multi_reduction <maximumf>, %43, %cst_34 [1] : vector<16x16xf32> to vector<16xf32>
    %45 = vector.shape_cast %44 : vector<16xf32> to vector<16x1xf32>
    %46 = vector.broadcast %45 : vector<16x1xf32> to vector<16x16xf32>
    %47 = arith.cmpf oge, %43, %46 : vector<16x16xf32>
    %cst_35 = arith.constant -1.000000e+30 : f32
    %48 = vector.broadcast %cst_35 : f32 to vector<16x16xf32>
    %49 = arith.select %47, %48, %43 : vector<16x16xi1>, vector<16x16xf32>
    %cst_36 = arith.constant dense<0xFF800000> : vector<16xf32>
    %50 = vector.multi_reduction <maximumf>, %49, %cst_36 [1] : vector<16x16xf32> to vector<16xf32>
    %51 = vector.shape_cast %50 : vector<16xf32> to vector<16x1xf32>
    %52 = vector.broadcast %51 : vector<16x1xf32> to vector<16x16xf32>
    %53 = arith.cmpf oge, %49, %52 : vector<16x16xf32>
    %cst_37 = arith.constant -1.000000e+30 : f32
    %54 = vector.broadcast %cst_37 : f32 to vector<16x16xf32>
    %55 = arith.select %53, %54, %49 : vector<16x16xi1>, vector<16x16xf32>
    %cst_38 = arith.constant dense<0xFF800000> : vector<16xf32>
    %56 = vector.multi_reduction <maximumf>, %55, %cst_38 [1] : vector<16x16xf32> to vector<16xf32>
    %57 = vector.shape_cast %56 : vector<16xf32> to vector<16x1xf32>
    %58 = vector.broadcast %57 : vector<16x1xf32> to vector<16x16xf32>
    %59 = arith.cmpf oge, %55, %58 : vector<16x16xf32>
    %cst_39 = arith.constant -1.000000e+30 : f32
    %60 = vector.broadcast %cst_39 : f32 to vector<16x16xf32>
    %61 = arith.select %59, %60, %55 : vector<16x16xi1>, vector<16x16xf32>
    %cst_40 = arith.constant dense<0xFF800000> : vector<16xf32>
    %62 = vector.multi_reduction <maximumf>, %61, %cst_40 [1] : vector<16x16xf32> to vector<16xf32>
    %63 = vector.shape_cast %62 : vector<16xf32> to vector<16x1xf32>
    %64 = vector.broadcast %63 : vector<16x1xf32> to vector<16x16xf32>
    %65 = arith.cmpf oge, %43, %64 : vector<16x16xf32>
    %cst_41 = arith.constant 0.000000e+00 : f32
    %66 = vector.broadcast %cst_41 : f32 to vector<16x16xf32>
    %67 = arith.select %65, %43, %66 : vector<16x16xi1>, vector<16x16xf32>
    %c0_42 = arith.constant 0 : index
    %c0_43 = arith.constant 0 : index
    %68 = vector.load %arg1[%c0_42, %c0_43] : memref<16x8xf32, #tpu.memory_space<vmem>>, vector<16x8xf32>
    %c0_44 = arith.constant 0 : index
    %c0_45 = arith.constant 0 : index
    %69 = vector.load %arg14[%c0_44, %c0_45] : memref<8x256xf32, #tpu.memory_space<vmem>>, vector<8x256xf32>
    %cst_46 = arith.constant dense<0.000000e+00> : vector<16x256xf32>
    %70 = tpu.matmul %68, %69, %cst_46 {dimension_numbers = #tpu.dot_dimension_numbers<[1], [0], [0], [1], [0, 0, 1, 1], [], []>} : vector<16x8xf32>, vector<8x256xf32>, vector<16x256xf32> -> vector<16x256xf32>
    %c0_47 = arith.constant 0 : index
    %c0_48 = arith.constant 0 : index
    %71 = vector.load %arg15[%c0_47, %c0_48] : memref<1x256xf32, #tpu.memory_space<vmem>>, vector<1x256xf32>
    %72 = vector.broadcast %71 : vector<1x256xf32> to vector<16x256xf32>
    %73 = arith.addf %70, %72 : vector<16x256xf32>
    %cst_49 = arith.constant 1.000000e+00 : f32
    %74 = vector.broadcast %cst_49 : f32 to vector<16x256xf32>
    %75 = arith.mulf %74, %73 : vector<16x256xf32>
    %cst_50 = arith.constant dense<0.000000e+00> : vector<16x256xf32>
    %76 = tpu.matmul %67, %73, %cst_50 {dimension_numbers = #tpu.dot_dimension_numbers<[1], [0], [0], [1], [0, 0, 1, 1], [], []>} : vector<16x16xf32>, vector<16x256xf32>, vector<16x256xf32> -> vector<16x256xf32>
    %77 = arith.addf %75, %76 : vector<16x256xf32>
    %c0_51 = arith.constant 0 : index
    %c0_52 = arith.constant 0 : index
    %78 = vector.load %arg16[%c0_51, %c0_52] : memref<256x256xf32, #tpu.memory_space<vmem>>, vector<256x256xf32>
    %cst_53 = arith.constant dense<0.000000e+00> : vector<16x256xf32>
    %79 = tpu.matmul %77, %78, %cst_53 {dimension_numbers = #tpu.dot_dimension_numbers<[1], [0], [0], [1], [0, 0, 1, 1], [], []>} : vector<16x256xf32>, vector<256x256xf32>, vector<16x256xf32> -> vector<16x256xf32>
    %c0_54 = arith.constant 0 : index
    %c0_55 = arith.constant 0 : index
    %80 = vector.load %arg17[%c0_54, %c0_55] : memref<1x256xf32, #tpu.memory_space<vmem>>, vector<1x256xf32>
    %81 = vector.broadcast %80 : vector<1x256xf32> to vector<16x256xf32>
    %82 = arith.addf %79, %81 : vector<16x256xf32>
    %cst_56 = arith.constant 0.000000e+00 : f32
    %83 = vector.broadcast %cst_56 : f32 to vector<16x256xf32>
    %84 = arith.maximumf %82, %83 : vector<16x256xf32>
    %c0_57 = arith.constant 0 : index
    %c0_58 = arith.constant 0 : index
    %85 = vector.load %arg18[%c0_57, %c0_58] : memref<256x256xf32, #tpu.memory_space<vmem>>, vector<256x256xf32>
    %cst_59 = arith.constant dense<0.000000e+00> : vector<16x256xf32>
    %86 = tpu.matmul %84, %85, %cst_59 {dimension_numbers = #tpu.dot_dimension_numbers<[1], [0], [0], [1], [0, 0, 1, 1], [], []>} : vector<16x256xf32>, vector<256x256xf32>, vector<16x256xf32> -> vector<16x256xf32>
    %c0_60 = arith.constant 0 : index
    %c0_61 = arith.constant 0 : index
    %87 = vector.load %arg19[%c0_60, %c0_61] : memref<1x256xf32, #tpu.memory_space<vmem>>, vector<1x256xf32>
    %88 = vector.broadcast %87 : vector<1x256xf32> to vector<16x256xf32>
    %89 = arith.addf %86, %88 : vector<16x256xf32>
    %cst_62 = arith.constant 0.000000e+00 : f32
    %90 = vector.broadcast %cst_62 : f32 to vector<16x256xf32>
    %91 = arith.maximumf %89, %90 : vector<16x256xf32>
    %cst_63 = arith.constant 1.000000e+00 : f32
    %92 = vector.broadcast %cst_63 : f32 to vector<16x256xf32>
    %93 = arith.mulf %92, %91 : vector<16x256xf32>
    %cst_64 = arith.constant dense<0.000000e+00> : vector<16x256xf32>
    %94 = tpu.matmul %67, %91, %cst_64 {dimension_numbers = #tpu.dot_dimension_numbers<[1], [0], [0], [1], [0, 0, 1, 1], [], []>} : vector<16x16xf32>, vector<16x256xf32>, vector<16x256xf32> -> vector<16x256xf32>
    %95 = arith.addf %93, %94 : vector<16x256xf32>
    %c0_65 = arith.constant 0 : index
    %c0_66 = arith.constant 0 : index
    %96 = vector.load %arg20[%c0_65, %c0_66] : memref<256x256xf32, #tpu.memory_space<vmem>>, vector<256x256xf32>
    %cst_67 = arith.constant dense<0.000000e+00> : vector<16x256xf32>
    %97 = tpu.matmul %95, %96, %cst_67 {dimension_numbers = #tpu.dot_dimension_numbers<[1], [0], [0], [1], [0, 0, 1, 1], [], []>} : vector<16x256xf32>, vector<256x256xf32>, vector<16x256xf32> -> vector<16x256xf32>
    %c0_68 = arith.constant 0 : index
    %c0_69 = arith.constant 0 : index
    %98 = vector.load %arg21[%c0_68, %c0_69] : memref<1x256xf32, #tpu.memory_space<vmem>>, vector<1x256xf32>
    %99 = vector.broadcast %98 : vector<1x256xf32> to vector<16x256xf32>
    %100 = arith.addf %97, %99 : vector<16x256xf32>
    %cst_70 = arith.constant 0.000000e+00 : f32
    %101 = vector.broadcast %cst_70 : f32 to vector<16x256xf32>
    %102 = arith.maximumf %100, %101 : vector<16x256xf32>
    %c0_71 = arith.constant 0 : index
    %c0_72 = arith.constant 0 : index
    %103 = vector.load %arg22[%c0_71, %c0_72] : memref<256x256xf32, #tpu.memory_space<vmem>>, vector<256x256xf32>
    %cst_73 = arith.constant dense<0.000000e+00> : vector<16x256xf32>
    %104 = tpu.matmul %102, %103, %cst_73 {dimension_numbers = #tpu.dot_dimension_numbers<[1], [0], [0], [1], [0, 0, 1, 1], [], []>} : vector<16x256xf32>, vector<256x256xf32>, vector<16x256xf32> -> vector<16x256xf32>
    %c0_74 = arith.constant 0 : index
    %c0_75 = arith.constant 0 : index
    %105 = vector.load %arg23[%c0_74, %c0_75] : memref<1x256xf32, #tpu.memory_space<vmem>>, vector<1x256xf32>
    %106 = vector.broadcast %105 : vector<1x256xf32> to vector<16x256xf32>
    %107 = arith.addf %104, %106 : vector<16x256xf32>
    %108 = arith.addf %107, %73 : vector<16x256xf32>
    %c0_76 = arith.constant 0 : index
    %c0_77 = arith.constant 0 : index
    %109 = vector.load %arg24[%c0_76, %c0_77] : memref<256x8xf32, #tpu.memory_space<vmem>>, vector<256x8xf32>
    %cst_78 = arith.constant dense<0.000000e+00> : vector<16x8xf32>
    %110 = tpu.matmul %108, %109, %cst_78 {dimension_numbers = #tpu.dot_dimension_numbers<[1], [0], [0], [1], [0, 0, 1, 1], [], []>} : vector<16x256xf32>, vector<256x8xf32>, vector<16x8xf32> -> vector<16x8xf32>
    %c0_79 = arith.constant 0 : index
    %c0_80 = arith.constant 0 : index
    %111 = vector.load %arg25[%c0_79, %c0_80] : memref<1x1xf32, #tpu.memory_space<vmem>>, vector<1x1xf32>
    %112 = vector.broadcast %111 : vector<1x1xf32> to vector<16x8xf32>
    %113 = arith.addf %110, %112 : vector<16x8xf32>
    %c0_81 = arith.constant 0 : index
    %c0_82 = arith.constant 0 : index
    %114 = vector.load %arg26[%c0_81, %c0_82] : memref<16x8xf32, #tpu.memory_space<vmem>>, vector<16x8xf32>
    tpu.vector_store %arg26[%c0_81, %c0_82], %113 {strides = array<i32>} : memref<16x8xf32, #tpu.memory_space<vmem>>, vector<16x8xf32>,
    return
  }
  func.func @transform_0(%arg0: i32) -> (i32, i32) {
    %c0_i32 = arith.constant 0 : i32
    %c0_i32_0 = arith.constant 0 : i32
    %c0_i32_1 = arith.constant 0 : i32
    return %c0_i32, %c0_i32_0 : i32, i32
  }
  func.func @transform_1(%arg0: i32) -> (i32, i32) {
    %c0_i32 = arith.constant 0 : i32
    %c0_i32_0 = arith.constant 0 : i32
    %c0_i32_1 = arith.constant 0 : i32
    return %c0_i32, %c0_i32_0 : i32, i32
  }
  func.func @transform_2(%arg0: i32) -> (i32, i32) {
    %c0_i32 = arith.constant 0 : i32
    %c0_i32_0 = arith.constant 0 : i32
    %c0_i32_1 = arith.constant 0 : i32
    return %c0_i32, %c0_i32_0 : i32, i32
  }
  func.func @transform_3(%arg0: i32) -> (i32, i32) {
    %c0_i32 = arith.constant 0 : i32
    %c0_i32_0 = arith.constant 0 : i32
    %c0_i32_1 = arith.constant 0 : i32
    return %c0_i32, %c0_i32_0 : i32, i32
  }
  func.func @transform_4(%arg0: i32) -> (i32, i32) {
    %c0_i32 = arith.constant 0 : i32
    %c0_i32_0 = arith.constant 0 : i32
    %c0_i32_1 = arith.constant 0 : i32
    return %c0_i32, %c0_i32_0 : i32, i32
  }
  func.func @transform_5(%arg0: i32) -> (i32, i32) {
    %c0_i32 = arith.constant 0 : i32
    %c0_i32_0 = arith.constant 0 : i32
    %c0_i32_1 = arith.constant 0 : i32
    return %c0_i32, %c0_i32_0 : i32, i32
  }
  func.func @transform_6(%arg0: i32) -> (i32, i32) {
    %c0_i32 = arith.constant 0 : i32
    %c0_i32_0 = arith.constant 0 : i32
    %c0_i32_1 = arith.constant 0 : i32
    return %c0_i32, %c0_i32_0 : i32, i32
  }
  func.func @transform_7(%arg0: i32) -> (i32, i32) {
    %c0_i32 = arith.constant 0 : i32
    %c0_i32_0 = arith.constant 0 : i32
    %c0_i32_1 = arith.constant 0 : i32
    return %c0_i32, %c0_i32_0 : i32, i32
  }
  func.func @transform_8(%arg0: i32) -> (i32, i32) {
    %c0_i32 = arith.constant 0 : i32
    %c0_i32_0 = arith.constant 0 : i32
    %c0_i32_1 = arith.constant 0 : i32
    return %c0_i32, %c0_i32_0 : i32, i32
  }
  func.func @transform_9(%arg0: i32) -> (i32, i32) {
    %c0_i32 = arith.constant 0 : i32
    %c0_i32_0 = arith.constant 0 : i32
    %c0_i32_1 = arith.constant 0 : i32
    return %c0_i32, %c0_i32_0 : i32, i32
  }
  func.func @transform_10(%arg0: i32) -> (i32, i32) {
    %c0_i32 = arith.constant 0 : i32
    %c0_i32_0 = arith.constant 0 : i32
    %c0_i32_1 = arith.constant 0 : i32
    return %c0_i32, %c0_i32_0 : i32, i32
  }
  func.func @transform_11(%arg0: i32) -> (i32, i32) {
    %c0_i32 = arith.constant 0 : i32
    %c0_i32_0 = arith.constant 0 : i32
    %c0_i32_1 = arith.constant 0 : i32
    return %c0_i32, %c0_i32_0 : i32, i32
  }
  func.func @transform_12(%arg0: i32) -> (i32, i32) {
    %c0_i32 = arith.constant 0 : i32
    %c0_i32_0 = arith.constant 0 : i32
    %c0_i32_1 = arith.constant 0 : i32
    return %c0_i32, %c0_i32_0 : i32, i32
  }
  func.func @transform_13(%arg0: i32) -> (i32, i32) {
    %c0_i32 = arith.constant 0 : i32
    %c0_i32_0 = arith.constant 0 : i32
    %c0_i32_1 = arith.constant 0 : i32
    return %c0_i32, %c0_i32_0 : i32, i32
  }
  func.func @transform_14(%arg0: i32) -> (i32, i32) {
    %c0_i32 = arith.constant 0 : i32
    %c0_i32_0 = arith.constant 0 : i32
    %c0_i32_1 = arith.constant 0 : i32
    return %c0_i32, %c0_i32_0 : i32, i32
  }
  func.func @transform_15(%arg0: i32) -> (i32, i32) {
    %c0_i32 = arith.constant 0 : i32
    %c0_i32_0 = arith.constant 0 : i32
    %c0_i32_1 = arith.constant 0 : i32
    return %c0_i32, %c0_i32_0 : i32, i32
  }
  func.func @transform_16(%arg0: i32) -> (i32, i32) {
    %c0_i32 = arith.constant 0 : i32
    %c0_i32_0 = arith.constant 0 : i32
    %c0_i32_1 = arith.constant 0 : i32
    return %c0_i32, %c0_i32_0 : i32, i32
  }
  func.func @transform_17(%arg0: i32) -> (i32, i32) {
    %c0_i32 = arith.constant 0 : i32
    %c0_i32_0 = arith.constant 0 : i32
    %c0_i32_1 = arith.constant 0 : i32
    return %c0_i32, %c0_i32_0 : i32, i32
  }
  func.func @transform_18(%arg0: i32) -> (i32, i32) {
    %c0_i32 = arith.constant 0 : i32
    %c0_i32_0 = arith.constant 0 : i32
    %c0_i32_1 = arith.constant 0 : i32
    return %c0_i32, %c0_i32_0 : i32, i32
  }
  func.func @transform_19(%arg0: i32) -> (i32, i32) {
    %c0_i32 = arith.constant 0 : i32
    %c0_i32_0 = arith.constant 0 : i32
    %c0_i32_1 = arith.constant 0 : i32
    return %c0_i32, %c0_i32_0 : i32, i32
  }
  func.func @transform_20(%arg0: i32) -> (i32, i32) {
    %c0_i32 = arith.constant 0 : i32
    %c0_i32_0 = arith.constant 0 : i32
    %c0_i32_1 = arith.constant 0 : i32
    return %c0_i32, %c0_i32_0 : i32, i32
  }
  func.func @transform_21(%arg0: i32) -> (i32, i32) {
    %c0_i32 = arith.constant 0 : i32
    %c0_i32_0 = arith.constant 0 : i32
    %c0_i32_1 = arith.constant 0 : i32
    return %c0_i32, %c0_i32_0 : i32, i32
  }
  func.func @transform_22(%arg0: i32) -> (i32, i32) {
    %c0_i32 = arith.constant 0 : i32
    %c0_i32_0 = arith.constant 0 : i32
    %c0_i32_1 = arith.constant 0 : i32
    return %c0_i32, %c0_i32_0 : i32, i32
  }
  func.func @transform_23(%arg0: i32) -> (i32, i32) {
    %c0_i32 = arith.constant 0 : i32
    %c0_i32_0 = arith.constant 0 : i32
    %c0_i32_1 = arith.constant 0 : i32
    return %c0_i32, %c0_i32_0 : i32, i32
  }
  func.func @transform_24(%arg0: i32) -> (i32, i32) {
    %c0_i32 = arith.constant 0 : i32
    %c0_i32_0 = arith.constant 0 : i32
    %c0_i32_1 = arith.constant 0 : i32
    return %c0_i32, %c0_i32_0 : i32, i32
  }
  func.func @transform_25(%arg0: i32) -> (i32, i32) {
    %c0_i32 = arith.constant 0 : i32
    %c0_i32_0 = arith.constant 0 : i32
    %c0_i32_1 = arith.constant 0 : i32
    return %c0_i32, %c0_i32_0 : i32, i32
  }
}

module attributes {stable_mosaic.version = 11 : i64} {
  func.func @_predict_kernel(%arg0: i32, %arg1: memref<8x8xf32, #tpu.memory_space<vmem>>, %arg2: memref<8x32xf32, #tpu.memory_space<vmem>>, %arg3: memref<1x32xf32, #tpu.memory_space<vmem>>, %arg4: memref<32x32xf32, #tpu.memory_space<vmem>>, %arg5: memref<1x32xf32, #tpu.memory_space<vmem>>, %arg6: memref<32x32xf32, #tpu.memory_space<vmem>>, %arg7: memref<1x32xf32, #tpu.memory_space<vmem>>, %arg8: memref<32x8xf32, #tpu.memory_space<vmem>>, %arg9: memref<1x8xf32, #tpu.memory_space<vmem>>, %arg10: memref<8x8xf32, #tpu.memory_space<vmem>>, %arg11: memref<1x8xf32, #tpu.memory_space<vmem>>, %arg12: memref<8x8xf32, #tpu.memory_space<vmem>>) attributes {dimension_semantics = [#tpu.dimension_semantics<arbitrary>], iteration_bounds = array<i64: 1>, scalar_prefetch = 0 : i64, scratch_operands = 0 : i64, tpu.core_type = #tpu.core_type<tc>, window_params = [{pipeline_mode = #tpu.pipeline_mode<synchronous>, transform_indices = @transform_0, window_bounds = array<i64: 8, 8>}, {pipeline_mode = #tpu.pipeline_mode<synchronous>, transform_indices = @transform_1, window_bounds = array<i64: 8, 32>}, {pipeline_mode = #tpu.pipeline_mode<synchronous>, transform_indices = @transform_2, window_bounds = array<i64: 1, 32>}, {pipeline_mode = #tpu.pipeline_mode<synchronous>, transform_indices = @transform_3, window_bounds = array<i64: 32, 32>}, {pipeline_mode = #tpu.pipeline_mode<synchronous>, transform_indices = @transform_4, window_bounds = array<i64: 1, 32>}, {pipeline_mode = #tpu.pipeline_mode<synchronous>, transform_indices = @transform_5, window_bounds = array<i64: 32, 32>}, {pipeline_mode = #tpu.pipeline_mode<synchronous>, transform_indices = @transform_6, window_bounds = array<i64: 1, 32>}, {pipeline_mode = #tpu.pipeline_mode<synchronous>, transform_indices = @transform_7, window_bounds = array<i64: 32, 8>}, {pipeline_mode = #tpu.pipeline_mode<synchronous>, transform_indices = @transform_8, window_bounds = array<i64: 1, 8>}, {pipeline_mode = #tpu.pipeline_mode<synchronous>, transform_indices = @transform_9, window_bounds = array<i64: 8, 8>}, {pipeline_mode = #tpu.pipeline_mode<synchronous>, transform_indices = @transform_10, window_bounds = array<i64: 1, 8>}, {pipeline_mode = #tpu.pipeline_mode<synchronous>, transform_indices = @transform_11, window_bounds = array<i64: 8, 8>}]} {
    %c0 = arith.constant 0 : index
    %c0_0 = arith.constant 0 : index
    %0 = vector.load %arg1[%c0, %c0_0] : memref<8x8xf32, #tpu.memory_space<vmem>>, vector<8x8xf32>
    %c0_1 = arith.constant 0 : index
    %c0_2 = arith.constant 0 : index
    %1 = vector.load %arg2[%c0_1, %c0_2] : memref<8x32xf32, #tpu.memory_space<vmem>>, vector<8x32xf32>
    %cst = arith.constant dense<0.000000e+00> : vector<8x32xf32>
    %2 = tpu.matmul %0, %1, %cst {dimension_numbers = #tpu.dot_dimension_numbers<[1], [0], [0], [1], [0, 0, 1, 1], [], []>} : vector<8x8xf32>, vector<8x32xf32>, vector<8x32xf32> -> vector<8x32xf32>
    %c0_3 = arith.constant 0 : index
    %c0_4 = arith.constant 0 : index
    %3 = vector.load %arg3[%c0_3, %c0_4] : memref<1x32xf32, #tpu.memory_space<vmem>>, vector<1x32xf32>
    %4 = vector.broadcast %3 : vector<1x32xf32> to vector<8x32xf32>
    %5 = arith.addf %2, %4 : vector<8x32xf32>
    %c0_5 = arith.constant 0 : index
    %c0_6 = arith.constant 0 : index
    %6 = vector.load %arg4[%c0_5, %c0_6] : memref<32x32xf32, #tpu.memory_space<vmem>>, vector<32x32xf32>
    %cst_7 = arith.constant dense<0.000000e+00> : vector<8x32xf32>
    %7 = tpu.matmul %5, %6, %cst_7 {dimension_numbers = #tpu.dot_dimension_numbers<[1], [0], [0], [1], [0, 0, 1, 1], [], []>} : vector<8x32xf32>, vector<32x32xf32>, vector<8x32xf32> -> vector<8x32xf32>
    %c0_8 = arith.constant 0 : index
    %c0_9 = arith.constant 0 : index
    %8 = vector.load %arg5[%c0_8, %c0_9] : memref<1x32xf32, #tpu.memory_space<vmem>>, vector<1x32xf32>
    %9 = vector.broadcast %8 : vector<1x32xf32> to vector<8x32xf32>
    %10 = arith.addf %7, %9 : vector<8x32xf32>
    %cst_10 = arith.constant 0.000000e+00 : f32
    %11 = vector.broadcast %cst_10 : f32 to vector<8x32xf32>
    %12 = arith.maximumf %10, %11 : vector<8x32xf32>
    %c0_11 = arith.constant 0 : index
    %c0_12 = arith.constant 0 : index
    %13 = vector.load %arg6[%c0_11, %c0_12] : memref<32x32xf32, #tpu.memory_space<vmem>>, vector<32x32xf32>
    %cst_13 = arith.constant dense<0.000000e+00> : vector<8x32xf32>
    %14 = tpu.matmul %12, %13, %cst_13 {dimension_numbers = #tpu.dot_dimension_numbers<[1], [0], [0], [1], [0, 0, 1, 1], [], []>} : vector<8x32xf32>, vector<32x32xf32>, vector<8x32xf32> -> vector<8x32xf32>
    %15 = arith.addf %5, %14 : vector<8x32xf32>
    %c0_14 = arith.constant 0 : index
    %c0_15 = arith.constant 0 : index
    %16 = vector.load %arg7[%c0_14, %c0_15] : memref<1x32xf32, #tpu.memory_space<vmem>>, vector<1x32xf32>
    %17 = vector.broadcast %16 : vector<1x32xf32> to vector<8x32xf32>
    %18 = arith.addf %15, %17 : vector<8x32xf32>
    %c0_16 = arith.constant 0 : index
    %c0_17 = arith.constant 0 : index
    %19 = vector.load %arg8[%c0_16, %c0_17] : memref<32x8xf32, #tpu.memory_space<vmem>>, vector<32x8xf32>
    %cst_18 = arith.constant dense<0.000000e+00> : vector<8x8xf32>
    %20 = tpu.matmul %18, %19, %cst_18 {dimension_numbers = #tpu.dot_dimension_numbers<[1], [0], [0], [1], [0, 0, 1, 1], [], []>} : vector<8x32xf32>, vector<32x8xf32>, vector<8x8xf32> -> vector<8x8xf32>
    %c0_19 = arith.constant 0 : index
    %c0_20 = arith.constant 0 : index
    %21 = vector.load %arg9[%c0_19, %c0_20] : memref<1x8xf32, #tpu.memory_space<vmem>>, vector<1x8xf32>
    %22 = vector.broadcast %21 : vector<1x8xf32> to vector<8x8xf32>
    %23 = arith.addf %20, %22 : vector<8x8xf32>
    %c0_21 = arith.constant 0 : index
    %c0_22 = arith.constant 0 : index
    %24 = vector.load %arg10[%c0_21, %c0_22] : memref<8x8xf32, #tpu.memory_space<vmem>>, vector<8x8xf32>
    %cst_23 = arith.constant dense<0.000000e+00> : vector<8x8xf32>
    %25 = tpu.matmul %23, %24, %cst_23 {dimension_numbers = #tpu.dot_dimension_numbers<[1], [0], [0], [1], [0, 0, 1, 1], [], []>} : vector<8x8xf32>, vector<8x8xf32>, vector<8x8xf32> -> vector<8x8xf32>
    %c0_24 = arith.constant 0 : index
    %c0_25 = arith.constant 0 : index
    %26 = vector.load %arg11[%c0_24, %c0_25] : memref<1x8xf32, #tpu.memory_space<vmem>>, vector<1x8xf32>
    %27 = vector.broadcast %26 : vector<1x8xf32> to vector<8x8xf32>
    %28 = arith.addf %25, %27 : vector<8x8xf32>
    %c0_26 = arith.constant 0 : index
    %c0_27 = arith.constant 0 : index
    %29 = vector.load %arg12[%c0_26, %c0_27] : memref<8x8xf32, #tpu.memory_space<vmem>>, vector<8x8xf32>
    tpu.vector_store %arg12[%c0_26, %c0_27], %28 {strides = array<i32>} : memref<8x8xf32, #tpu.memory_space<vmem>>, vector<8x8xf32>,
    return
  }
  func.func @transform_0(%arg0: i32) -> (i32, i32) {
    %c0_i32 = arith.constant 0 : i32
    %c0_i32_0 = arith.constant 0 : i32
    %c0_i32_1 = arith.constant 0 : i32
    return %c0_i32, %c0_i32_0 : i32, i32
  }
  func.func @transform_1(%arg0: i32) -> (i32, i32) {
    %c0_i32 = arith.constant 0 : i32
    %c0_i32_0 = arith.constant 0 : i32
    %c0_i32_1 = arith.constant 0 : i32
    return %c0_i32, %c0_i32_0 : i32, i32
  }
  func.func @transform_2(%arg0: i32) -> (i32, i32) {
    %c0_i32 = arith.constant 0 : i32
    %c0_i32_0 = arith.constant 0 : i32
    %c0_i32_1 = arith.constant 0 : i32
    return %c0_i32, %c0_i32_0 : i32, i32
  }
  func.func @transform_3(%arg0: i32) -> (i32, i32) {
    %c0_i32 = arith.constant 0 : i32
    %c0_i32_0 = arith.constant 0 : i32
    %c0_i32_1 = arith.constant 0 : i32
    return %c0_i32, %c0_i32_0 : i32, i32
  }
  func.func @transform_4(%arg0: i32) -> (i32, i32) {
    %c0_i32 = arith.constant 0 : i32
    %c0_i32_0 = arith.constant 0 : i32
    %c0_i32_1 = arith.constant 0 : i32
    return %c0_i32, %c0_i32_0 : i32, i32
  }
  func.func @transform_5(%arg0: i32) -> (i32, i32) {
    %c0_i32 = arith.constant 0 : i32
    %c0_i32_0 = arith.constant 0 : i32
    %c0_i32_1 = arith.constant 0 : i32
    return %c0_i32, %c0_i32_0 : i32, i32
  }
  func.func @transform_6(%arg0: i32) -> (i32, i32) {
    %c0_i32 = arith.constant 0 : i32
    %c0_i32_0 = arith.constant 0 : i32
    %c0_i32_1 = arith.constant 0 : i32
    return %c0_i32, %c0_i32_0 : i32, i32
  }
  func.func @transform_7(%arg0: i32) -> (i32, i32) {
    %c0_i32 = arith.constant 0 : i32
    %c0_i32_0 = arith.constant 0 : i32
    %c0_i32_1 = arith.constant 0 : i32
    return %c0_i32, %c0_i32_0 : i32, i32
  }
  func.func @transform_8(%arg0: i32) -> (i32, i32) {
    %c0_i32 = arith.constant 0 : i32
    %c0_i32_0 = arith.constant 0 : i32
    %c0_i32_1 = arith.constant 0 : i32
    return %c0_i32, %c0_i32_0 : i32, i32
  }
  func.func @transform_9(%arg0: i32) -> (i32, i32) {
    %c0_i32 = arith.constant 0 : i32
    %c0_i32_0 = arith.constant 0 : i32
    %c0_i32_1 = arith.constant 0 : i32
    return %c0_i32, %c0_i32_0 : i32, i32
  }
  func.func @transform_10(%arg0: i32) -> (i32, i32) {
    %c0_i32 = arith.constant 0 : i32
    %c0_i32_0 = arith.constant 0 : i32
    %c0_i32_1 = arith.constant 0 : i32
    return %c0_i32, %c0_i32_0 : i32, i32
  }
  func.func @transform_11(%arg0: i32) -> (i32, i32) {
    %c0_i32 = arith.constant 0 : i32
    %c0_i32_0 = arith.constant 0 : i32
    %c0_i32_1 = arith.constant 0 : i32
    return %c0_i32, %c0_i32_0 : i32, i32
  }
}

module attributes {stable_mosaic.version = 11 : i64} {
  func.func @_predict_kernel(%arg0: i32, %arg1: memref<8x16xf32, #tpu.memory_space<vmem>>, %arg2: memref<16x64xf32, #tpu.memory_space<vmem>>, %arg3: memref<1x64xf32, #tpu.memory_space<vmem>>, %arg4: memref<64x64xf32, #tpu.memory_space<vmem>>, %arg5: memref<1x64xf32, #tpu.memory_space<vmem>>, %arg6: memref<64x64xf32, #tpu.memory_space<vmem>>, %arg7: memref<1x64xf32, #tpu.memory_space<vmem>>, %arg8: memref<64x16xf32, #tpu.memory_space<vmem>>, %arg9: memref<1x16xf32, #tpu.memory_space<vmem>>, %arg10: memref<16x8xf32, #tpu.memory_space<vmem>>, %arg11: memref<1x8xf32, #tpu.memory_space<vmem>>, %arg12: memref<8x8xf32, #tpu.memory_space<vmem>>) attributes {dimension_semantics = [#tpu.dimension_semantics<arbitrary>], iteration_bounds = array<i64: 1>, scalar_prefetch = 0 : i64, scratch_operands = 0 : i64, tpu.core_type = #tpu.core_type<tc>, window_params = [{pipeline_mode = #tpu.pipeline_mode<synchronous>, transform_indices = @transform_0, window_bounds = array<i64: 8, 16>}, {pipeline_mode = #tpu.pipeline_mode<synchronous>, transform_indices = @transform_1, window_bounds = array<i64: 16, 64>}, {pipeline_mode = #tpu.pipeline_mode<synchronous>, transform_indices = @transform_2, window_bounds = array<i64: 1, 64>}, {pipeline_mode = #tpu.pipeline_mode<synchronous>, transform_indices = @transform_3, window_bounds = array<i64: 64, 64>}, {pipeline_mode = #tpu.pipeline_mode<synchronous>, transform_indices = @transform_4, window_bounds = array<i64: 1, 64>}, {pipeline_mode = #tpu.pipeline_mode<synchronous>, transform_indices = @transform_5, window_bounds = array<i64: 64, 64>}, {pipeline_mode = #tpu.pipeline_mode<synchronous>, transform_indices = @transform_6, window_bounds = array<i64: 1, 64>}, {pipeline_mode = #tpu.pipeline_mode<synchronous>, transform_indices = @transform_7, window_bounds = array<i64: 64, 16>}, {pipeline_mode = #tpu.pipeline_mode<synchronous>, transform_indices = @transform_8, window_bounds = array<i64: 1, 16>}, {pipeline_mode = #tpu.pipeline_mode<synchronous>, transform_indices = @transform_9, window_bounds = array<i64: 16, 8>}, {pipeline_mode = #tpu.pipeline_mode<synchronous>, transform_indices = @transform_10, window_bounds = array<i64: 1, 8>}, {pipeline_mode = #tpu.pipeline_mode<synchronous>, transform_indices = @transform_11, window_bounds = array<i64: 8, 8>}]} {
    %c0 = arith.constant 0 : index
    %c0_0 = arith.constant 0 : index
    %0 = vector.load %arg1[%c0, %c0_0] : memref<8x16xf32, #tpu.memory_space<vmem>>, vector<8x16xf32>
    %c0_1 = arith.constant 0 : index
    %c0_2 = arith.constant 0 : index
    %1 = vector.load %arg2[%c0_1, %c0_2] : memref<16x64xf32, #tpu.memory_space<vmem>>, vector<16x64xf32>
    %cst = arith.constant dense<0.000000e+00> : vector<8x64xf32>
    %2 = tpu.matmul %0, %1, %cst {dimension_numbers = #tpu.dot_dimension_numbers<[1], [0], [0], [1], [0, 0, 1, 1], [], []>} : vector<8x16xf32>, vector<16x64xf32>, vector<8x64xf32> -> vector<8x64xf32>
    %c0_3 = arith.constant 0 : index
    %c0_4 = arith.constant 0 : index
    %3 = vector.load %arg3[%c0_3, %c0_4] : memref<1x64xf32, #tpu.memory_space<vmem>>, vector<1x64xf32>
    %4 = vector.broadcast %3 : vector<1x64xf32> to vector<8x64xf32>
    %5 = arith.addf %2, %4 : vector<8x64xf32>
    %c0_5 = arith.constant 0 : index
    %c0_6 = arith.constant 0 : index
    %6 = vector.load %arg4[%c0_5, %c0_6] : memref<64x64xf32, #tpu.memory_space<vmem>>, vector<64x64xf32>
    %cst_7 = arith.constant dense<0.000000e+00> : vector<8x64xf32>
    %7 = tpu.matmul %5, %6, %cst_7 {dimension_numbers = #tpu.dot_dimension_numbers<[1], [0], [0], [1], [0, 0, 1, 1], [], []>} : vector<8x64xf32>, vector<64x64xf32>, vector<8x64xf32> -> vector<8x64xf32>
    %c0_8 = arith.constant 0 : index
    %c0_9 = arith.constant 0 : index
    %8 = vector.load %arg5[%c0_8, %c0_9] : memref<1x64xf32, #tpu.memory_space<vmem>>, vector<1x64xf32>
    %9 = vector.broadcast %8 : vector<1x64xf32> to vector<8x64xf32>
    %10 = arith.addf %7, %9 : vector<8x64xf32>
    %cst_10 = arith.constant 0.000000e+00 : f32
    %11 = vector.broadcast %cst_10 : f32 to vector<8x64xf32>
    %12 = arith.maximumf %10, %11 : vector<8x64xf32>
    %c0_11 = arith.constant 0 : index
    %c0_12 = arith.constant 0 : index
    %13 = vector.load %arg6[%c0_11, %c0_12] : memref<64x64xf32, #tpu.memory_space<vmem>>, vector<64x64xf32>
    %cst_13 = arith.constant dense<0.000000e+00> : vector<8x64xf32>
    %14 = tpu.matmul %12, %13, %cst_13 {dimension_numbers = #tpu.dot_dimension_numbers<[1], [0], [0], [1], [0, 0, 1, 1], [], []>} : vector<8x64xf32>, vector<64x64xf32>, vector<8x64xf32> -> vector<8x64xf32>
    %15 = arith.addf %5, %14 : vector<8x64xf32>
    %c0_14 = arith.constant 0 : index
    %c0_15 = arith.constant 0 : index
    %16 = vector.load %arg7[%c0_14, %c0_15] : memref<1x64xf32, #tpu.memory_space<vmem>>, vector<1x64xf32>
    %17 = vector.broadcast %16 : vector<1x64xf32> to vector<8x64xf32>
    %18 = arith.addf %15, %17 : vector<8x64xf32>
    %c0_16 = arith.constant 0 : index
    %c0_17 = arith.constant 0 : index
    %19 = vector.load %arg8[%c0_16, %c0_17] : memref<64x16xf32, #tpu.memory_space<vmem>>, vector<64x16xf32>
    %cst_18 = arith.constant dense<0.000000e+00> : vector<8x16xf32>
    %20 = tpu.matmul %18, %19, %cst_18 {dimension_numbers = #tpu.dot_dimension_numbers<[1], [0], [0], [1], [0, 0, 1, 1], [], []>} : vector<8x64xf32>, vector<64x16xf32>, vector<8x16xf32> -> vector<8x16xf32>
    %c0_19 = arith.constant 0 : index
    %c0_20 = arith.constant 0 : index
    %21 = vector.load %arg9[%c0_19, %c0_20] : memref<1x16xf32, #tpu.memory_space<vmem>>, vector<1x16xf32>
    %22 = vector.broadcast %21 : vector<1x16xf32> to vector<8x16xf32>
    %23 = arith.addf %20, %22 : vector<8x16xf32>
    %c0_21 = arith.constant 0 : index
    %c0_22 = arith.constant 0 : index
    %24 = vector.load %arg10[%c0_21, %c0_22] : memref<16x8xf32, #tpu.memory_space<vmem>>, vector<16x8xf32>
    %cst_23 = arith.constant dense<0.000000e+00> : vector<8x8xf32>
    %25 = tpu.matmul %23, %24, %cst_23 {dimension_numbers = #tpu.dot_dimension_numbers<[1], [0], [0], [1], [0, 0, 1, 1], [], []>} : vector<8x16xf32>, vector<16x8xf32>, vector<8x8xf32> -> vector<8x8xf32>
    %c0_24 = arith.constant 0 : index
    %c0_25 = arith.constant 0 : index
    %26 = vector.load %arg11[%c0_24, %c0_25] : memref<1x8xf32, #tpu.memory_space<vmem>>, vector<1x8xf32>
    %27 = vector.broadcast %26 : vector<1x8xf32> to vector<8x8xf32>
    %28 = arith.addf %25, %27 : vector<8x8xf32>
    %c0_26 = arith.constant 0 : index
    %c0_27 = arith.constant 0 : index
    %29 = vector.load %arg12[%c0_26, %c0_27] : memref<8x8xf32, #tpu.memory_space<vmem>>, vector<8x8xf32>
    tpu.vector_store %arg12[%c0_26, %c0_27], %28 {strides = array<i32>} : memref<8x8xf32, #tpu.memory_space<vmem>>, vector<8x8xf32>,
    return
  }
  func.func @transform_0(%arg0: i32) -> (i32, i32) {
    %c0_i32 = arith.constant 0 : i32
    %c0_i32_0 = arith.constant 0 : i32
    %c0_i32_1 = arith.constant 0 : i32
    return %c0_i32, %c0_i32_0 : i32, i32
  }
  func.func @transform_1(%arg0: i32) -> (i32, i32) {
    %c0_i32 = arith.constant 0 : i32
    %c0_i32_0 = arith.constant 0 : i32
    %c0_i32_1 = arith.constant 0 : i32
    return %c0_i32, %c0_i32_0 : i32, i32
  }
  func.func @transform_2(%arg0: i32) -> (i32, i32) {
    %c0_i32 = arith.constant 0 : i32
    %c0_i32_0 = arith.constant 0 : i32
    %c0_i32_1 = arith.constant 0 : i32
    return %c0_i32, %c0_i32_0 : i32, i32
  }
  func.func @transform_3(%arg0: i32) -> (i32, i32) {
    %c0_i32 = arith.constant 0 : i32
    %c0_i32_0 = arith.constant 0 : i32
    %c0_i32_1 = arith.constant 0 : i32
    return %c0_i32, %c0_i32_0 : i32, i32
  }
  func.func @transform_4(%arg0: i32) -> (i32, i32) {
    %c0_i32 = arith.constant 0 : i32
    %c0_i32_0 = arith.constant 0 : i32
    %c0_i32_1 = arith.constant 0 : i32
    return %c0_i32, %c0_i32_0 : i32, i32
  }
  func.func @transform_5(%arg0: i32) -> (i32, i32) {
    %c0_i32 = arith.constant 0 : i32
    %c0_i32_0 = arith.constant 0 : i32
    %c0_i32_1 = arith.constant 0 : i32
    return %c0_i32, %c0_i32_0 : i32, i32
  }
  func.func @transform_6(%arg0: i32) -> (i32, i32) {
    %c0_i32 = arith.constant 0 : i32
    %c0_i32_0 = arith.constant 0 : i32
    %c0_i32_1 = arith.constant 0 : i32
    return %c0_i32, %c0_i32_0 : i32, i32
  }
  func.func @transform_7(%arg0: i32) -> (i32, i32) {
    %c0_i32 = arith.constant 0 : i32
    %c0_i32_0 = arith.constant 0 : i32
    %c0_i32_1 = arith.constant 0 : i32
    return %c0_i32, %c0_i32_0 : i32, i32
  }
  func.func @transform_8(%arg0: i32) -> (i32, i32) {
    %c0_i32 = arith.constant 0 : i32
    %c0_i32_0 = arith.constant 0 : i32
    %c0_i32_1 = arith.constant 0 : i32
    return %c0_i32, %c0_i32_0 : i32, i32
  }
  func.func @transform_9(%arg0: i32) -> (i32, i32) {
    %c0_i32 = arith.constant 0 : i32
    %c0_i32_0 = arith.constant 0 : i32
    %c0_i32_1 = arith.constant 0 : i32
    return %c0_i32, %c0_i32_0 : i32, i32
  }
  func.func @transform_10(%arg0: i32) -> (i32, i32) {
    %c0_i32 = arith.constant 0 : i32
    %c0_i32_0 = arith.constant 0 : i32
    %c0_i32_1 = arith.constant 0 : i32
    return %c0_i32, %c0_i32_0 : i32, i32
  }
  func.func @transform_11(%arg0: i32) -> (i32, i32) {
    %c0_i32 = arith.constant 0 : i32
    %c0_i32_0 = arith.constant 0 : i32
    %c0_i32_1 = arith.constant 0 : i32
    return %c0_i32, %c0_i32_0 : i32, i32
  }
}

</mosaic_0001>

<bundles_post_ra>
// kernel: _lambda_.7
= control target key start
LH: loop header
LB: loop body
LE: loop exit
PB: predicated region body
PF: predicated region fallthrough
CT: control target
= control target key end

     0   :  { %vm47_vm0 = vcmask 64512   ;;  %v537_v0 = vmov 0.0   ;;  %vm538_vm1 = vmmov 0   ;;  %vm132_vm2 = vcmask 261120   ;;  %s673_s1 = inlined_call_operand.vmem [shape: f32[8,32], index: 1, kind: input, shape index: {}]   ;;  %s674_s0 = inlined_call_operand.vmem [shape: f32[8,8], index: 0, kind: input, shape index: {}]   ;;  %s675_s3 = inlined_call_operand.vmem [shape: f32[32,32], index: 3, kind: input, shape index: {}]   ;;  %s676_s5 = inlined_call_operand.vmem [shape: f32[32,32], index: 5, kind: input, shape index: {}]   ;;  %s677_s2 = inlined_call_operand.vmem [shape: f32[1,32], index: 2, kind: input, shape index: {}]   ;;  %s678_s7 = inlined_call_operand.vmem [shape: f32[32,8], index: 7, kind: input, shape index: {}]   ;;  %s679_s4 = inlined_call_operand.vmem [shape: f32[1,32], index: 4, kind: input, shape index: {}]   ;;  %s680_s9 = inlined_call_operand.vmem [shape: f32[8,8], index: 9, kind: input, shape index: {}]   ;;  %s681_s6 = inlined_call_operand.vmem [shape: f32[1,32], index: 6, kind: input, shape index: {}]   ;;  %s682_s8 = inlined_call_operand.vmem [shape: f32[1,8], index: 8, kind: input, shape index: {}]   ;;  %s683_s10 = inlined_call_operand.vmem [shape: f32[1,8], index: 10, kind: input, shape index: {}]   ;;  %s684_s11 = inlined_call_operand.vmem [shape: f32[8,8], index: 11, kind: output, shape index: {}]  }
   0x1   :  { %492 = vmatprep.subr.mxu0 %v537_v0  ;;  %v39_v1 = vld [vmem:[%s673_s1] sm:$0xff]  ;;  %494 = vmatprep.mubr.msk.f32.mxu0 %vm538_vm1, %v537_v0  ;;  %v124_v3 = vld [vmem:[%s675_s3 + $0x18] sm:$0xff]  ;;  %v123_v4 = vld [vmem:[%s675_s3 + $0x10] sm:$0xff] }
   0x2   :  { %v38_v2 = vld [vmem:[%s674_s0] sm:$0xff]  ;;  %493 = vmatpush3.msra.mxu0 %v39_v1  ;;  %497 = vmatprep.subr.mxu1 %v537_v0  ;;  %v122_v5 = vld [vmem:[%s675_s3 + $0x8] sm:$0xff]  ;;  %v210_v7 = vld [vmem:[%s676_s5 + $0x18] sm:$0xff] }
   0x3   :  { %495 = vmatmul.mubr.msk.f32.vlgmr.msra.gmra.mxu0 %vm47_vm0, %v38_v2  ;;  %498 = vmatpush3.msra.mxu1 %v124_v3  ;;  %v121_v6 = vld [vmem:[%s675_s3] sm:$0xff]  ;;  %v209_v12 = vld [vmem:[%s676_s5 + $0x10] sm:$0xff]  ;;  %v208_v13 = vld [vmem:[%s676_s5 + $0x8] sm:$0xff] }
   0x4   :  { %499 = vmatprep.subr.mxu1 %v537_v0  ;;  %505 = vmatprep.mubr.msk.f32.mxu1 %vm538_vm1, %v537_v0  ;;  %v463_v8 = vld [vmem:[%s677_s2] ss:$0 sm:$0xff]  ;;  %v296_v15 = vld [vmem:[%s678_s7 + $0x18] sm:$0xff]  ;;  %v295_v21 = vld [vmem:[%s678_s7 + $0x10] sm:$0xff] }
   0x5   :  { %500 = vmatpush3.msra.mxu1 %v123_v4  ;;  %508 = vmatprep.subr.mxu0 %v537_v0  ;;  %v207_v14 = vld [vmem:[%s676_s5] sm:$0xff]  ;;  %v294_v22 = vld [vmem:[%s678_s7 + $0x8] sm:$0xff] }
   0x6   :  { %501 = vmatprep.subr.mxu1 %v537_v0  ;;  %516 = vmatprep.mubr.msk.f32.mxu0 %vm538_vm1, %v537_v0  ;;  %v465_v16 = vld [vmem:[%s679_s4] ss:$0 sm:$0xff] }
   0x7   :  { %502 = vmatpush3.msra.mxu1 %v122_v5  ;;  %509 = vmatpush3.msra.mxu0 %v210_v7  ;;  %v293_v23 = vld [vmem:[%s678_s7] sm:$0xff] }
   0x8   :  { %503 = vmatprep.subr.mxu1 %v537_v0  ;;  %510 = vmatprep.subr.mxu0 %v537_v0  ;;  %v377_v24 = vld [vmem:[%s680_s9] sm:$0xff] }
   0x9   :  { %504 = vmatpush3.msra.mxu1 %v121_v6  ;;  %511 = vmatpush3.msra.mxu0 %v209_v12  ;;  %v468_v26 = vld [vmem:[%s681_s6] ss:$0 sm:$0xff] }
   0xa   :  { %519 = vmatprep.subr.mxu1 %v537_v0  ;;  %512 = vmatprep.subr.mxu0 %v537_v0  ;;  %v469_v30 = vld [vmem:[%s682_s8] ss:$0 sm:$0xff] }
   0xb   :  { %513 = vmatpush3.msra.mxu0 %v208_v13  ;;  %v471_v34 = vld [vmem:[%s683_s10] ss:$0 sm:$0xff] }
   0xc   :  { %514 = vmatprep.subr.mxu0 %v537_v0 }
   0xd   :  { %515 = vmatpush3.msra.mxu0 %v207_v14 }
   0xe   :  { %530 = vmatprep.subr.mxu0 %v537_v0 }
  0xc3   :  { %v117_v9 = vpop.f32.mrf.mxu0 }
  0xc4   :  { %v118_v10 = vadd.f32 %v463_v8, %v117_v9 }
  0xc5   :  { %v496_v11 = vpop.f32.mrf.mxu0 }
  0xc6   :  { %506 = vmatmul.mubr.msk.f32.vlgmr.msra.gmra.mxu1 %vm132_vm2, %v118_v10 }
  0xc7   :  { %527 = vmatprep.mubr.msk.f32.mxu1 %vm538_vm1, %v537_v0  ;;  %520 = vmatpush3.msra.mxu1 %v296_v15 }
  0xc8   :  { %521 = vmatprep.subr.mxu1 %v537_v0 }
  0xc9   :  { %522 = vmatpush3.msra.mxu1 %v295_v21 }
  0xca   :  { %523 = vmatprep.subr.mxu1 %v537_v0 }
  0xcb   :  { %524 = vmatpush3.msra.mxu1 %v294_v22 }
  0xcc   :  { %525 = vmatprep.subr.mxu1 %v537_v0 }
  0xcd   :  { %526 = vmatpush3.msra.mxu1 %v293_v23 }
 0x186   :  { %v202_v17 = vpop.f32.mrf.mxu1 }
 0x187   :  { %v203_v18 = vadd.f32 %v465_v16, %v202_v17 }
 0x188   :  { %v507_v19 = vpop.f32.mrf.mxu1 }
 0x189   :  { %v206_v20 = vmax.f32 %v203_v18, 0.0 }
 0x18b   :  { %517 = vmatmul.mubr.msk.f32.vlgmr.msra.gmra.mxu0 %vm132_vm2, %v206_v20 }
 0x18c   :  { %532 = vmatprep.mubr.msk.f32.mxu0 %vm538_vm1, %v537_v0  ;;  %531 = vmatpush3.msra.mxu0 %v377_v24 }
 0x24b   :  { %v280_v25 = vpop.f32.mrf.mxu0 }
 0x24c   :  { %v284_v27 = vadd.f32 %v280_v25, %v118_v10 }
 0x24d   :  { %v518_v28 = vpop.f32.mrf.mxu0 }
 0x24e   :  { %v292_v29 = vadd.f32 %v468_v26, %v284_v27 }
 0x250   :  { %528 = vmatmul.mubr.msk.f32.vlgmr.msra.gmra.mxu1 %vm132_vm2, %v292_v29 }
 0x310   :  { %v373_v31 = vpop.f32.mrf.mxu1 }
 0x311   :  { %v374_v32 = vadd.f32 %v469_v30, %v373_v31 }
 0x312   :  { %v529_v33 = vpop.f32.mrf.mxu1 }
 0x313   :  { %533 = vmatmul.mubr.msk.f32.vlgmr.msra.gmra.mxu0 %vm47_vm0, %v374_v32 }
 0x3d3   :  { %v454_v35 = vpop.f32.mrf.mxu0 }
 0x3d4   :  { %v455_v36 = vadd.f32 %v471_v34, %v454_v35 }
 0x3d5   :  { %v534_v37 = vpop.f32.mrf.mxu0 }
 0x3d6   :  { %458 = vst.msk [vmem:[%s684_s11] sm:$0xff] %vm47_vm0, %v455_v36 }

// kernel: _lambda_.6
= control target key start
LH: loop header
LB: loop body
LE: loop exit
PB: predicated region body
PF: predicated region fallthrough
CT: control target
= control target key end

     0   :  { %vm91_vm0 = vcmask 64512   ;;  %v1642_v0 = vmov 0.0   ;;  %vm1643_vm1 = vmmov 0   ;;  %v1644_v4 = vmov 0   ;;  %s2789_s5 = inlined_call_operand.vmem [shape: f32[8,8], index: 5, kind: input, shape index: {}]   ;;  %s2790_s1 = inlined_call_operand.vmem [shape: f32[8,8], index: 1, kind: input, shape index: {}]   ;;  %s2791_s9 = inlined_call_operand.vmem [shape: f32[8,8], index: 9, kind: input, shape index: {}]   ;;  %s2792_s12 = inlined_call_operand.vmem [shape: f32[8,1], index: 12, kind: input, shape index: {}]   ;;  %s2793_s2 = inlined_call_operand.vmem [shape: f32[8,8], index: 2, kind: input, shape index: {}]   ;;  %s2794_s3 = inlined_call_operand.vmem [shape: f32[8,8], index: 3, kind: input, shape index: {}]   ;;  %s2795_s8 = inlined_call_operand.vmem [shape: f32[8,1], index: 8, kind: input, shape index: {}]   ;;  %s2796_s7 = inlined_call_operand.vmem [shape: f32[8,8], index: 7, kind: input, shape index: {}]   ;;  %s2797_s4 = inlined_call_operand.vmem [shape: f32[8,8], index: 4, kind: input, shape index: {}]   ;;  %s2798_s11 = inlined_call_operand.vmem [shape: f32[8,8], index: 11, kind: input, shape index: {}]   ;;  %s2799_s6 = inlined_call_operand.vmem [shape: f32[1,8], index: 6, kind: input, shape index: {}]   ;;  %s2800_s10 = inlined_call_operand.vmem [shape: f32[1,8], index: 10, kind: input, shape index: {}]   ;;  %s2801_s13 = inlined_call_operand.vmem [shape: f32[8,256], index: 13, kind: input, shape index: {}]   ;;  %s2802_s0 = inlined_call_operand.vmem [shape: f32[8,8], index: 0, kind: input, shape index: {}]   ;;  %s2803_s14 = inlined_call_operand.vmem [shape: f32[1,256], index: 14, kind: input, shape index: {}]   ;;  %s2804_s15 = inlined_call_operand.vmem [shape: f32[256,256], index: 15, kind: input, shape index: {}]   ;;  %s2805_s17 = inlined_call_operand.vmem [shape: f32[256,256], index: 17, kind: input, shape index: {}]   ;;  %s2806_s16 = inlined_call_operand.vmem [shape: f32[1,256], index: 16, kind: input, shape index: {}]   ;;  %s2807_s19 = inlined_call_operand.vmem [shape: f32[256,256], index: 19, kind: input, shape index: {}]   ;;  %s2808_s18 = inlined_call_operand.vmem [shape: f32[1,256], index: 18, kind: input, shape index: {}]   ;;  %s2809_s21 = inlined_call_operand.vmem [shape: f32[256,256], index: 21, kind: input, shape index: {}]   ;;  %s2810_s23 = inlined_call_operand.vmem [shape: f32[256,8], index: 23, kind: input, shape index: {}]   ;;  %s2811_s20 = inlined_call_operand.vmem [shape: f32[1,256], index: 20, kind: input, shape index: {}]   ;;  %s2812_s24 = inlined_call_operand.<no memory space> [shape: f32[1,1], index: 24, kind: input, shape index: {}]   ;;  %s2813_s22 = inlined_call_operand.vmem [shape: f32[1,256], index: 22, kind: input, shape index: {}]   ;;  %s2814_s25 = inlined_call_operand.vmem [shape: f32[8,8], index: 25, kind: output, shape index: {}]  }
   0x1   :  { %2815 = sst [smem:[#allocation3_spill]] %s2789_s5  ;;  %1597 = vmatprep.subr.mxu0 %v1642_v0  ;;  %1599 = vmatprep.mubr.msk.f32.mxu0 %vm1643_vm1, %v1642_v0  ;;  %v1538_v17 = vld [vmem:[%s2799_s6] ss:$0 sm:$0xff]  ;;  %v589_v48 = vld [vmem:[%s2801_s13 + $0x8] sm:$0xff]  ;;  %v592_v54 = vlaneseq }
   0x2   :  { %2816 = sst [smem:[#allocation4_spill]] %s2790_s1  ;;  %1630 = vset.pattern.permute.xlu0 %v1644_v4  ;;  %743 = vmatprep.mubr.f32.mxu1 %v1642_v0  ;;  %v1540_v22 = vld [vmem:[%s2800_s10] ss:$0 sm:$0xff] }
   0x3   :  { %2817 = sst [smem:[#allocation5_spill]] %s2791_s9  ;;  %1631 = vset.pattern.permute.xlu1 %v1644_v4  ;;  %v588_v49 = vld [vmem:[%s2801_s13] sm:$0xff]  ;;  %v593_v55 = vshrl.u32 %v592_v54, 7  ;;  %v799_v54 = vld [vmem:[%s2804_s15 + $0x178] sm:$0xff] }
   0x4   :  { %2818 = sst [smem:[#allocation6_spill]] %s2792_s12  ;;  %v587_v50 = vld [vmem:[%s2802_s0] sm:$0xff] }
   0x5   :  { %2819 = sst [smem:[#allocation7_spill]] %s2793_s2  ;;  %v1855_v56 = vsub.s32 0, %v593_v55  ;;  %v590_v57 = vld [vmem:[%s2803_s14] sm:$0x3]  ;;  %v1860_v58 = vsub.s32 1, %v593_v55  ;;  %v798_v55 = vld [vmem:[%s2804_s15 + $0x170] sm:$0xff] }
   0x6   :  { %2820 = sst [smem:[#allocation8_spill]] %s2794_s3 }
   0x7   :  { %2821 = sst [smem:[#allocation9_spill]] %s2795_s8  ;;  %v595_v59 = vrot.slane %v590_v57, %v1855_v56  ;;  %v599_v60 = vrot.slane %v590_v57, %v1860_v58  ;;  %v797_v57 = vld [vmem:[%s2804_s15 + $0x168] sm:$0xff] }
   0x8   :  { %2822 = sst [smem:[#allocation10_spill]] %s2796_s7 }
   0x9   :  { %2823 = sst [smem:[#allocation11_spill]] %s2797_s4 }
   0xa   :  { %2824 = sst [smem:[#allocation12_spill]] %s2798_s11 }
   0xb   :  { %s2825_s9 = sld [smem:[#allocation3_spill]] }
   0xc   :  { %s2826_s12 = sld [smem:[#allocation4_spill]] }
   0xd   :  { %s2827_s4 = sld [smem:[#allocation5_spill]] }
   0xe   :  { %s2828_s28 = sld [smem:[#allocation6_spill]] }
   0xf   :  { %s2829_s5 = sld [smem:[#allocation7_spill]] }
  0x11   :  { %v83_v1 = vld [vmem:[%s2825_s9] sm:$0xff]  ;;  %s2830_s9 = sld [smem:[#allocation8_spill]] }
  0x12   :  { %v82_v2 = vld [vmem:[%s2826_s12] sm:$0xff]  ;;  %1598 = vmatpush3.msra.mxu0 %v83_v1  ;;  %s2831_s12 = sld [smem:[#allocation9_spill]] }
  0x13   :  { %v168_v3 = vld [vmem:[%s2827_s4] sm:$0xff]  ;;  %1600 = vmatmul.mubr.msk.f32.vlgmr.msra.gmra.mxu0 %vm91_vm0, %v82_v2  ;;  %1602 = vmatprep.subr.mxu0 %v1642_v0  ;;  %s2832_s4 = sld [smem:[#allocation10_spill]] }
  0x14   :  { %v336_v5 = vld [vmem:[%s2828_s28] sm:$0xff]  ;;  %1603 = vmatpush3.msra.mxu0 %v168_v3  ;;  %1604 = vmatprep.mubr.msk.f32.mxu0 %vm1643_vm1, %v1642_v0  ;;  %s2833_s28 = sld [smem:[#allocation11_spill]] }
  0x15   :  { %v167_v6 = vld [vmem:[%s2829_s5] sm:$0xff]  ;;  %1607 = vmatprep.subr.mxu0 %v1642_v0  ;;  %339 = vperm.xlu0 %1630, %v336_v5   ;;  %s2834_s5 = sld [smem:[#allocation12_spill]]  ;;  %v783_v5 = vld [vmem:[%s2804_s15 + $0xf8] sm:$0xff] }
  0x17   :  { %v252_v7 = vld [vmem:[%s2830_s9] sm:$0xff]  ;;  %1605 = vmatmul.mubr.msk.f32.vlgmr.msra.gmra.mxu0 %vm91_vm0, %v167_v6  ;;  %v782_v6 = vld [vmem:[%s2804_s15 + $0xf0] sm:$0xff] }
  0x18   :  { %v253_v8 = vld [vmem:[%s2831_s12] sm:$0xff]  ;;  %1608 = vmatpush3.msra.mxu0 %v252_v7  ;;  %1609 = vmatprep.mubr.msk.f32.mxu0 %vm1643_vm1, %v1642_v0  ;;  %v781_v7 = vld [vmem:[%s2804_s15 + $0xe8] sm:$0xff] }
  0x19   :  { %v251_v9 = vld [vmem:[%s2832_s4] sm:$0xff]  ;;  %1612 = vmatprep.subr.mxu0 %v1642_v0  ;;  %256 = vperm.xlu0 %1630, %v253_v8  }
  0x1a   :  { %v335_v10 = vld [vmem:[%s2833_s28] sm:$0xff] }
  0x1b   :  { %1610 = vmatmul.mubr.msk.f32.vlgmr.msra.gmra.mxu0 %vm91_vm0, %v251_v9  ;;  %v334_v11 = vld [vmem:[%s2834_s5] sm:$0xff]  ;;  %v779_v9 = vld [vmem:[%s2804_s15 + $0xd8] sm:$0xff] }
  0x1c   :  { %1613 = vmatpush3.msra.mxu0 %v335_v10  ;;  %1614 = vmatprep.mubr.msk.f32.mxu0 %vm1643_vm1, %v1642_v0  ;;  %v780_v8 = vld [vmem:[%s2804_s15 + $0xe0] sm:$0xff]  ;;  %v778_v10 = vld [vmem:[%s2804_s15 + $0xd0] sm:$0xff] }
  0x1d   :  { %1617 = vmatprep.subr.mxu0 %v1642_v0 }
  0x1f   :  { %1615 = vmatmul.mubr.msk.f32.vlgmr.msra.gmra.mxu0 %vm91_vm0, %v334_v11  ;;  %v777_v11 = vld [vmem:[%s2804_s15 + $0xc8] sm:$0xff] }
  0x20   :  { %1619 = vmatprep.mubr.msk.f32.mxu0 %vm1643_vm1, %v1642_v0 }
  0x90   :  { %v340_v14 = vpop.permute.xlu0 %339 }
  0x94   :  { %v257_v18 = vpop.permute.xlu0 %256 }
  0xd3   :  { %v161_v12 = vpop.f32.mrf.mxu0 }
  0xd4   :  { %v162_v20 = vadd.f32 %v1538_v17, %v161_v12  ;;  %v776_v12 = vld [vmem:[%s2804_s15 + $0xc0] sm:$0xff]  ;;  %v771_v17 = vld [vmem:[%s2804_s15 + $0x98] sm:$0xff] }
  0xd5   :  { %v1601_v13 = vpop.f32.mrf.mxu0 }
  0xd6   :  { %v165_v26 = vmul.f32 3.0, %v162_v20  ;;  %v775_v13 = vld [vmem:[%s2804_s15 + $0xb8] sm:$0xff]  ;;  %v768_v20 = vld [vmem:[%s2804_s15 + $0x80] sm:$0xff] }
  0xd7   :  { %v245_v15 = vpop.f32.mrf.mxu0 }
  0xd8   :  { %v246_v27 = vadd.f32 %v1540_v22, %v245_v15  ;;  %v773_v15 = vld [vmem:[%s2804_s15 + $0xa8] sm:$0xff]  ;;  %v766_v22 = vld [vmem:[%s2804_s15 + $0x70] sm:$0xff] }
  0xd9   :  { %v1606_v16 = vpop.f32.mrf.mxu0 }
  0xda   :  { %v249_v31 = vmul.f32 3.0, %v246_v27  ;;  %v772_v16 = vld [vmem:[%s2804_s15 + $0xa0] sm:$0xff]  ;;  %v761_v27 = vld [vmem:[%s2804_s15 + $0x48] sm:$0xff] }
  0xdb   :  { %v328_v19 = vpop.f32.mrf.mxu0 }
  0xdc   :  { %v329_v23 = vadd.f32 %v328_v19, %v257_v18  ;;  %v770_v18 = vld [vmem:[%s2804_s15 + $0x90] sm:$0xff]  ;;  %v769_v19 = vld [vmem:[%s2804_s15 + $0x88] sm:$0xff] }
  0xdd   :  { %v1611_v21 = vpop.f32.mrf.mxu0 }
  0xde   :  { %v332_v29 = vmul.f32 3.0, %v329_v23  ;;  %v767_v21 = vld [vmem:[%s2804_s15 + $0x78] sm:$0xff]  ;;  %v765_v23 = vld [vmem:[%s2804_s15 + $0x68] sm:$0xff] }
  0xdf   :  { %v411_v24 = vpop.f32.mrf.mxu0 }
  0xe0   :  { %v412_v25 = vadd.f32 %v411_v24, %v340_v14  ;;  %v774_v14 = vld [vmem:[%s2804_s15 + $0xb0] sm:$0xff]  ;;  %v764_v24 = vld [vmem:[%s2804_s15 + $0x60] sm:$0xff] }
  0xe1   :  { %v1616_v28 = vpop.f32.mrf.mxu0 }
  0xe2   :  { %v415_v30 = vmul.f32 3.0, %v412_v25  ;;  %v763_v25 = vld [vmem:[%s2804_s15 + $0x58] sm:$0xff]  ;;  %v760_v28 = vld [vmem:[%s2804_s15 + $0x40] sm:$0xff] }
  0xe4   :  { %1632 = vtanh.f32 %v415_v30  ;;  %v758_v30 = vld [vmem:[%s2804_s15 + $0x30] sm:$0xff] }
  0xe5   :  { %1634 = vtanh.f32 %v165_v26  ;;  %v762_v26 = vld [vmem:[%s2804_s15 + $0x50] sm:$0xff] }
  0xe6   :  { %1636 = vtanh.f32 %v332_v29  ;;  %v759_v29 = vld [vmem:[%s2804_s15 + $0x38] sm:$0xff] }
  0xe7   :  { %1638 = vtanh.f32 %v249_v31  ;;  %v757_v31 = vld [vmem:[%s2804_s15 + $0x28] sm:$0xff] }
  0xf1   :  { %v1633_v32 = vpop.eup %1632 }
  0xf2   :  { %v1635_v33 = vpop.eup %1634  ;;  %1618 = vmatpush3.msra.mxu0 %v1633_v32  ;;  %v756_v32 = vld [vmem:[%s2804_s15 + $0x20] sm:$0xff] }
  0xf3   :  { %v1637_v34 = vpop.eup %1636  ;;  %1620 = vmatmul.mubr.msk.f32.vlgmr.msra.gmra.mxu0 %vm91_vm0, %v1635_v33  ;;  %1622 = vmatprep.subr.mxu0 %v1642_v0  ;;  %v755_v33 = vld [vmem:[%s2804_s15 + $0x18] sm:$0xff] }
  0xf4   :  { %1623 = vmatpush3.msra.mxu0 %v1637_v34  ;;  %1624 = vmatprep.mubr.msk.f32.mxu0 %vm1643_vm1, %v1642_v0  ;;  %v1639_v35 = vpop.eup %1638  ;;  %v754_v34 = vld [vmem:[%s2804_s15 + $0x10] sm:$0xff] }
  0xf5   :  { %635 = vmatprep.subr.mxu0 %v589_v48  ;;  %v805_v48 = vld [vmem:[%s2804_s15 + $0x1a8] sm:$0xff] }
  0xf7   :  { %1625 = vmatmul.mubr.msk.f32.vlgmr.msra.gmra.mxu0 %vm91_vm0, %v1639_v35  ;;  %v753_v35 = vld [vmem:[%s2804_s15 + $0x8] sm:$0xff] }
  0xf8   :  { %669 = vmatprep.mubr.f32.mxu0 %v1642_v0  ;;  %636 = vmatpush1.msra.mxu0 %v588_v49  ;;  %v804_v49 = vld [vmem:[%s2804_s15 + $0x1a0] sm:$0xff] }
  0xf9   :  { %828 = vmatprep.subr.mxu0 %v783_v5 }
  0xfb   :  { %1546 = vmatmul.mubr.msk.f32.vlgmr.msra.gmra.mxu0 %vm91_vm0, %v587_v50  ;;  %v803_v50 = vld [vmem:[%s2804_s15 + $0x198] sm:$0xff] }
  0xfc   :  { %829 = vmatpush1.msra.mxu0 %v782_v6 }
  0xfd   :  { %830 = vmatprep.subr.mxu0 %v781_v7  ;;  %v789_v7 = vld [vmem:[%s2804_s15 + $0x128] sm:$0xff] }
  0xfe   :  { %831 = vmatpush1.msra.mxu0 %v780_v8  ;;  %v788_v8 = vld [vmem:[%s2804_s15 + $0x120] sm:$0xff] }
  0xff   :  { %832 = vmatprep.subr.mxu0 %v779_v9  ;;  %v787_v9 = vld [vmem:[%s2804_s15 + $0x118] sm:$0xff] }
 0x100   :  { %833 = vmatpush1.msra.mxu0 %v778_v10  ;;  %v785_v10 = vld [vmem:[%s2804_s15 + $0x108] sm:$0xff] }
 0x101   :  { %834 = vmatprep.subr.mxu0 %v777_v11  ;;  %v784_v11 = vld [vmem:[%s2804_s15 + $0x100] sm:$0xff] }
 0x102   :  { %835 = vmatpush1.msra.mxu0 %v776_v12  ;;  %v932_v12 = vld [vmem:[%s2805_s17 + $0xf8] sm:$0xff] }
 0x103   :  { %836 = vmatprep.subr.mxu0 %v775_v13  ;;  %v931_v13 = vld [vmem:[%s2805_s17 + $0xf0] sm:$0xff] }
 0x104   :  { %837 = vmatpush1.msra.mxu0 %v774_v14  ;;  %v930_v14 = vld [vmem:[%s2805_s17 + $0xe8] sm:$0xff] }
 0x105   :  { %838 = vmatprep.subr.mxu0 %v773_v15  ;;  %v929_v15 = vld [vmem:[%s2805_s17 + $0xe0] sm:$0xff] }
 0x106   :  { %839 = vmatpush1.msra.mxu0 %v772_v16  ;;  %v928_v16 = vld [vmem:[%s2805_s17 + $0xd8] sm:$0xff] }
 0x107   :  { %840 = vmatprep.subr.mxu0 %v771_v17  ;;  %v927_v17 = vld [vmem:[%s2805_s17 + $0xd0] sm:$0xff] }
 0x108   :  { %841 = vmatpush1.msra.mxu0 %v770_v18  ;;  %v926_v18 = vld [vmem:[%s2805_s17 + $0xc8] sm:$0xff] }
 0x109   :  { %842 = vmatprep.subr.mxu0 %v769_v19  ;;  %v925_v19 = vld [vmem:[%s2805_s17 + $0xc0] sm:$0xff] }
 0x10a   :  { %843 = vmatpush1.msra.mxu0 %v768_v20  ;;  %v924_v20 = vld [vmem:[%s2805_s17 + $0xb8] sm:$0xff] }
 0x10b   :  { %844 = vmatprep.subr.mxu0 %v767_v21  ;;  %v923_v21 = vld [vmem:[%s2805_s17 + $0xb0] sm:$0xff] }
 0x10c   :  { %845 = vmatpush1.msra.mxu0 %v766_v22  ;;  %v922_v22 = vld [vmem:[%s2805_s17 + $0xa8] sm:$0xff] }
 0x10d   :  { %846 = vmatprep.subr.mxu0 %v765_v23  ;;  %v921_v23 = vld [vmem:[%s2805_s17 + $0xa0] sm:$0xff] }
 0x10e   :  { %847 = vmatpush1.msra.mxu0 %v764_v24  ;;  %v920_v24 = vld [vmem:[%s2805_s17 + $0x98] sm:$0xff] }
 0x10f   :  { %848 = vmatprep.subr.mxu0 %v763_v25  ;;  %v919_v25 = vld [vmem:[%s2805_s17 + $0x90] sm:$0xff] }
 0x110   :  { %849 = vmatpush1.msra.mxu0 %v762_v26  ;;  %v918_v26 = vld [vmem:[%s2805_s17 + $0x88] sm:$0xff] }
 0x111   :  { %850 = vmatprep.subr.mxu0 %v761_v27  ;;  %v917_v27 = vld [vmem:[%s2805_s17 + $0x80] sm:$0xff] }
 0x112   :  { %851 = vmatpush1.msra.mxu0 %v760_v28  ;;  %v916_v28 = vld [vmem:[%s2805_s17 + $0x78] sm:$0xff] }
 0x113   :  { %852 = vmatprep.subr.mxu0 %v759_v29  ;;  %v915_v29 = vld [vmem:[%s2805_s17 + $0x70] sm:$0xff] }
 0x114   :  { %853 = vmatpush1.msra.mxu0 %v758_v30  ;;  %v914_v30 = vld [vmem:[%s2805_s17 + $0x68] sm:$0xff] }
 0x115   :  { %854 = vmatprep.subr.mxu0 %v757_v31  ;;  %v913_v31 = vld [vmem:[%s2805_s17 + $0x60] sm:$0xff] }
 0x116   :  { %855 = vmatpush1.msra.mxu0 %v756_v32  ;;  %v912_v32 = vld [vmem:[%s2805_s17 + $0x58] sm:$0xff] }
 0x117   :  { %856 = vmatprep.subr.mxu0 %v755_v33  ;;  %v911_v33 = vld [vmem:[%s2805_s17 + $0x50] sm:$0xff] }
 0x118   :  { %857 = vmatpush1.msra.mxu0 %v754_v34  ;;  %v910_v34 = vld [vmem:[%s2805_s17 + $0x48] sm:$0xff] }
 0x119   :  { %858 = vmatprep.subr.mxu0 %v753_v35  ;;  %v909_v35 = vld [vmem:[%s2805_s17 + $0x40] sm:$0xff] }
 0x1b3   :  { %v486_v36 = vpop.f32.mrf.mxu0 }
 0x1b5   :  { %v1621_v37 = vpop.f32.mrf.mxu0 }
 0x1b6   :  { %v815_v37 = vld [vmem:[%s2804_s15 + $0x1f8] sm:$0xff] }
 0x1b7   :  { %v559_v38 = vpop.f32.mrf.mxu0 }
 0x1b8   :  { %v563_v39 = vsub.f32 %v486_v36, %v559_v38  ;;  %v752_v36 = vld [vmem:[%s2804_s15] sm:$0xff]  ;;  %v814_v38 = vld [vmem:[%s2804_s15 + $0x1f0] sm:$0xff] }
 0x1b9   :  { %v1626_v40 = vpop.f32.mrf.mxu0  ;;  %859 = vmatpush1.msra.mxu0 %v752_v36  ;;  %v908_v36 = vld [vmem:[%s2805_s17 + $0x38] sm:$0xff] }
 0x1ba   :  { %v564_v41 = vmul.f32 3.0, %v563_v39  ;;  %v813_v39 = vld [vmem:[%s2804_s15 + $0x1e8] sm:$0xff]  ;;  %860 = vmatprep.subr.mxu0 %v815_v37  ;;  %v812_v40 = vld [vmem:[%s2804_s15 + $0x1e0] sm:$0xff]  ;;  %v907_v37 = vld [vmem:[%s2805_s17 + $0x30] sm:$0xff] }
 0x1bb   :  { %v671_v61 = vpop.f32.mrf.mxu0  ;;  %861 = vmatpush2.msra.mxu0 %v814_v38  ;;  %v906_v38 = vld [vmem:[%s2805_s17 + $0x28] sm:$0xff] }
 0x1bc   :  { %1640 = vtanh.f32 %v564_v41  ;;  %v1864_v62 = vadd.f32 %v671_v61, %v595_v59  ;;  %v811_v41 = vld [vmem:[%s2804_s15 + $0x1d8] sm:$0xff]  ;;  %862 = vmatprep.subr.mxu0 %v813_v39  ;;  %v796_v59 = vld [vmem:[%s2804_s15 + $0x160] sm:$0xff]  ;;  %v794_v61 = vld [vmem:[%s2804_s15 + $0x150] sm:$0xff] }
 0x1bd   :  { %v673_v63 = vpop.f32.mrf.mxu0  ;;  %863 = vmatpush2.msra.mxu0 %v812_v40  ;;  %v905_v39 = vld [vmem:[%s2805_s17 + $0x20] sm:$0xff]  ;;  %v904_v40 = vld [vmem:[%s2805_s17 + $0x18] sm:$0xff] }
 0x1be   :  { %v1866_v1 = vadd.f32 %v673_v63, %v599_v60  ;;  %864 = vmatprep.subr.mxu0 %v811_v41  ;;  %v795_v60 = vld [vmem:[%s2804_s15 + $0x158] sm:$0xff]  ;;  %v793_v63 = vld [vmem:[%s2804_s15 + $0x148] sm:$0xff]  ;;  %v903_v41 = vld [vmem:[%s2805_s17 + $0x10] sm:$0xff] }
 0x1c0   :  { %709 = vmatprep.subr.mxu1 %v1866_v1 }
 0x1c1   :  { %710 = vmatpush1.msra.mxu1 %v1864_v62 }
 0x1c2   :  { %977 = vmatprep.subr.mxu1 %v932_v12 }
 0x1c9   :  { %v1641_v42 = vpop.eup %1640 }
 0x1ca   :  { %v1837_v43 = vmax.f32 %v1641_v42, 0.0  ;;  %v810_v42 = vld [vmem:[%s2804_s15 + $0x1d0] sm:$0xff] }
 0x1cb   :  { %865 = vmatpush2.msra.mxu0 %v810_v42  ;;  %v902_v42 = vld [vmem:[%s2805_s17 + $0x8] sm:$0xff] }
 0x1cc   :  { %v567_v44 = vsel %vm91_vm0, %v1837_v43, -inf }
 0x1cd   :  { %568 = vmax.xlane.f32.xlu1 %v567_v44  ;;  %v809_v44 = vld [vmem:[%s2804_s15 + $0x1c8] sm:$0xff] }
 0x1ce   :  { %866 = vmatprep.subr.mxu0 %v809_v44  ;;  %v901_v44 = vld [vmem:[%s2805_s17] sm:$0xff] }
 0x256   :  { %v569_v45 = vpop.xlane.xlu1 %568 }
 0x257   :  { %vm570_vm2 = vcmp.ge.f32.partialorder %v1837_v43, %v569_v45  ;;  %v808_v45 = vld [vmem:[%s2804_s15 + $0x1c0] sm:$0xff] }
 0x258   :  { %v571_v46 = vsel %vm570_vm2, -1e+30, %v1837_v43  ;;  %867 = vmatpush2.msra.mxu0 %v808_v45  ;;  %v964_v45 = vld [vmem:[%s2805_s17 + $0x1f8] sm:$0xff] }
 0x259   :  { %v572_v47 = vsel %vm91_vm0, %v571_v46, -inf }
 0x25a   :  { %573 = vmax.xlane.f32.xlu1 %v572_v47  ;;  %v806_v47 = vld [vmem:[%s2804_s15 + $0x1b0] sm:$0xff] }
 0x2e3   :  { %v574_v51 = vpop.xlane.xlu1 %573 }
 0x2e4   :  { %vm575_vm3 = vcmp.ge.f32.partialorder %v571_v46, %v574_v51  ;;  %v802_v51 = vld [vmem:[%s2804_s15 + $0x190] sm:$0xff] }
 0x2e5   :  { %v576_v52 = vsel %vm575_vm3, -1e+30, %v571_v46  ;;  %v807_v46 = vld [vmem:[%s2804_s15 + $0x1b8] sm:$0xff] }
 0x2e6   :  { %v577_v53 = vsel %vm91_vm0, %v576_v52, -inf  ;;  %868 = vmatprep.subr.mxu0 %v807_v46  ;;  %v963_v46 = vld [vmem:[%s2805_s17 + $0x1f0] sm:$0xff] }
 0x2e7   :  { %578 = vmax.xlane.f32.xlu0 %v577_v53  ;;  %869 = vmatpush2.msra.mxu0 %v806_v47  ;;  %v800_v53 = vld [vmem:[%s2804_s15 + $0x180] sm:$0xff]  ;;  %v962_v47 = vld [vmem:[%s2805_s17 + $0x1e8] sm:$0xff] }
 0x2e8   :  { %870 = vmatprep.subr.mxu0 %v805_v48  ;;  %v961_v48 = vld [vmem:[%s2805_s17 + $0x1e0] sm:$0xff] }
 0x2e9   :  { %871 = vmatpush2.msra.mxu0 %v804_v49  ;;  %v960_v49 = vld [vmem:[%s2805_s17 + $0x1d8] sm:$0xff] }
 0x2ea   :  { %872 = vmatprep.subr.mxu0 %v803_v50  ;;  %v959_v50 = vld [vmem:[%s2805_s17 + $0x1d0] sm:$0xff] }
 0x2eb   :  { %873 = vmatpush2.msra.mxu0 %v802_v51  ;;  %v958_v51 = vld [vmem:[%s2805_s17 + $0x1c8] sm:$0xff] }
 0x370   :  { %v579_v2 = vpop.xlane.xlu0 %578 }
 0x371   :  { %vm580_vm4 = vcmp.ge.f32.partialorder %v576_v52, %v579_v2  ;;  %v792_v2 = vld [vmem:[%s2804_s15 + $0x140] sm:$0xff] }
 0x372   :  { %v581_v3 = vsel %vm580_vm4, -1e+30, %v576_v52  ;;  %v801_v52 = vld [vmem:[%s2804_s15 + $0x188] sm:$0xff] }
 0x373   :  { %v582_v4 = vsel %vm91_vm0, %v581_v3, -inf  ;;  %874 = vmatprep.subr.mxu0 %v801_v52  ;;  %v791_v3 = vld [vmem:[%s2804_s15 + $0x138] sm:$0xff]  ;;  %v957_v52 = vld [vmem:[%s2805_s17 + $0x1c0] sm:$0xff] }
 0x374   :  { %583 = vmax.xlane.f32.xlu1 %v582_v4  ;;  %875 = vmatpush2.msra.mxu0 %v800_v53  ;;  %v790_v4 = vld [vmem:[%s2804_s15 + $0x130] sm:$0xff]  ;;  %v956_v53 = vld [vmem:[%s2805_s17 + $0x1b8] sm:$0xff] }
 0x375   :  { %876 = vmatprep.subr.mxu0 %v799_v54  ;;  %v955_v54 = vld [vmem:[%s2805_s17 + $0x1b0] sm:$0xff] }
 0x376   :  { %877 = vmatpush2.msra.mxu0 %v798_v55  ;;  %v954_v55 = vld [vmem:[%s2805_s17 + $0x1a8] sm:$0xff] }
 0x377   :  { %878 = vmatprep.subr.mxu0 %v797_v57  ;;  %v953_v57 = vld [vmem:[%s2805_s17 + $0x1a0] sm:$0xff] }
 0x378   :  { %879 = vmatpush2.msra.mxu0 %v796_v59  ;;  %v952_v59 = vld [vmem:[%s2805_s17 + $0x198] sm:$0xff] }
 0x379   :  { %880 = vmatprep.subr.mxu0 %v795_v60  ;;  %v951_v60 = vld [vmem:[%s2805_s17 + $0x190] sm:$0xff] }
 0x37a   :  { %881 = vmatpush2.msra.mxu0 %v794_v61  ;;  %v950_v61 = vld [vmem:[%s2805_s17 + $0x188] sm:$0xff] }
 0x37b   :  { %882 = vmatprep.subr.mxu0 %v793_v63  ;;  %v949_v63 = vld [vmem:[%s2805_s17 + $0x180] sm:$0xff] }
 0x37c   :  { %883 = vmatpush2.msra.mxu0 %v792_v2  ;;  %v948_v2 = vld [vmem:[%s2805_s17 + $0x178] sm:$0xff] }
 0x37d   :  { %884 = vmatprep.subr.mxu0 %v791_v3  ;;  %v947_v3 = vld [vmem:[%s2805_s17 + $0x170] sm:$0xff] }
 0x37e   :  { %885 = vmatpush2.msra.mxu0 %v790_v4  ;;  %v946_v4 = vld [vmem:[%s2805_s17 + $0x168] sm:$0xff] }
 0x37f   :  { %886 = vmatprep.subr.mxu0 %v789_v7  ;;  %v944_v7 = vld [vmem:[%s2805_s17 + $0x158] sm:$0xff] }
 0x380   :  { %887 = vmatpush2.msra.mxu0 %v788_v8  ;;  %v943_v8 = vld [vmem:[%s2805_s17 + $0x150] sm:$0xff] }
 0x381   :  { %888 = vmatprep.subr.mxu0 %v787_v9  ;;  %v942_v9 = vld [vmem:[%s2805_s17 + $0x148] sm:$0xff] }
 0x3fd   :  { %v584_v5 = vpop.xlane.xlu1 %583 }
 0x3fe   :  { %vm585_vm5 = vcmp.ge.f32.partialorder %v1837_v43, %v584_v5  ;;  %v945_v5 = vld [vmem:[%s2805_s17 + $0x160] sm:$0xff] }
 0x3ff   :  { %v2047_v6 = vsel %vm585_vm5, %v1837_v43, 0.0  ;;  %v786_v43 = vld [vmem:[%s2804_s15 + $0x110] sm:$0xff] }
 0x400   :  { %1547 = vmatmul.mubr.msk.f32.vlgmr.msra.gmra.mxu1 %vm91_vm0, %v2047_v6  ;;  %889 = vmatpush2.msra.mxu0 %v786_v43  ;;  %v941_v43 = vld [vmem:[%s2805_s17 + $0x140] sm:$0xff] }
 0x401   :  { %890 = vmatprep.subr.mxu0 %v785_v10  ;;  %978 = vmatpush1.msra.mxu1 %v931_v13 }
 0x402   :  { %891 = vmatpush2.msra.mxu0 %v784_v11  ;;  %979 = vmatprep.subr.mxu1 %v930_v14  ;;  %v940_v14 = vld [vmem:[%s2805_s17 + $0x138] sm:$0xff] }
 0x403   :  { %980 = vmatpush1.msra.mxu1 %v929_v15  ;;  %v939_v15 = vld [vmem:[%s2805_s17 + $0x130] sm:$0xff] }
 0x404   :  { %981 = vmatprep.subr.mxu1 %v928_v16  ;;  %v938_v16 = vld [vmem:[%s2805_s17 + $0x128] sm:$0xff] }
 0x405   :  { %982 = vmatpush1.msra.mxu1 %v927_v17  ;;  %v937_v17 = vld [vmem:[%s2805_s17 + $0x120] sm:$0xff] }
 0x406   :  { %983 = vmatprep.subr.mxu1 %v926_v18  ;;  %v935_v18 = vld [vmem:[%s2805_s17 + $0x110] sm:$0xff] }
 0x407   :  { %984 = vmatpush1.msra.mxu1 %v925_v19  ;;  %v934_v19 = vld [vmem:[%s2805_s17 + $0x108] sm:$0xff] }
 0x408   :  { %985 = vmatprep.subr.mxu1 %v924_v20  ;;  %v933_v20 = vld [vmem:[%s2805_s17 + $0x100] sm:$0xff] }
 0x409   :  { %986 = vmatpush1.msra.mxu1 %v923_v21  ;;  %v816_v21 = vld [vmem:[%s2806_s16] sm:$0x3] }
 0x40a   :  { %987 = vmatprep.subr.mxu1 %v922_v22  ;;  %v821_v22 = vrot.slane %v816_v21, %v1855_v56 }
 0x40b   :  { %988 = vmatpush1.msra.mxu1 %v921_v23  ;;  %v825_v23 = vrot.slane %v816_v21, %v1860_v58  ;;  %v1168_v21 = vld [vmem:[%s2807_s19 + $0x168] sm:$0xff] }
 0x40c   :  { %989 = vmatprep.subr.mxu1 %v920_v24 }
 0x40d   :  { %990 = vmatpush1.msra.mxu1 %v919_v25 }
 0x40e   :  { %991 = vmatprep.subr.mxu1 %v918_v26 }
 0x40f   :  { %992 = vmatpush1.msra.mxu1 %v917_v27 }
 0x410   :  { %993 = vmatprep.subr.mxu1 %v916_v28 }
 0x411   :  { %994 = vmatpush1.msra.mxu1 %v915_v29 }
 0x412   :  { %995 = vmatprep.subr.mxu1 %v914_v30  ;;  %v1154_v30 = vld [vmem:[%s2807_s19 + $0xf8] sm:$0xff] }
 0x413   :  { %996 = vmatpush1.msra.mxu1 %v913_v31  ;;  %v1153_v31 = vld [vmem:[%s2807_s19 + $0xf0] sm:$0xff] }
 0x414   :  { %997 = vmatprep.subr.mxu1 %v912_v32  ;;  %v1152_v32 = vld [vmem:[%s2807_s19 + $0xe8] sm:$0xff] }
 0x415   :  { %998 = vmatpush1.msra.mxu1 %v911_v33  ;;  %v1151_v33 = vld [vmem:[%s2807_s19 + $0xe0] sm:$0xff] }
 0x416   :  { %999 = vmatprep.subr.mxu1 %v910_v34  ;;  %v1150_v34 = vld [vmem:[%s2807_s19 + $0xd8] sm:$0xff] }
 0x417   :  { %1000 = vmatpush1.msra.mxu1 %v909_v35  ;;  %v1149_v35 = vld [vmem:[%s2807_s19 + $0xd0] sm:$0xff] }
 0x418   :  { %1001 = vmatprep.subr.mxu1 %v908_v36  ;;  %v1148_v36 = vld [vmem:[%s2807_s19 + $0xc8] sm:$0xff] }
 0x419   :  { %1002 = vmatpush1.msra.mxu1 %v907_v37  ;;  %v1147_v37 = vld [vmem:[%s2807_s19 + $0xc0] sm:$0xff] }
 0x41a   :  { %1003 = vmatprep.subr.mxu1 %v906_v38  ;;  %v1146_v38 = vld [vmem:[%s2807_s19 + $0xb8] sm:$0xff] }
 0x41b   :  { %1004 = vmatpush1.msra.mxu1 %v905_v39  ;;  %v1145_v39 = vld [vmem:[%s2807_s19 + $0xb0] sm:$0xff] }
 0x41c   :  { %1005 = vmatprep.subr.mxu1 %v904_v40  ;;  %v1144_v40 = vld [vmem:[%s2807_s19 + $0xa8] sm:$0xff] }
 0x41d   :  { %1006 = vmatpush1.msra.mxu1 %v903_v41  ;;  %v1143_v41 = vld [vmem:[%s2807_s19 + $0xa0] sm:$0xff] }
 0x41e   :  { %1007 = vmatprep.subr.mxu1 %v902_v42  ;;  %v1142_v42 = vld [vmem:[%s2807_s19 + $0x98] sm:$0xff] }
 0x41f   :  { %1008 = vmatpush1.msra.mxu1 %v901_v44  ;;  %v1141_v44 = vld [vmem:[%s2807_s19 + $0x90] sm:$0xff] }
 0x420   :  { %1009 = vmatprep.subr.mxu1 %v964_v45  ;;  %v1140_v45 = vld [vmem:[%s2807_s19 + $0x88] sm:$0xff] }
 0x421   :  { %1010 = vmatpush2.msra.mxu1 %v963_v46  ;;  %v1139_v46 = vld [vmem:[%s2807_s19 + $0x80] sm:$0xff] }
 0x422   :  { %1011 = vmatprep.subr.mxu1 %v962_v47  ;;  %v1138_v47 = vld [vmem:[%s2807_s19 + $0x78] sm:$0xff] }
 0x423   :  { %1012 = vmatpush2.msra.mxu1 %v961_v48  ;;  %v1137_v48 = vld [vmem:[%s2807_s19 + $0x70] sm:$0xff] }
 0x424   :  { %1013 = vmatprep.subr.mxu1 %v960_v49  ;;  %v1136_v49 = vld [vmem:[%s2807_s19 + $0x68] sm:$0xff] }
 0x425   :  { %1014 = vmatpush2.msra.mxu1 %v959_v50  ;;  %v1135_v50 = vld [vmem:[%s2807_s19 + $0x60] sm:$0xff] }
 0x426   :  { %1015 = vmatprep.subr.mxu1 %v958_v51  ;;  %v1134_v51 = vld [vmem:[%s2807_s19 + $0x58] sm:$0xff] }
 0x427   :  { %1016 = vmatpush2.msra.mxu1 %v957_v52  ;;  %v1133_v52 = vld [vmem:[%s2807_s19 + $0x50] sm:$0xff] }
 0x428   :  { %1017 = vmatprep.subr.mxu1 %v956_v53  ;;  %v1132_v53 = vld [vmem:[%s2807_s19 + $0x48] sm:$0xff] }
 0x429   :  { %1018 = vmatpush2.msra.mxu1 %v955_v54  ;;  %v1131_v54 = vld [vmem:[%s2807_s19 + $0x40] sm:$0xff] }
 0x42a   :  { %1019 = vmatprep.subr.mxu1 %v954_v55  ;;  %v1130_v55 = vld [vmem:[%s2807_s19 + $0x38] sm:$0xff] }
 0x42b   :  { %1020 = vmatpush2.msra.mxu1 %v953_v57  ;;  %v1129_v57 = vld [vmem:[%s2807_s19 + $0x30] sm:$0xff] }
 0x42c   :  { %1021 = vmatprep.subr.mxu1 %v952_v59  ;;  %v1128_v59 = vld [vmem:[%s2807_s19 + $0x28] sm:$0xff] }
 0x42d   :  { %1022 = vmatpush2.msra.mxu1 %v951_v60  ;;  %v1127_v60 = vld [vmem:[%s2807_s19 + $0x20] sm:$0xff] }
 0x42e   :  { %1023 = vmatprep.subr.mxu1 %v950_v61  ;;  %v1126_v61 = vld [vmem:[%s2807_s19 + $0x18] sm:$0xff] }
 0x42f   :  { %1024 = vmatpush2.msra.mxu1 %v949_v63  ;;  %v1125_v63 = vld [vmem:[%s2807_s19 + $0x10] sm:$0xff] }
 0x430   :  { %1025 = vmatprep.subr.mxu1 %v948_v2  ;;  %v1124_v2 = vld [vmem:[%s2807_s19 + $0x8] sm:$0xff] }
 0x431   :  { %1026 = vmatpush2.msra.mxu1 %v947_v3  ;;  %v1123_v3 = vld [vmem:[%s2807_s19] sm:$0xff] }
 0x432   :  { %1027 = vmatprep.subr.mxu1 %v946_v4  ;;  %v1186_v4 = vld [vmem:[%s2807_s19 + $0x1f8] sm:$0xff] }
 0x433   :  { %1028 = vmatpush2.msra.mxu1 %v945_v5  ;;  %v1185_v5 = vld [vmem:[%s2807_s19 + $0x1f0] sm:$0xff] }
 0x434   :  { %1029 = vmatprep.subr.mxu1 %v944_v7  ;;  %v1184_v7 = vld [vmem:[%s2807_s19 + $0x1e8] sm:$0xff] }
 0x435   :  { %1030 = vmatpush2.msra.mxu1 %v943_v8  ;;  %v1183_v8 = vld [vmem:[%s2807_s19 + $0x1e0] sm:$0xff] }
 0x436   :  { %1031 = vmatprep.subr.mxu1 %v942_v9  ;;  %v1182_v9 = vld [vmem:[%s2807_s19 + $0x1d8] sm:$0xff] }
 0x437   :  { %1032 = vmatpush2.msra.mxu1 %v941_v43  ;;  %v1181_v43 = vld [vmem:[%s2807_s19 + $0x1d0] sm:$0xff] }
 0x438   :  { %1033 = vmatprep.subr.mxu1 %v940_v14  ;;  %v1176_v14 = vld [vmem:[%s2807_s19 + $0x1a8] sm:$0xff] }
 0x439   :  { %1034 = vmatpush2.msra.mxu1 %v939_v15  ;;  %v1175_v15 = vld [vmem:[%s2807_s19 + $0x1a0] sm:$0xff] }
 0x43a   :  { %1035 = vmatprep.subr.mxu1 %v938_v16  ;;  %v1174_v16 = vld [vmem:[%s2807_s19 + $0x198] sm:$0xff] }
 0x43b   :  { %1036 = vmatpush2.msra.mxu1 %v937_v17  ;;  %v1173_v17 = vld [vmem:[%s2807_s19 + $0x190] sm:$0xff] }
 0x4c0   :  { %v745_v10 = vpop.f32.mrf.mxu1 }
 0x4c1   :  { %v750_v13 = vadd.f32 %v745_v10, %v1864_v62  ;;  %v1180_v10 = vld [vmem:[%s2807_s19 + $0x1c8] sm:$0xff] }
 0x4c2   :  { %v747_v11 = vpop.f32.mrf.mxu1 }
 0x4c3   :  { %v751_v12 = vadd.f32 %v747_v11, %v1866_v1  ;;  %v1179_v11 = vld [vmem:[%s2807_s19 + $0x1c0] sm:$0xff] }
 0x4c5   :  { %892 = vmatprep.mubr.f32.mxu0 %v751_v12  ;;  %v1178_v12 = vld [vmem:[%s2807_s19 + $0x1b8] sm:$0xff] }
 0x4c6   :  { %893 = vmatmul.mubr.f32.vlgmr.msra.gmra.mxu0 %v750_v13  ;;  %v1177_v13 = vld [vmem:[%s2807_s19 + $0x1b0] sm:$0xff] }
 0x4c7   :  { %1114 = vmatprep.mubr.f32.mxu0 %v1642_v0  ;;  %v936_v0 = vld [vmem:[%s2805_s17 + $0x118] sm:$0xff] }
 0x4c8   :  { %1037 = vmatprep.subr.mxu1 %v936_v0  ;;  %v1172_v0 = vld [vmem:[%s2807_s19 + $0x188] sm:$0xff] }
 0x4c9   :  { %1038 = vmatpush2.msra.mxu1 %v935_v18  ;;  %v1171_v18 = vld [vmem:[%s2807_s19 + $0x180] sm:$0xff] }
 0x4ca   :  { %1039 = vmatprep.subr.mxu1 %v934_v19  ;;  %v1170_v19 = vld [vmem:[%s2807_s19 + $0x178] sm:$0xff] }
 0x4cb   :  { %1040 = vmatpush2.msra.mxu1 %v933_v20  ;;  %v1169_v20 = vld [vmem:[%s2807_s19 + $0x170] sm:$0xff] }
 0x4cc   :  { %1199 = vmatprep.subr.mxu1 %v1154_v30 }
 0x586   :  { %v894_v24 = vpop.f32.mrf.mxu0 }
 0x587   :  { %v895_v25 = vadd.f32 %v894_v24, %v821_v22  ;;  %v1167_v22 = vld [vmem:[%s2807_s19 + $0x160] sm:$0xff]  ;;  %v1165_v24 = vld [vmem:[%s2807_s19 + $0x150] sm:$0xff] }
 0x588   :  { %v896_v26 = vpop.f32.mrf.mxu0 }
 0x589   :  { %v897_v27 = vadd.f32 %v896_v26, %v825_v23  ;;  %v899_v29 = vmax.f32 %v895_v25, 0.0  ;;  %v1166_v23 = vld [vmem:[%s2807_s19 + $0x158] sm:$0xff]  ;;  %v1164_v25 = vld [vmem:[%s2807_s19 + $0x148] sm:$0xff]  ;;  %v1163_v26 = vld [vmem:[%s2807_s19 + $0x140] sm:$0xff] }
 0x58b   :  { %v900_v28 = vmax.f32 %v897_v27, 0.0  ;;  %v1162_v27 = vld [vmem:[%s2807_s19 + $0x138] sm:$0xff] }
 0x58d   :  { %1041 = vmatprep.mubr.f32.mxu1 %v900_v28  ;;  %v1161_v28 = vld [vmem:[%s2807_s19 + $0x130] sm:$0xff] }
 0x58e   :  { %1042 = vmatmul.mubr.f32.vlgmr.msra.gmra.mxu1 %v899_v29  ;;  %v965_v29 = vld [vmem:[%s2808_s18] sm:$0x3] }
 0x58f   :  { %1200 = vmatpush1.msra.mxu1 %v1153_v31  ;;  %v970_v30 = vrot.slane %v965_v29, %v1855_v56  ;;  %v974_v31 = vrot.slane %v965_v29, %v1860_v58  ;;  %v1322_v29 = vld [vmem:[%s2809_s21 + $0x190] sm:$0xff] }
 0x590   :  { %1201 = vmatprep.subr.mxu1 %v1152_v32 }
 0x591   :  { %1202 = vmatpush1.msra.mxu1 %v1151_v33 }
 0x592   :  { %1203 = vmatprep.subr.mxu1 %v1150_v34 }
 0x593   :  { %1204 = vmatpush1.msra.mxu1 %v1149_v35 }
 0x594   :  { %1205 = vmatprep.subr.mxu1 %v1148_v36 }
 0x595   :  { %1206 = vmatpush1.msra.mxu1 %v1147_v37 }
 0x596   :  { %1207 = vmatprep.subr.mxu1 %v1146_v38  ;;  %v1160_v38 = vld [vmem:[%s2807_s19 + $0x128] sm:$0xff] }
 0x597   :  { %1208 = vmatpush1.msra.mxu1 %v1145_v39  ;;  %v1159_v39 = vld [vmem:[%s2807_s19 + $0x120] sm:$0xff] }
 0x598   :  { %1209 = vmatprep.subr.mxu1 %v1144_v40  ;;  %v1158_v40 = vld [vmem:[%s2807_s19 + $0x118] sm:$0xff] }
 0x599   :  { %1210 = vmatpush1.msra.mxu1 %v1143_v41  ;;  %v1157_v41 = vld [vmem:[%s2807_s19 + $0x110] sm:$0xff] }
 0x59a   :  { %1211 = vmatprep.subr.mxu1 %v1142_v42  ;;  %v1155_v42 = vld [vmem:[%s2807_s19 + $0x100] sm:$0xff] }
 0x59b   :  { %1212 = vmatpush1.msra.mxu1 %v1141_v44  ;;  %v1303_v44 = vld [vmem:[%s2809_s21 + $0xf8] sm:$0xff] }
 0x59c   :  { %1213 = vmatprep.subr.mxu1 %v1140_v45  ;;  %v1302_v45 = vld [vmem:[%s2809_s21 + $0xf0] sm:$0xff] }
 0x59d   :  { %1214 = vmatpush1.msra.mxu1 %v1139_v46  ;;  %v1301_v46 = vld [vmem:[%s2809_s21 + $0xe8] sm:$0xff] }
 0x59e   :  { %1215 = vmatprep.subr.mxu1 %v1138_v47  ;;  %v1300_v47 = vld [vmem:[%s2809_s21 + $0xe0] sm:$0xff] }
 0x59f   :  { %1216 = vmatpush1.msra.mxu1 %v1137_v48  ;;  %v1299_v48 = vld [vmem:[%s2809_s21 + $0xd8] sm:$0xff] }
 0x5a0   :  { %1217 = vmatprep.subr.mxu1 %v1136_v49  ;;  %v1298_v49 = vld [vmem:[%s2809_s21 + $0xd0] sm:$0xff] }
 0x5a1   :  { %1218 = vmatpush1.msra.mxu1 %v1135_v50  ;;  %v1297_v50 = vld [vmem:[%s2809_s21 + $0xc8] sm:$0xff] }
 0x5a2   :  { %1219 = vmatprep.subr.mxu1 %v1134_v51  ;;  %v1296_v51 = vld [vmem:[%s2809_s21 + $0xc0] sm:$0xff] }
 0x5a3   :  { %1220 = vmatpush1.msra.mxu1 %v1133_v52  ;;  %v1295_v52 = vld [vmem:[%s2809_s21 + $0xb8] sm:$0xff] }
 0x5a4   :  { %1221 = vmatprep.subr.mxu1 %v1132_v53  ;;  %v1294_v53 = vld [vmem:[%s2809_s21 + $0xb0] sm:$0xff] }
 0x5a5   :  { %1222 = vmatpush1.msra.mxu1 %v1131_v54  ;;  %v1293_v54 = vld [vmem:[%s2809_s21 + $0xa8] sm:$0xff] }
 0x5a6   :  { %1223 = vmatprep.subr.mxu1 %v1130_v55  ;;  %v1292_v55 = vld [vmem:[%s2809_s21 + $0xa0] sm:$0xff] }
 0x5a7   :  { %1224 = vmatpush1.msra.mxu1 %v1129_v57  ;;  %v1291_v57 = vld [vmem:[%s2809_s21 + $0x98] sm:$0xff] }
 0x5a8   :  { %1225 = vmatprep.subr.mxu1 %v1128_v59  ;;  %v1290_v59 = vld [vmem:[%s2809_s21 + $0x90] sm:$0xff] }
 0x5a9   :  { %1226 = vmatpush1.msra.mxu1 %v1127_v60  ;;  %v1289_v60 = vld [vmem:[%s2809_s21 + $0x88] sm:$0xff] }
 0x5aa   :  { %1227 = vmatprep.subr.mxu1 %v1126_v61  ;;  %v1288_v61 = vld [vmem:[%s2809_s21 + $0x80] sm:$0xff] }
 0x5ab   :  { %1228 = vmatpush1.msra.mxu1 %v1125_v63  ;;  %v1287_v63 = vld [vmem:[%s2809_s21 + $0x78] sm:$0xff] }
 0x5ac   :  { %1229 = vmatprep.subr.mxu1 %v1124_v2  ;;  %v1286_v2 = vld [vmem:[%s2809_s21 + $0x70] sm:$0xff] }
 0x5ad   :  { %1230 = vmatpush1.msra.mxu1 %v1123_v3  ;;  %v1285_v3 = vld [vmem:[%s2809_s21 + $0x68] sm:$0xff] }
 0x5ae   :  { %1231 = vmatprep.subr.mxu1 %v1186_v4  ;;  %v1284_v4 = vld [vmem:[%s2809_s21 + $0x60] sm:$0xff] }
 0x5af   :  { %1232 = vmatpush2.msra.mxu1 %v1185_v5  ;;  %v1283_v5 = vld [vmem:[%s2809_s21 + $0x58] sm:$0xff] }
 0x5b0   :  { %1233 = vmatprep.subr.mxu1 %v1184_v7  ;;  %v1282_v7 = vld [vmem:[%s2809_s21 + $0x50] sm:$0xff] }
 0x5b1   :  { %1234 = vmatpush2.msra.mxu1 %v1183_v8  ;;  %v1281_v8 = vld [vmem:[%s2809_s21 + $0x48] sm:$0xff] }
 0x5b2   :  { %1235 = vmatprep.subr.mxu1 %v1182_v9  ;;  %v1280_v9 = vld [vmem:[%s2809_s21 + $0x40] sm:$0xff] }
 0x5b3   :  { %1236 = vmatpush2.msra.mxu1 %v1181_v43  ;;  %v1279_v43 = vld [vmem:[%s2809_s21 + $0x38] sm:$0xff] }
 0x5b4   :  { %1237 = vmatprep.subr.mxu1 %v1180_v10  ;;  %v1278_v10 = vld [vmem:[%s2809_s21 + $0x30] sm:$0xff] }
 0x5b5   :  { %1238 = vmatpush2.msra.mxu1 %v1179_v11  ;;  %v1277_v11 = vld [vmem:[%s2809_s21 + $0x28] sm:$0xff] }
 0x5b6   :  { %1239 = vmatprep.subr.mxu1 %v1178_v12  ;;  %v1276_v12 = vld [vmem:[%s2809_s21 + $0x20] sm:$0xff] }
 0x5b7   :  { %1240 = vmatpush2.msra.mxu1 %v1177_v13  ;;  %v1275_v13 = vld [vmem:[%s2809_s21 + $0x18] sm:$0xff] }
 0x5b8   :  { %1241 = vmatprep.subr.mxu1 %v1176_v14  ;;  %v1274_v14 = vld [vmem:[%s2809_s21 + $0x10] sm:$0xff] }
 0x5b9   :  { %1242 = vmatpush2.msra.mxu1 %v1175_v15  ;;  %v1273_v15 = vld [vmem:[%s2809_s21 + $0x8] sm:$0xff] }
 0x5ba   :  { %1243 = vmatprep.subr.mxu1 %v1174_v16  ;;  %v1272_v16 = vld [vmem:[%s2809_s21] sm:$0xff] }
 0x5bb   :  { %1244 = vmatpush2.msra.mxu1 %v1173_v17  ;;  %v1335_v17 = vld [vmem:[%s2809_s21 + $0x1f8] sm:$0xff] }
 0x5bc   :  { %1245 = vmatprep.subr.mxu1 %v1172_v0  ;;  %v1334_v0 = vld [vmem:[%s2809_s21 + $0x1f0] sm:$0xff] }
 0x5bd   :  { %1246 = vmatpush2.msra.mxu1 %v1171_v18  ;;  %v1333_v18 = vld [vmem:[%s2809_s21 + $0x1e8] sm:$0xff] }
 0x5be   :  { %1247 = vmatprep.subr.mxu1 %v1170_v19  ;;  %v1332_v19 = vld [vmem:[%s2809_s21 + $0x1e0] sm:$0xff] }
 0x5bf   :  { %1248 = vmatpush2.msra.mxu1 %v1169_v20  ;;  %v1331_v20 = vld [vmem:[%s2809_s21 + $0x1d8] sm:$0xff] }
 0x5c0   :  { %1249 = vmatprep.subr.mxu1 %v1168_v21  ;;  %v1330_v21 = vld [vmem:[%s2809_s21 + $0x1d0] sm:$0xff] }
 0x5c1   :  { %1250 = vmatpush2.msra.mxu1 %v1167_v22  ;;  %v1329_v22 = vld [vmem:[%s2809_s21 + $0x1c8] sm:$0xff] }
 0x5c2   :  { %1251 = vmatprep.subr.mxu1 %v1166_v23  ;;  %v1328_v23 = vld [vmem:[%s2809_s21 + $0x1c0] sm:$0xff] }
 0x5c3   :  { %1252 = vmatpush2.msra.mxu1 %v1165_v24  ;;  %v1327_v24 = vld [vmem:[%s2809_s21 + $0x1b8] sm:$0xff] }
 0x5c4   :  { %1253 = vmatprep.subr.mxu1 %v1164_v25  ;;  %v1326_v25 = vld [vmem:[%s2809_s21 + $0x1b0] sm:$0xff] }
 0x5c5   :  { %1254 = vmatpush2.msra.mxu1 %v1163_v26  ;;  %v1325_v26 = vld [vmem:[%s2809_s21 + $0x1a8] sm:$0xff] }
 0x5c6   :  { %1255 = vmatprep.subr.mxu1 %v1162_v27  ;;  %v1324_v27 = vld [vmem:[%s2809_s21 + $0x1a0] sm:$0xff] }
 0x5c7   :  { %1256 = vmatpush2.msra.mxu1 %v1161_v28  ;;  %v1323_v28 = vld [vmem:[%s2809_s21 + $0x198] sm:$0xff] }
 0x5c8   :  { %1257 = vmatprep.subr.mxu1 %v1160_v38  ;;  %v1317_v38 = vld [vmem:[%s2809_s21 + $0x168] sm:$0xff] }
 0x5c9   :  { %1258 = vmatpush2.msra.mxu1 %v1159_v39  ;;  %v1316_v39 = vld [vmem:[%s2809_s21 + $0x160] sm:$0xff] }
 0x5ca   :  { %1259 = vmatprep.subr.mxu1 %v1158_v40  ;;  %v1315_v40 = vld [vmem:[%s2809_s21 + $0x158] sm:$0xff] }
 0x5cb   :  { %1260 = vmatpush2.msra.mxu1 %v1157_v41  ;;  %v1314_v41 = vld [vmem:[%s2809_s21 + $0x150] sm:$0xff] }
 0x64e   :  { %v1043_v32 = vpop.f32.mrf.mxu1 }
 0x64f   :  { %v2448_v33 = vadd.f32 %v1043_v32, %v970_v30  ;;  %v1321_v30 = vld [vmem:[%s2809_s21 + $0x188] sm:$0xff]  ;;  %v1319_v32 = vld [vmem:[%s2809_s21 + $0x178] sm:$0xff] }
 0x650   :  { %v1045_v34 = vpop.f32.mrf.mxu1 }
 0x651   :  { %v2450_v35 = vadd.f32 %v1045_v34, %v974_v31  ;;  %v1048_v37 = vmax.f32 %v2448_v33, 0.0  ;;  %v1320_v31 = vld [vmem:[%s2809_s21 + $0x180] sm:$0xff]  ;;  %v1318_v34 = vld [vmem:[%s2809_s21 + $0x170] sm:$0xff] }
 0x652   :  { %v1308_v33 = vld [vmem:[%s2809_s21 + $0x120] sm:$0xff] }
 0x653   :  { %v1049_v36 = vmax.f32 %v2450_v35, 0.0  ;;  %v1309_v35 = vld [vmem:[%s2809_s21 + $0x128] sm:$0xff] }
 0x655   :  { %1080 = vmatprep.subr.mxu0 %v1049_v36 }
 0x656   :  { %1081 = vmatpush1.msra.mxu0 %v1048_v37 }
 0x657   :  { %1548 = vmatmul.mubr.msk.f32.vlgmr.msra.gmra.mxu0 %vm91_vm0, %v2047_v6  ;;  %v1156_v6 = vld [vmem:[%s2807_s19 + $0x108] sm:$0xff]  ;;  %1348 = vmatprep.subr.mxu0 %v1303_v44 }
 0x658   :  { %1261 = vmatprep.subr.mxu1 %v1156_v6  ;;  %1349 = vmatpush1.msra.mxu0 %v1302_v45  ;;  %v1313_v6 = vld [vmem:[%s2809_s21 + $0x148] sm:$0xff] }
 0x659   :  { %1262 = vmatpush2.msra.mxu1 %v1155_v42  ;;  %1350 = vmatprep.subr.mxu0 %v1301_v46  ;;  %v1312_v42 = vld [vmem:[%s2809_s21 + $0x140] sm:$0xff] }
 0x65a   :  { %1351 = vmatpush1.msra.mxu0 %v1300_v47 }
 0x65b   :  { %1352 = vmatprep.subr.mxu0 %v1299_v48  ;;  %v1311_v48 = vld [vmem:[%s2809_s21 + $0x138] sm:$0xff] }
 0x65c   :  { %1353 = vmatpush1.msra.mxu0 %v1298_v49  ;;  %v1310_v49 = vld [vmem:[%s2809_s21 + $0x130] sm:$0xff] }
 0x65d   :  { %1354 = vmatprep.subr.mxu0 %v1297_v50  ;;  %v1305_v50 = vld [vmem:[%s2809_s21 + $0x108] sm:$0xff] }
 0x65e   :  { %1355 = vmatpush1.msra.mxu0 %v1296_v51  ;;  %v1304_v51 = vld [vmem:[%s2809_s21 + $0x100] sm:$0xff] }
 0x65f   :  { %1356 = vmatprep.subr.mxu0 %v1295_v52  ;;  %v1452_v52 = vld [vmem:[%s2810_s23 + $0xf8] sm:$0xff] }
 0x660   :  { %1357 = vmatpush1.msra.mxu0 %v1294_v53  ;;  %v1436_v53 = vld [vmem:[%s2810_s23 + $0x78] sm:$0xff]  ;;  %1562 = vmatprep.subr.mxu1 %v1452_v52 }
 0x661   :  { %1358 = vmatprep.subr.mxu0 %v1293_v54  ;;  %v1451_v54 = vld [vmem:[%s2810_s23 + $0xf0] sm:$0xff] }
 0x662   :  { %1359 = vmatpush1.msra.mxu0 %v1292_v55  ;;  %v1435_v55 = vld [vmem:[%s2810_s23 + $0x70] sm:$0xff] }
 0x663   :  { %1360 = vmatprep.subr.mxu0 %v1291_v57  ;;  %v1450_v57 = vld [vmem:[%s2810_s23 + $0xe8] sm:$0xff] }
 0x664   :  { %1361 = vmatpush1.msra.mxu0 %v1290_v59  ;;  %v1434_v59 = vld [vmem:[%s2810_s23 + $0x68] sm:$0xff] }
 0x665   :  { %1362 = vmatprep.subr.mxu0 %v1289_v60  ;;  %v1449_v60 = vld [vmem:[%s2810_s23 + $0xe0] sm:$0xff] }
 0x666   :  { %1363 = vmatpush1.msra.mxu0 %v1288_v61  ;;  %v1433_v61 = vld [vmem:[%s2810_s23 + $0x60] sm:$0xff] }
 0x667   :  { %1364 = vmatprep.subr.mxu0 %v1287_v63  ;;  %v1448_v63 = vld [vmem:[%s2810_s23 + $0xd8] sm:$0xff] }
 0x668   :  { %1365 = vmatpush1.msra.mxu0 %v1286_v2  ;;  %v1432_v2 = vld [vmem:[%s2810_s23 + $0x58] sm:$0xff] }
 0x669   :  { %1366 = vmatprep.subr.mxu0 %v1285_v3  ;;  %v1447_v3 = vld [vmem:[%s2810_s23 + $0xd0] sm:$0xff] }
 0x66a   :  { %1367 = vmatpush1.msra.mxu0 %v1284_v4  ;;  %v1431_v4 = vld [vmem:[%s2810_s23 + $0x50] sm:$0xff] }
 0x66b   :  { %1368 = vmatprep.subr.mxu0 %v1283_v5  ;;  %v1446_v5 = vld [vmem:[%s2810_s23 + $0xc8] sm:$0xff] }
 0x66c   :  { %1369 = vmatpush1.msra.mxu0 %v1282_v7  ;;  %v1430_v7 = vld [vmem:[%s2810_s23 + $0x48] sm:$0xff] }
 0x66d   :  { %1370 = vmatprep.subr.mxu0 %v1281_v8  ;;  %v1445_v8 = vld [vmem:[%s2810_s23 + $0xc0] sm:$0xff] }
 0x66e   :  { %1371 = vmatpush1.msra.mxu0 %v1280_v9  ;;  %v1429_v9 = vld [vmem:[%s2810_s23 + $0x40] sm:$0xff] }
 0x66f   :  { %1372 = vmatprep.subr.mxu0 %v1279_v43  ;;  %v1444_v43 = vld [vmem:[%s2810_s23 + $0xb8] sm:$0xff] }
 0x670   :  { %1373 = vmatpush1.msra.mxu0 %v1278_v10  ;;  %v1428_v10 = vld [vmem:[%s2810_s23 + $0x38] sm:$0xff] }
 0x671   :  { %1374 = vmatprep.subr.mxu0 %v1277_v11  ;;  %v1443_v11 = vld [vmem:[%s2810_s23 + $0xb0] sm:$0xff] }
 0x672   :  { %1375 = vmatpush1.msra.mxu0 %v1276_v12  ;;  %v1427_v12 = vld [vmem:[%s2810_s23 + $0x30] sm:$0xff] }
 0x673   :  { %1376 = vmatprep.subr.mxu0 %v1275_v13  ;;  %v1442_v13 = vld [vmem:[%s2810_s23 + $0xa8] sm:$0xff] }
 0x674   :  { %1377 = vmatpush1.msra.mxu0 %v1274_v14  ;;  %v1426_v14 = vld [vmem:[%s2810_s23 + $0x28] sm:$0xff] }
 0x675   :  { %1378 = vmatprep.subr.mxu0 %v1273_v15  ;;  %v1441_v15 = vld [vmem:[%s2810_s23 + $0xa0] sm:$0xff] }
 0x676   :  { %1379 = vmatpush1.msra.mxu0 %v1272_v16  ;;  %v1425_v16 = vld [vmem:[%s2810_s23 + $0x20] sm:$0xff] }
 0x677   :  { %1380 = vmatprep.subr.mxu0 %v1335_v17  ;;  %v1187_v17 = vld [vmem:[%s2811_s20] sm:$0x3] }
 0x678   :  { %1381 = vmatpush2.msra.mxu0 %v1334_v0  ;;  %v1192_v0 = vrot.slane %v1187_v17, %v1855_v56 }
 0x679   :  { %1382 = vmatprep.subr.mxu0 %v1333_v18  ;;  %v1196_v18 = vrot.slane %v1187_v17, %v1860_v58 }
 0x67a   :  { %1383 = vmatpush2.msra.mxu0 %v1332_v19 }
 0x67b   :  { %1384 = vmatprep.subr.mxu0 %v1331_v20 }
 0x67c   :  { %1385 = vmatpush2.msra.mxu0 %v1330_v21 }
 0x67d   :  { %1386 = vmatprep.subr.mxu0 %v1329_v22 }
 0x67e   :  { %1387 = vmatpush2.msra.mxu0 %v1328_v23 }
 0x67f   :  { %1388 = vmatprep.subr.mxu0 %v1327_v24 }
 0x680   :  { %1389 = vmatpush2.msra.mxu0 %v1326_v25  ;;  %v1440_v25 = vld [vmem:[%s2810_s23 + $0x98] sm:$0xff] }
 0x681   :  { %1390 = vmatprep.subr.mxu0 %v1325_v26  ;;  %v1424_v26 = vld [vmem:[%s2810_s23 + $0x18] sm:$0xff] }
 0x682   :  { %1391 = vmatpush2.msra.mxu0 %v1324_v27  ;;  %v1439_v27 = vld [vmem:[%s2810_s23 + $0x90] sm:$0xff] }
 0x683   :  { %1392 = vmatprep.subr.mxu0 %v1323_v28  ;;  %v1423_v28 = vld [vmem:[%s2810_s23 + $0x10] sm:$0xff] }
 0x684   :  { %1393 = vmatpush2.msra.mxu0 %v1322_v29  ;;  %v1438_v29 = vld [vmem:[%s2810_s23 + $0x88] sm:$0xff] }
 0x685   :  { %1394 = vmatprep.subr.mxu0 %v1321_v30  ;;  %v1422_v30 = vld [vmem:[%s2810_s23 + $0x8] sm:$0xff] }
 0x686   :  { %1395 = vmatpush2.msra.mxu0 %v1320_v31  ;;  %v1437_v31 = vld [vmem:[%s2810_s23 + $0x80] sm:$0xff] }
 0x687   :  { %1396 = vmatprep.subr.mxu0 %v1319_v32  ;;  %v1421_v32 = vld [vmem:[%s2810_s23] sm:$0xff] }
 0x688   :  { %1397 = vmatpush2.msra.mxu0 %v1318_v34  ;;  %v30_v34 = vstv %s2812_s24 }
 0x689   :  { %1398 = vmatprep.subr.mxu0 %v1317_v38  ;;  %31 = vst [vmem:[#allocation2] sm:$0x1] %v30_v34 }
 0x68a   :  { %1399 = vmatpush2.msra.mxu0 %v1316_v39  ;;  %v1336_v39 = vld [vmem:[%s2813_s22] sm:$0x3] }
 0x68b   :  { %1400 = vmatprep.subr.mxu0 %v1315_v40  ;;  %v1341_v40 = vrot.slane %v1336_v39, %v1855_v56 }
 0x68c   :  { %1401 = vmatpush2.msra.mxu0 %v1314_v41  ;;  %v1345_v41 = vrot.slane %v1336_v39, %v1860_v58 }
 0x68d   :  { %1402 = vmatprep.subr.mxu0 %v1313_v6 }
 0x68e   :  { %1403 = vmatpush2.msra.mxu0 %v1312_v42 }
 0x68f   :  { %1404 = vmatprep.subr.mxu0 %v1311_v48 }
 0x690   :  { %1405 = vmatpush2.msra.mxu0 %v1310_v49  ;;  %v1549_v38 = vld [vmem:[#allocation2] ss:$0 sm:$0xff] }
 0x691   :  { %1406 = vmatprep.subr.mxu0 %v1309_v35  ;;  %1460 = vperm.xlu1 %1631, %v1549_v38  }
 0x692   :  { %1407 = vmatpush2.msra.mxu0 %v1308_v33 }
 0x70c   :  { %v1461_v35 = vpop.permute.xlu1 %1460 }
 0x717   :  { %v1116_v44 = vpop.f32.mrf.mxu0 }
 0x718   :  { %v1121_v47 = vadd.f32 %v1116_v44, %v1048_v37  ;;  %v1306_v37 = vld [vmem:[%s2809_s21 + $0x110] sm:$0xff] }
 0x719   :  { %v1118_v45 = vpop.f32.mrf.mxu0 }
 0x71a   :  { %v1122_v46 = vadd.f32 %v1118_v45, %v1049_v36  ;;  %v1307_v36 = vld [vmem:[%s2809_s21 + $0x118] sm:$0xff] }
 0x71b   :  { %1408 = vmatprep.subr.mxu0 %v1307_v36 }
 0x71c   :  { %1263 = vmatprep.mubr.f32.mxu1 %v1122_v46  ;;  %1409 = vmatpush2.msra.mxu0 %v1306_v37 }
 0x71d   :  { %1264 = vmatmul.mubr.f32.vlgmr.msra.gmra.mxu1 %v1121_v47  ;;  %1410 = vmatprep.subr.mxu0 %v1305_v50 }
 0x71e   :  { %1411 = vmatpush2.msra.mxu0 %v1304_v51  ;;  %1563 = vmatpush3.msra.mxu1 %v1436_v53 }
 0x71f   :  { %1564 = vmatprep.subr.mxu1 %v1451_v54 }
 0x720   :  { %1565 = vmatpush3.msra.mxu1 %v1435_v55 }
 0x721   :  { %1566 = vmatprep.subr.mxu1 %v1450_v57 }
 0x722   :  { %1567 = vmatpush3.msra.mxu1 %v1434_v59 }
 0x723   :  { %1568 = vmatprep.subr.mxu1 %v1449_v60 }
 0x724   :  { %1569 = vmatpush3.msra.mxu1 %v1433_v61 }
 0x725   :  { %1570 = vmatprep.subr.mxu1 %v1448_v63 }
 0x726   :  { %1571 = vmatpush3.msra.mxu1 %v1432_v2 }
 0x727   :  { %1572 = vmatprep.subr.mxu1 %v1447_v3 }
 0x728   :  { %1573 = vmatpush3.msra.mxu1 %v1431_v4 }
 0x729   :  { %1574 = vmatprep.subr.mxu1 %v1446_v5 }
 0x72a   :  { %1575 = vmatpush3.msra.mxu1 %v1430_v7 }
 0x72b   :  { %1576 = vmatprep.subr.mxu1 %v1445_v8 }
 0x72c   :  { %1577 = vmatpush3.msra.mxu1 %v1429_v9 }
 0x72d   :  { %1578 = vmatprep.subr.mxu1 %v1444_v43 }
 0x72e   :  { %1579 = vmatpush3.msra.mxu1 %v1428_v10 }
 0x72f   :  { %1580 = vmatprep.subr.mxu1 %v1443_v11 }
 0x730   :  { %1581 = vmatpush3.msra.mxu1 %v1427_v12 }
 0x731   :  { %1582 = vmatprep.subr.mxu1 %v1442_v13 }
 0x732   :  { %1583 = vmatpush3.msra.mxu1 %v1426_v14 }
 0x733   :  { %1584 = vmatprep.subr.mxu1 %v1441_v15 }
 0x734   :  { %1585 = vmatpush3.msra.mxu1 %v1425_v16 }
 0x735   :  { %1586 = vmatprep.subr.mxu1 %v1440_v25 }
 0x736   :  { %1587 = vmatpush3.msra.mxu1 %v1424_v26 }
 0x737   :  { %1588 = vmatprep.subr.mxu1 %v1439_v27 }
 0x738   :  { %1589 = vmatpush3.msra.mxu1 %v1423_v28 }
 0x739   :  { %1590 = vmatprep.subr.mxu1 %v1438_v29 }
 0x73a   :  { %1591 = vmatpush3.msra.mxu1 %v1422_v30 }
 0x73b   :  { %1592 = vmatprep.subr.mxu1 %v1437_v31 }
 0x73c   :  { %1593 = vmatpush3.msra.mxu1 %v1421_v32 }
 0x7dd   :  { %v1265_v19 = vpop.f32.mrf.mxu1 }
 0x7de   :  { %v1266_v20 = vadd.f32 %v1265_v19, %v1192_v0 }
 0x7df   :  { %v1267_v21 = vpop.f32.mrf.mxu1 }
 0x7e0   :  { %v1268_v22 = vadd.f32 %v1267_v21, %v1196_v18  ;;  %v1270_v24 = vmax.f32 %v1266_v20, 0.0 }
 0x7e2   :  { %v1271_v23 = vmax.f32 %v1268_v22, 0.0 }
 0x7e4   :  { %1412 = vmatprep.mubr.f32.mxu0 %v1271_v23 }
 0x7e5   :  { %1413 = vmatmul.mubr.f32.vlgmr.msra.gmra.mxu0 %v1270_v24 }
 0x8a5   :  { %v1414_v6 = vpop.f32.mrf.mxu0 }
 0x8a6   :  { %v1415_v42 = vadd.f32 %v1414_v6, %v1341_v40 }
 0x8a7   :  { %v1416_v44 = vpop.f32.mrf.mxu0 }
 0x8a8   :  { %v1417_v45 = vadd.f32 %v1416_v44, %v1345_v41  ;;  %v1419_v47 = vadd.f32 %v1415_v42, %v1864_v62 }
 0x8aa   :  { %v1420_v46 = vadd.f32 %v1417_v45, %v1866_v1 }
 0x8ac   :  { %1527 = vmatprep.mubr.f32.mxu1 %v1420_v46 }
 0x8ad   :  { %1528 = vmatmul.mubr.f32.vlgmr.msra.gmra.mxu1 %v1419_v47 }
 0x96d   :  { %v1594_v48 = vpop.f32.mrf.mxu1 }
 0x96f   :  { %v1595_v49 = vpop.f32.mrf.mxu1 }
 0x970   :  { %v1596_v33 = vadd.f32 %v1595_v49, %v1594_v48 }
 0x972   :  { %v1530_v36 = vadd.f32 %v1596_v33, %v1461_v35 }
 0x974   :  { %1533 = vst.msk [vmem:[%s2814_s25] sm:$0xff] %vm91_vm0, %v1530_v36 }

// kernel: _lambda_.4
= control target key start
LH: loop header
LB: loop body
LE: loop exit
PB: predicated region body
PF: predicated region fallthrough
CT: control target
= control target key end

     0   :  { %vm92_vm0 = vcmask 64512   ;;  %v1792_v3 = vmov 0   ;;  %v1793_v4 = vmov 0.0   ;;  %vm1794_vm1 = vmmov 0   ;;  %s2987_s5 = inlined_call_operand.vmem [shape: f32[8,8], index: 5, kind: input, shape index: {}]   ;;  %s2988_s1 = inlined_call_operand.vmem [shape: f32[16,8], index: 1, kind: input, shape index: {}]   ;;  %s2989_s9 = inlined_call_operand.vmem [shape: f32[8,8], index: 9, kind: input, shape index: {}]   ;;  %s2990_s2 = inlined_call_operand.vmem [shape: f32[16,8], index: 2, kind: input, shape index: {}]   ;;  %s2991_s12 = inlined_call_operand.vmem [shape: f32[8,1], index: 12, kind: input, shape index: {}]   ;;  %s2992_s3 = inlined_call_operand.vmem [shape: f32[8,16], index: 3, kind: input, shape index: {}]   ;;  %s2993_s8 = inlined_call_operand.vmem [shape: f32[8,1], index: 8, kind: input, shape index: {}]   ;;  %s2994_s7 = inlined_call_operand.vmem [shape: f32[8,8], index: 7, kind: input, shape index: {}]   ;;  %s2995_s4 = inlined_call_operand.vmem [shape: f32[8,16], index: 4, kind: input, shape index: {}]   ;;  %s2996_s11 = inlined_call_operand.vmem [shape: f32[8,8], index: 11, kind: input, shape index: {}]   ;;  %s2997_s6 = inlined_call_operand.vmem [shape: f32[1,8], index: 6, kind: input, shape index: {}]   ;;  %s2998_s10 = inlined_call_operand.vmem [shape: f32[1,8], index: 10, kind: input, shape index: {}]   ;;  %s2999_s13 = inlined_call_operand.vmem [shape: f32[8,256], index: 13, kind: input, shape index: {}]   ;;  %s3000_s0 = inlined_call_operand.vmem [shape: f32[16,8], index: 0, kind: input, shape index: {}]   ;;  %s3001_s14 = inlined_call_operand.vmem [shape: f32[1,256], index: 14, kind: input, shape index: {}]   ;;  %s3002_s15 = inlined_call_operand.vmem [shape: f32[256,256], index: 15, kind: input, shape index: {}]   ;;  %s3003_s17 = inlined_call_operand.vmem [shape: f32[256,256], index: 17, kind: input, shape index: {}]   ;;  %s3004_s16 = inlined_call_operand.vmem [shape: f32[1,256], index: 16, kind: input, shape index: {}]   ;;  %s3005_s19 = inlined_call_operand.vmem [shape: f32[256,256], index: 19, kind: input, shape index: {}]   ;;  %s3006_s18 = inlined_call_operand.vmem [shape: f32[1,256], index: 18, kind: input, shape index: {}]   ;;  %s3007_s21 = inlined_call_operand.vmem [shape: f32[256,256], index: 21, kind: input, shape index: {}]   ;;  %s3008_s23 = inlined_call_operand.vmem [shape: f32[256,8], index: 23, kind: input, shape index: {}]   ;;  %s3009_s20 = inlined_call_operand.vmem [shape: f32[1,256], index: 20, kind: input, shape index: {}]   ;;  %s3010_s24 = inlined_call_operand.<no memory space> [shape: f32[1,1], index: 24, kind: input, shape index: {}]   ;;  %s3011_s22 = inlined_call_operand.vmem [shape: f32[1,256], index: 22, kind: input, shape index: {}]   ;;  %s3012_s25 = inlined_call_operand.vmem [shape: f32[16,8], index: 25, kind: output, shape index: {}]  }
   0x1   :  { %3015 = sst [smem:[#allocation3_spill]] %s2987_s5  ;;  %1774 = vset.pattern.permute.xlu0 %v1792_v3  ;;  %819 = vmatprep.mubr.f32.mxu1 %v1793_v4  ;;  %v1668_v15 = vld [vmem:[%s2997_s6] ss:$0 sm:$0xff]  ;;  %vm609_vm2 = vcmask 130048  }
   0x2   :  { %3016 = sst [smem:[#allocation4_spill]] %s2988_s1  ;;  %1775 = vset.pattern.permute.xlu1 %v1792_v3  ;;  %v1671_v26 = vld [vmem:[%s2998_s10] ss:$0 sm:$0xff]  ;;  %v651_v3 = vld [vmem:[%s3000_s0 + $0x8] sm:$0xff] }
   0x3   :  { %3017 = sst [smem:[#allocation5_spill]] %s2989_s9 }
   0x4   :  { %3018 = sst [smem:[#allocation6_spill]] %s2990_s2 }
   0x5   :  { %3019 = sst [smem:[#allocation7_spill]] %s2991_s12 }
   0x6   :  { %3020 = sst [smem:[#allocation8_spill]] %s2992_s3 }
   0x7   :  { %3021 = sst [smem:[#allocation9_spill]] %s2993_s8 }
   0x8   :  { %3022 = sst [smem:[#allocation10_spill]] %s2994_s7 }
   0x9   :  { %3023 = sst [smem:[#allocation11_spill]] %s2995_s4 }
   0xa   :  { %3024 = sst [smem:[#allocation12_spill]] %s2996_s11 }
   0xb   :  { %s3025_s9 = sld [smem:[#allocation3_spill]] }
   0xc   :  { %s3026_s2 = sld [smem:[#allocation4_spill]] }
   0xd   :  { %s3027_s11 = sld [smem:[#allocation5_spill]] }
   0xe   :  { %s3028_s3 = sld [smem:[#allocation6_spill]] }
   0xf   :  { %s3029_s29 = sld [smem:[#allocation7_spill]] }
  0x10   :  { %s3030_s26 = sld [smem:[#allocation8_spill]] }
  0x11   :  { %v84_v0 = vld [vmem:[%s3025_s9] sm:$0xff]  ;;  %s3031_s27 = sld [smem:[#allocation9_spill]] }
  0x12   :  { %v82_v1 = vld [vmem:[%s3026_s2] sm:$0xff]  ;;  %v83_v2 = vld [vmem:[%s3026_s2 + $0x8] sm:$0xff]  ;;  %1741 = vmatprep.subr.mxu0 %v84_v0  ;;  %s3032_s28 = sld [smem:[#allocation10_spill]] }
  0x13   :  { %1743 = vmatprep.mubr.msk.f32.mxu0 %vm92_vm0, %v82_v1  ;;  %v180_v5 = vld [vmem:[%s3027_s11] sm:$0xff]  ;;  %1742 = vmatpush3.msra.mxu0 %v84_v0  ;;  %s3033_s8 = sld [smem:[#allocation11_spill]]  ;;  %v653_v0 = vld [vmem:[%s2999_s13 + $0x8] sm:$0xff] }
  0x14   :  { %v178_v6 = vld [vmem:[%s3028_s3] sm:$0xff]  ;;  %1744 = vmatmul.mubr.msk.f32.vlgmr.msra.gmra.mxu0 %vm92_vm0, %v83_v2  ;;  %1746 = vmatprep.subr.mxu0 %v180_v5  ;;  %v179_v8 = vld [vmem:[%s3028_s3 + $0x8] sm:$0xff]  ;;  %s3034_s30 = sld [smem:[#allocation12_spill]] }
  0x15   :  { %v358_v7 = vld [vmem:[%s3029_s29] sm:$0xff]  ;;  %1747 = vmatpush3.msra.mxu0 %v180_v5  ;;  %1748 = vmatprep.mubr.msk.f32.mxu0 %vm92_vm0, %v178_v6 }
  0x16   :  { %1751 = vmatprep.subr.mxu0 %v1793_v4  ;;  %v274_v9 = vld [vmem:[%s3030_s26] sm:$0xff]  ;;  %361 = vperm.xlu0 %1774, %v358_v7  }
  0x17   :  { %v275_v10 = vld [vmem:[%s3031_s27] sm:$0xff] }
  0x18   :  { %1749 = vmatmul.mubr.msk.f32.vlgmr.msra.gmra.mxu0 %vm92_vm0, %v179_v8  ;;  %v273_v11 = vld [vmem:[%s3032_s28] sm:$0xff] }
  0x19   :  { %1752 = vmatpush3.msra.mxu0 %v274_v9  ;;  %1753 = vmatprep.mubr.msk.f32.mxu0 %vm1794_vm1, %v1793_v4  ;;  %v357_v12 = vld [vmem:[%s3033_s8] sm:$0xff] }
  0x1a   :  { %1756 = vmatprep.subr.mxu0 %v1793_v4  ;;  %278 = vperm.xlu0 %1774, %v275_v10   ;;  %v356_v13 = vld [vmem:[%s3034_s30] sm:$0xff] }
  0x1b   :  { %v652_v1 = vld [vmem:[%s2999_s13] sm:$0xff] }
  0x1c   :  { %1754 = vmatmul.mubr.msk.f32.vlgmr.msra.gmra.mxu0 %vm92_vm0, %v273_v11  ;;  %v650_v2 = vld [vmem:[%s3000_s0] sm:$0xff]  ;;  %v656_v11 = vlaneseq }
  0x1d   :  { %1757 = vmatpush3.msra.mxu0 %v357_v12  ;;  %1758 = vmatprep.mubr.msk.f32.mxu0 %vm1794_vm1, %v1793_v4 }
  0x1e   :  { %v657_v12 = vshrl.u32 %v656_v11, 7  ;;  %v891_v11 = vld [vmem:[%s3002_s15 + $0x1b8] sm:$0xff] }
  0x20   :  { %1759 = vmatmul.mubr.msk.f32.vlgmr.msra.gmra.mxu0 %vm92_vm0, %v356_v13  ;;  %v2014_v13 = vsub.s32 0, %v657_v12 }
  0x91   :  { %v362_v17 = vpop.permute.xlu0 %361 }
  0x95   :  { %v279_v22 = vpop.permute.xlu0 %278 }
  0xd4   :  { %v1745_v14 = vpop.f32.mrf.mxu0 }
  0xd5   :  { %v171_v24 = vadd.f32 %v1745_v14, %v1668_v15  ;;  %v654_v14 = vld [vmem:[%s3001_s14] sm:$0x3] }
  0xd6   :  { %v165_v16 = vpop.f32.mrf.mxu0 }
  0xd7   :  { %v166_v18 = vadd.f32 %v1668_v15, %v165_v16  ;;  %v175_v31 = vmul.f32 3.0, %v171_v24  ;;  %v2019_v15 = vsub.s32 1, %v657_v12  ;;  %v890_v12 = vld [vmem:[%s3002_s15 + $0x1b0] sm:$0xff] }
  0xd8   :  { %v1750_v19 = vpop.f32.mrf.mxu0 }
  0xd9   :  { %v174_v20 = vmul.f32 3.0, %v166_v18  ;;  %v266_v33 = vadd.f32 %v1750_v19, %v1671_v26  ;;  %v663_v19 = vrot.slane %v654_v14, %v2019_v15 }
  0xda   :  { %v260_v21 = vpop.f32.mrf.mxu0 }
  0xdb   :  { %1776 = vtanh.f32 %v174_v20  ;;  %v261_v28 = vadd.f32 %v1671_v26, %v260_v21  ;;  %v270_v37 = vmul.f32 3.0, %v266_v33  ;;  %v866_v33 = vld [vmem:[%s3002_s15 + $0xf0] sm:$0xff] }
  0xdc   :  { %v350_v23 = vpop.f32.mrf.mxu0 }
  0xdd   :  { %v351_v27 = vadd.f32 %v350_v23, %v279_v22  ;;  %v269_v36 = vmul.f32 3.0, %v261_v28 }
  0xde   :  { %v1755_v25 = vpop.f32.mrf.mxu0 }
  0xdf   :  { %v354_v34 = vmul.f32 3.0, %v351_v27 }
  0xe0   :  { %v433_v29 = vpop.f32.mrf.mxu0 }
  0xe1   :  { %v434_v30 = vadd.f32 %v433_v29, %v362_v17  ;;  %v659_v17 = vrot.slane %v654_v14, %v2014_v13  ;;  %v889_v14 = vld [vmem:[%s3002_s15 + $0x1a8] sm:$0xff] }
  0xe2   :  { %v1760_v32 = vpop.f32.mrf.mxu0 }
  0xe3   :  { %v437_v35 = vmul.f32 3.0, %v434_v30  ;;  %v867_v32 = vld [vmem:[%s3002_s15 + $0xf8] sm:$0xff] }
  0xe5   :  { %1778 = vtanh.f32 %v437_v35  ;;  %v864_v35 = vld [vmem:[%s3002_s15 + $0xe0] sm:$0xff] }
  0xe6   :  { %1780 = vtanh.f32 %v175_v31 }
  0xe7   :  { %1782 = vtanh.f32 %v354_v34  ;;  %v865_v34 = vld [vmem:[%s3002_s15 + $0xe8] sm:$0xff] }
  0xe8   :  { %v1777_v38 = vpop.eup %1776  ;;  %1784 = vtanh.f32 %v269_v36  ;;  %v863_v36 = vld [vmem:[%s3002_s15 + $0xd8] sm:$0xff] }
  0xe9   :  { %1763 = vmatprep.mubr.msk.f32.mxu0 %vm92_vm0, %v1777_v38  ;;  %1786 = vtanh.f32 %v270_v37  ;;  %v862_v37 = vld [vmem:[%s3002_s15 + $0xd0] sm:$0xff]  ;;  %v861_v38 = vld [vmem:[%s3002_s15 + $0xc8] sm:$0xff] }
  0xf2   :  { %v1779_v39 = vpop.eup %1778 }
  0xf3   :  { %v1781_v40 = vpop.eup %1780  ;;  %1761 = vmatprep.subr.mxu0 %v1779_v39 }
  0xf4   :  { %v1783_v41 = vpop.eup %1782  ;;  %1762 = vmatpush3.msra.mxu0 %v1779_v39  ;;  %v860_v39 = vld [vmem:[%s3002_s15 + $0xc0] sm:$0xff] }
  0xf5   :  { %v1785_v42 = vpop.eup %1784  ;;  %1764 = vmatmul.mubr.msk.f32.vlgmr.msra.gmra.mxu0 %vm92_vm0, %v1781_v40  ;;  %1766 = vmatprep.subr.mxu0 %v1783_v41  ;;  %v859_v40 = vld [vmem:[%s3002_s15 + $0xb8] sm:$0xff] }
  0xf6   :  { %1767 = vmatpush3.msra.mxu0 %v1783_v41  ;;  %1768 = vmatprep.mubr.msk.f32.mxu0 %vm92_vm0, %v1785_v42  ;;  %v1787_v43 = vpop.eup %1786  ;;  %v858_v41 = vld [vmem:[%s3002_s15 + $0xb0] sm:$0xff]  ;;  %v857_v42 = vld [vmem:[%s3002_s15 + $0xa8] sm:$0xff] }
  0xf7   :  { %702 = vmatprep.subr.mxu0 %v653_v0  ;;  %v837_v0 = vld [vmem:[%s3002_s15 + $0x8] sm:$0xff] }
  0xf9   :  { %1769 = vmatmul.mubr.msk.f32.vlgmr.msra.gmra.mxu0 %vm92_vm0, %v1787_v43  ;;  %v856_v43 = vld [vmem:[%s3002_s15 + $0xa0] sm:$0xff] }
  0xfa   :  { %736 = vmatprep.mubr.f32.mxu0 %v1793_v4  ;;  %703 = vmatpush1.msra.mxu0 %v652_v1  ;;  %v836_v1 = vld [vmem:[%s3002_s15] sm:$0xff] }
  0xfb   :  { %912 = vmatprep.subr.mxu0 %v867_v32  ;;  %v876_v32 = vld [vmem:[%s3002_s15 + $0x140] sm:$0xff] }
  0xfd   :  { %1680 = vmatmul.mubr.msk.f32.vlgmr.msra.gmra.mxu0 %vm92_vm0, %v650_v2  ;;  %v899_v2 = vld [vmem:[%s3002_s15 + $0x1f8] sm:$0xff] }
  0xfe   :  { %742 = vmatprep.mubr.f32.mxu0 %v1793_v4  ;;  %913 = vmatpush1.msra.mxu0 %v866_v33  ;;  %v875_v33 = vld [vmem:[%s3002_s15 + $0x138] sm:$0xff] }
  0xff   :  { %914 = vmatprep.subr.mxu0 %v865_v34  ;;  %v874_v34 = vld [vmem:[%s3002_s15 + $0x130] sm:$0xff] }
 0x100   :  { %915 = vmatpush1.msra.mxu0 %v864_v35 }
 0x101   :  { %1681 = vmatmul.mubr.msk.f32.gmra.mxu0 %vm92_vm0, %v651_v3  ;;  %916 = vmatprep.subr.mxu0 %v863_v36  ;;  %v898_v3 = vld [vmem:[%s3002_s15 + $0x1f0] sm:$0xff] }
 0x102   :  { %917 = vmatpush1.msra.mxu0 %v862_v37 }
 0x103   :  { %918 = vmatprep.subr.mxu0 %v861_v38 }
 0x104   :  { %919 = vmatpush1.msra.mxu0 %v860_v39  ;;  %v873_v39 = vld [vmem:[%s3002_s15 + $0x128] sm:$0xff] }
 0x105   :  { %920 = vmatprep.subr.mxu0 %v859_v40  ;;  %v871_v40 = vld [vmem:[%s3002_s15 + $0x118] sm:$0xff] }
 0x106   :  { %921 = vmatpush1.msra.mxu0 %v858_v41  ;;  %v869_v41 = vld [vmem:[%s3002_s15 + $0x108] sm:$0xff] }
 0x107   :  { %922 = vmatprep.subr.mxu0 %v857_v42  ;;  %v868_v42 = vld [vmem:[%s3002_s15 + $0x100] sm:$0xff] }
 0x108   :  { %923 = vmatpush1.msra.mxu0 %v856_v43  ;;  %v1024_v43 = vld [vmem:[%s3003_s17 + $0xf8] sm:$0xff] }
 0x1b5   :  { %v1765_v44 = vpop.f32.mrf.mxu0 }
 0x1b7   :  { %v511_v45 = vpop.f32.mrf.mxu0 }
 0x1b9   :  { %v1770_v46 = vpop.f32.mrf.mxu0 }
 0x1ba   :  { %v602_v47 = vsub.f32 %v1765_v44, %v1770_v46  ;;  %v855_v44 = vld [vmem:[%s3002_s15 + $0x98] sm:$0xff]  ;;  %v853_v46 = vld [vmem:[%s3002_s15 + $0x88] sm:$0xff] }
 0x1bb   :  { %v592_v48 = vpop.f32.mrf.mxu0  ;;  %924 = vmatprep.subr.mxu0 %v855_v44  ;;  %v1023_v44 = vld [vmem:[%s3003_s17 + $0xf0] sm:$0xff] }
 0x1bc   :  { %v604_v49 = vmul.f32 3.0, %v602_v47  ;;  %v601_v50 = vsub.f32 %v511_v45, %v592_v48  ;;  %v854_v45 = vld [vmem:[%s3002_s15 + $0x90] sm:$0xff]  ;;  %v852_v47 = vld [vmem:[%s3002_s15 + $0x80] sm:$0xff]  ;;  %v851_v48 = vld [vmem:[%s3002_s15 + $0x78] sm:$0xff] }
 0x1bd   :  { %v738_v16 = vpop.f32.mrf.mxu0  ;;  %925 = vmatpush1.msra.mxu0 %v854_v45  ;;  %v1022_v45 = vld [vmem:[%s3003_s17 + $0xe8] sm:$0xff] }
 0x1be   :  { %v603_v51 = vmul.f32 3.0, %v601_v50  ;;  %1788 = vtanh.f32 %v604_v49  ;;  %v2029_v25 = vadd.f32 %v738_v16, %v659_v17  ;;  %926 = vmatprep.subr.mxu0 %v853_v46  ;;  %v850_v49 = vld [vmem:[%s3002_s15 + $0x70] sm:$0xff]  ;;  %v849_v50 = vld [vmem:[%s3002_s15 + $0x68] sm:$0xff]  ;;  %v888_v16 = vld [vmem:[%s3002_s15 + $0x1a0] sm:$0xff] }
 0x1bf   :  { %v740_v18 = vpop.f32.mrf.mxu0  ;;  %927 = vmatpush1.msra.mxu0 %v852_v47  ;;  %v1021_v46 = vld [vmem:[%s3003_s17 + $0xe0] sm:$0xff]  ;;  %v1020_v47 = vld [vmem:[%s3003_s17 + $0xd8] sm:$0xff] }
 0x1c0   :  { %1790 = vtanh.f32 %v603_v51  ;;  %v2025_v23 = vadd.f32 %v740_v18, %v663_v19  ;;  %928 = vmatprep.subr.mxu0 %v851_v48  ;;  %v848_v51 = vld [vmem:[%s3002_s15 + $0x60] sm:$0xff]  ;;  %v886_v18 = vld [vmem:[%s3002_s15 + $0x190] sm:$0xff] }
 0x1c1   :  { %v744_v20 = vpop.f32.mrf.mxu0  ;;  %929 = vmatpush1.msra.mxu0 %v850_v49  ;;  %v1019_v48 = vld [vmem:[%s3003_s17 + $0xd0] sm:$0xff]  ;;  %v1018_v49 = vld [vmem:[%s3003_s17 + $0xc8] sm:$0xff] }
 0x1c2   :  { %v2023_v21 = vadd.f32 %v744_v20, %v659_v17  ;;  %930 = vmatprep.subr.mxu0 %v849_v50  ;;  %v887_v17 = vld [vmem:[%s3002_s15 + $0x198] sm:$0xff]  ;;  %v884_v20 = vld [vmem:[%s3002_s15 + $0x180] sm:$0xff] }
 0x1c3   :  { %v746_v22 = vpop.f32.mrf.mxu0  ;;  %931 = vmatpush1.msra.mxu0 %v848_v51  ;;  %v1017_v50 = vld [vmem:[%s3003_s17 + $0xc0] sm:$0xff]  ;;  %v1016_v51 = vld [vmem:[%s3003_s17 + $0xb8] sm:$0xff] }
 0x1c4   :  { %v2027_v24 = vadd.f32 %v746_v22, %v663_v19  ;;  %v885_v19 = vld [vmem:[%s3002_s15 + $0x188] sm:$0xff]  ;;  %v883_v22 = vld [vmem:[%s3002_s15 + $0x178] sm:$0xff] }
 0x1c6   :  { %783 = vmatprep.subr.mxu1 %v2027_v24 }
 0x1c7   :  { %784 = vmatpush1.msra.mxu1 %v2023_v21 }
 0x1c8   :  { %785 = vmatprep.subr.mxu1 %v2025_v23 }
 0x1c9   :  { %786 = vmatpush1.msra.mxu1 %v2029_v25 }
 0x1ca   :  { %1069 = vmatprep.subr.mxu1 %v1024_v43  ;;  %v1033_v43 = vld [vmem:[%s3003_s17 + $0x140] sm:$0xff] }
 0x1cb   :  { %v1789_v52 = vpop.eup %1788 }
 0x1cc   :  { %v1985_v55 = vmax.f32 %v1789_v52, 0.0  ;;  %v847_v52 = vld [vmem:[%s3002_s15 + $0x58] sm:$0xff] }
 0x1cd   :  { %v1791_v53 = vpop.eup %1790  ;;  %932 = vmatprep.subr.mxu0 %v847_v52  ;;  %v1015_v52 = vld [vmem:[%s3003_s17 + $0xb0] sm:$0xff] }
 0x1ce   :  { %v1983_v54 = vmax.f32 %v1791_v53, 0.0  ;;  %v613_v57 = vsel %vm609_vm2, %v1985_v55, -inf  ;;  %v846_v53 = vld [vmem:[%s3002_s15 + $0x50] sm:$0xff] }
 0x1cf   :  { %933 = vmatpush1.msra.mxu0 %v846_v53  ;;  %v1014_v53 = vld [vmem:[%s3003_s17 + $0xa8] sm:$0xff] }
 0x1d0   :  { %v610_v56 = vsel %vm609_vm2, %v1983_v54, -inf }
 0x1d1   :  { %611 = vmax.xlane.f32.xlu1 %v610_v56  ;;  %v845_v56 = vld [vmem:[%s3002_s15 + $0x48] sm:$0xff] }
 0x1d2   :  { %934 = vmatprep.subr.mxu0 %v845_v56  ;;  %v1013_v56 = vld [vmem:[%s3003_s17 + $0xa0] sm:$0xff] }
 0x1d5   :  { %614 = vmax.xlane.f32.xlu1 %v613_v57  ;;  %v844_v57 = vld [vmem:[%s3002_s15 + $0x40] sm:$0xff] }
 0x1d6   :  { %935 = vmatpush1.msra.mxu0 %v844_v57  ;;  %v1012_v57 = vld [vmem:[%s3003_s17 + $0x98] sm:$0xff] }
 0x25a   :  { %v612_v58 = vpop.xlane.xlu1 %611 }
 0x25b   :  { %vm616_vm3 = vcmp.ge.f32.partialorder %v1983_v54, %v612_v58  ;;  %v843_v58 = vld [vmem:[%s3002_s15 + $0x38] sm:$0xff] }
 0x25c   :  { %v618_v59 = vsel %vm616_vm3, -1e+30, %v1983_v54  ;;  %936 = vmatprep.subr.mxu0 %v843_v58  ;;  %v1011_v58 = vld [vmem:[%s3003_s17 + $0x90] sm:$0xff] }
 0x25d   :  { %v620_v60 = vsel %vm609_vm2, %v618_v59, -inf }
 0x25e   :  { %621 = vmax.xlane.f32.xlu0 %v620_v60  ;;  %v615_v61 = vpop.xlane.xlu1 %614  ;;  %v841_v60 = vld [vmem:[%s3002_s15 + $0x28] sm:$0xff] }
 0x25f   :  { %vm617_vm4 = vcmp.ge.f32.partialorder %v1985_v55, %v615_v61  ;;  %v840_v61 = vld [vmem:[%s3002_s15 + $0x20] sm:$0xff] }
 0x260   :  { %v619_v62 = vsel %vm617_vm4, -1e+30, %v1985_v55 }
 0x261   :  { %v623_v63 = vsel %vm609_vm2, %v619_v62, -inf }
 0x262   :  { %624 = vmax.xlane.f32.xlu1 %v623_v63  ;;  %v838_v63 = vld [vmem:[%s3002_s15 + $0x10] sm:$0xff] }
 0x2e7   :  { %v622_v5 = vpop.xlane.xlu0 %621 }
 0x2e8   :  { %vm626_vm5 = vcmp.ge.f32.partialorder %v618_v59, %v622_v5  ;;  %v897_v5 = vld [vmem:[%s3002_s15 + $0x1e8] sm:$0xff] }
 0x2e9   :  { %v628_v6 = vsel %vm626_vm5, -1e+30, %v618_v59  ;;  %v842_v59 = vld [vmem:[%s3002_s15 + $0x30] sm:$0xff] }
 0x2ea   :  { %v630_v7 = vsel %vm609_vm2, %v628_v6, -inf  ;;  %937 = vmatpush1.msra.mxu0 %v842_v59  ;;  %v1010_v59 = vld [vmem:[%s3003_s17 + $0x88] sm:$0xff] }
 0x2eb   :  { %631 = vmax.xlane.f32.xlu1 %v630_v7  ;;  %v625_v8 = vpop.xlane.xlu1 %624  ;;  %938 = vmatprep.subr.mxu0 %v841_v60  ;;  %v895_v7 = vld [vmem:[%s3002_s15 + $0x1d8] sm:$0xff]  ;;  %v1009_v60 = vld [vmem:[%s3003_s17 + $0x80] sm:$0xff] }
 0x2ec   :  { %vm627_vm6 = vcmp.ge.f32.partialorder %v619_v62, %v625_v8  ;;  %939 = vmatpush1.msra.mxu0 %v840_v61  ;;  %v894_v8 = vld [vmem:[%s3002_s15 + $0x1d0] sm:$0xff]  ;;  %v1008_v61 = vld [vmem:[%s3003_s17 + $0x78] sm:$0xff] }
 0x2ed   :  { %v629_v9 = vsel %vm627_vm6, -1e+30, %v619_v62  ;;  %v839_v62 = vld [vmem:[%s3002_s15 + $0x18] sm:$0xff] }
 0x2ee   :  { %v633_v10 = vsel %vm609_vm2, %v629_v9, -inf  ;;  %940 = vmatprep.subr.mxu0 %v839_v62  ;;  %v1007_v62 = vld [vmem:[%s3003_s17 + $0x70] sm:$0xff] }
 0x2ef   :  { %634 = vmax.xlane.f32.xlu1 %v633_v10  ;;  %941 = vmatpush1.msra.mxu0 %v838_v63  ;;  %v892_v10 = vld [vmem:[%s3002_s15 + $0x1c0] sm:$0xff]  ;;  %v1006_v63 = vld [vmem:[%s3003_s17 + $0x68] sm:$0xff] }
 0x2f0   :  { %942 = vmatprep.subr.mxu0 %v837_v0  ;;  %v1005_v0 = vld [vmem:[%s3003_s17 + $0x60] sm:$0xff] }
 0x2f1   :  { %943 = vmatpush1.msra.mxu0 %v836_v1  ;;  %v1004_v1 = vld [vmem:[%s3003_s17 + $0x58] sm:$0xff] }
 0x2f2   :  { %944 = vmatprep.subr.mxu0 %v899_v2  ;;  %v1003_v2 = vld [vmem:[%s3003_s17 + $0x50] sm:$0xff] }
 0x2f3   :  { %945 = vmatpush2.msra.mxu0 %v898_v3  ;;  %v1002_v3 = vld [vmem:[%s3003_s17 + $0x48] sm:$0xff] }
 0x2f4   :  { %946 = vmatprep.subr.mxu0 %v897_v5  ;;  %v1001_v5 = vld [vmem:[%s3003_s17 + $0x40] sm:$0xff] }
 0x374   :  { %v632_v26 = vpop.xlane.xlu1 %631 }
 0x375   :  { %vm636_vm7 = vcmp.ge.f32.partialorder %v628_v6, %v632_v26  ;;  %v882_v26 = vld [vmem:[%s3002_s15 + $0x170] sm:$0xff] }
 0x376   :  { %v638_v27 = vsel %vm636_vm7, -1e+30, %v628_v6  ;;  %v896_v6 = vld [vmem:[%s3002_s15 + $0x1e0] sm:$0xff] }
 0x377   :  { %v640_v28 = vsel %vm609_vm2, %v638_v27, -inf  ;;  %947 = vmatpush2.msra.mxu0 %v896_v6  ;;  %v881_v27 = vld [vmem:[%s3002_s15 + $0x168] sm:$0xff]  ;;  %v1000_v6 = vld [vmem:[%s3003_s17 + $0x38] sm:$0xff] }
 0x378   :  { %641 = vmax.xlane.f32.xlu1 %v640_v28  ;;  %v635_v29 = vpop.xlane.xlu1 %634  ;;  %948 = vmatprep.subr.mxu0 %v895_v7  ;;  %v880_v28 = vld [vmem:[%s3002_s15 + $0x160] sm:$0xff]  ;;  %v999_v7 = vld [vmem:[%s3003_s17 + $0x30] sm:$0xff] }
 0x379   :  { %vm637_vm8 = vcmp.ge.f32.partialorder %v629_v9, %v635_v29  ;;  %949 = vmatpush2.msra.mxu0 %v894_v8  ;;  %v879_v29 = vld [vmem:[%s3002_s15 + $0x158] sm:$0xff]  ;;  %v998_v8 = vld [vmem:[%s3003_s17 + $0x28] sm:$0xff] }
 0x37a   :  { %v639_v30 = vsel %vm637_vm8, -1e+30, %v629_v9  ;;  %v893_v9 = vld [vmem:[%s3002_s15 + $0x1c8] sm:$0xff] }
 0x37b   :  { %v643_v31 = vsel %vm609_vm2, %v639_v30, -inf  ;;  %950 = vmatprep.subr.mxu0 %v893_v9  ;;  %v878_v30 = vld [vmem:[%s3002_s15 + $0x150] sm:$0xff]  ;;  %v997_v9 = vld [vmem:[%s3003_s17 + $0x20] sm:$0xff] }
 0x37c   :  { %644 = vmax.xlane.f32.xlu1 %v643_v31  ;;  %951 = vmatpush2.msra.mxu0 %v892_v10  ;;  %v877_v31 = vld [vmem:[%s3002_s15 + $0x148] sm:$0xff]  ;;  %v996_v10 = vld [vmem:[%s3003_s17 + $0x18] sm:$0xff] }
 0x37d   :  { %952 = vmatprep.subr.mxu0 %v891_v11  ;;  %v995_v11 = vld [vmem:[%s3003_s17 + $0x10] sm:$0xff] }
 0x37e   :  { %953 = vmatpush2.msra.mxu0 %v890_v12  ;;  %v994_v12 = vld [vmem:[%s3003_s17 + $0x8] sm:$0xff] }
 0x37f   :  { %954 = vmatprep.subr.mxu0 %v889_v14  ;;  %v993_v14 = vld [vmem:[%s3003_s17] sm:$0xff] }
 0x380   :  { %955 = vmatpush2.msra.mxu0 %v888_v16  ;;  %v1056_v16 = vld [vmem:[%s3003_s17 + $0x1f8] sm:$0xff] }
 0x381   :  { %956 = vmatprep.subr.mxu0 %v887_v17  ;;  %v1055_v17 = vld [vmem:[%s3003_s17 + $0x1f0] sm:$0xff] }
 0x382   :  { %957 = vmatpush2.msra.mxu0 %v886_v18  ;;  %v1054_v18 = vld [vmem:[%s3003_s17 + $0x1e8] sm:$0xff] }
 0x383   :  { %958 = vmatprep.subr.mxu0 %v885_v19  ;;  %v1053_v19 = vld [vmem:[%s3003_s17 + $0x1e0] sm:$0xff] }
 0x384   :  { %959 = vmatpush2.msra.mxu0 %v884_v20  ;;  %v1052_v20 = vld [vmem:[%s3003_s17 + $0x1d8] sm:$0xff] }
 0x385   :  { %960 = vmatprep.subr.mxu0 %v883_v22  ;;  %v1051_v22 = vld [vmem:[%s3003_s17 + $0x1d0] sm:$0xff] }
 0x386   :  { %961 = vmatpush2.msra.mxu0 %v882_v26  ;;  %v1050_v26 = vld [vmem:[%s3003_s17 + $0x1c8] sm:$0xff] }
 0x387   :  { %962 = vmatprep.subr.mxu0 %v881_v27  ;;  %v1049_v27 = vld [vmem:[%s3003_s17 + $0x1c0] sm:$0xff] }
 0x388   :  { %963 = vmatpush2.msra.mxu0 %v880_v28  ;;  %v1048_v28 = vld [vmem:[%s3003_s17 + $0x1b8] sm:$0xff] }
 0x389   :  { %964 = vmatprep.subr.mxu0 %v879_v29  ;;  %v1047_v29 = vld [vmem:[%s3003_s17 + $0x1b0] sm:$0xff] }
 0x38a   :  { %965 = vmatpush2.msra.mxu0 %v878_v30  ;;  %v1046_v30 = vld [vmem:[%s3003_s17 + $0x1a8] sm:$0xff] }
 0x38b   :  { %966 = vmatprep.subr.mxu0 %v877_v31  ;;  %v1045_v31 = vld [vmem:[%s3003_s17 + $0x1a0] sm:$0xff] }
 0x38c   :  { %967 = vmatpush2.msra.mxu0 %v876_v32  ;;  %v1044_v32 = vld [vmem:[%s3003_s17 + $0x198] sm:$0xff] }
 0x38d   :  { %968 = vmatprep.subr.mxu0 %v875_v33  ;;  %v1043_v33 = vld [vmem:[%s3003_s17 + $0x190] sm:$0xff] }
 0x38e   :  { %969 = vmatpush2.msra.mxu0 %v874_v34  ;;  %v1042_v34 = vld [vmem:[%s3003_s17 + $0x188] sm:$0xff] }
 0x38f   :  { %970 = vmatprep.subr.mxu0 %v873_v39  ;;  %v1039_v39 = vld [vmem:[%s3003_s17 + $0x170] sm:$0xff] }
 0x401   :  { %v642_v35 = vpop.xlane.xlu1 %641 }
 0x402   :  { %vm646_vm9 = vcmp.ge.f32.partialorder %v1983_v54, %v642_v35  ;;  %v1041_v35 = vld [vmem:[%s3003_s17 + $0x180] sm:$0xff] }
 0x403   :  { %v2213_v36 = vsel %vm646_vm9, %v1983_v54, 0.0  ;;  %v872_v54 = vld [vmem:[%s3002_s15 + $0x120] sm:$0xff] }
 0x404   :  { %1682 = vmatmul.mubr.msk.f32.vlgmr.msra.gmra.mxu1 %vm609_vm2, %v2213_v36  ;;  %971 = vmatpush2.msra.mxu0 %v872_v54  ;;  %v1038_v54 = vld [vmem:[%s3003_s17 + $0x168] sm:$0xff] }
 0x405   :  { %v645_v37 = vpop.xlane.xlu1 %644  ;;  %825 = vmatprep.mubr.f32.mxu1 %v1793_v4  ;;  %972 = vmatprep.subr.mxu0 %v871_v40  ;;  %v1037_v40 = vld [vmem:[%s3003_s17 + $0x160] sm:$0xff] }
 0x406   :  { %vm647_vm10 = vcmp.ge.f32.partialorder %v1985_v55, %v645_v37  ;;  %1070 = vmatpush1.msra.mxu1 %v1023_v44  ;;  %v1040_v37 = vld [vmem:[%s3003_s17 + $0x178] sm:$0xff] }
 0x407   :  { %v2220_v38 = vsel %vm647_vm10, %v1985_v55, 0.0  ;;  %v870_v55 = vld [vmem:[%s3002_s15 + $0x110] sm:$0xff]  ;;  %1071 = vmatprep.subr.mxu1 %v1022_v45 }
 0x408   :  { %1683 = vmatmul.mubr.msk.f32.gmra.mxu1 %vm609_vm2, %v2220_v38  ;;  %973 = vmatpush2.msra.mxu0 %v870_v55  ;;  %v1036_v55 = vld [vmem:[%s3003_s17 + $0x158] sm:$0xff] }
 0x409   :  { %974 = vmatprep.subr.mxu0 %v869_v41  ;;  %1072 = vmatpush1.msra.mxu1 %v1021_v46  ;;  %v1035_v41 = vld [vmem:[%s3003_s17 + $0x150] sm:$0xff] }
 0x40a   :  { %975 = vmatpush2.msra.mxu0 %v868_v42  ;;  %1073 = vmatprep.subr.mxu1 %v1020_v47  ;;  %v1034_v42 = vld [vmem:[%s3003_s17 + $0x148] sm:$0xff] }
 0x40b   :  { %1074 = vmatpush1.msra.mxu1 %v1019_v48 }
 0x40c   :  { %1075 = vmatprep.subr.mxu1 %v1018_v49 }
 0x40d   :  { %1076 = vmatpush1.msra.mxu1 %v1017_v50 }
 0x40e   :  { %1077 = vmatprep.subr.mxu1 %v1016_v51 }
 0x40f   :  { %1078 = vmatpush1.msra.mxu1 %v1015_v52  ;;  %v1032_v52 = vld [vmem:[%s3003_s17 + $0x138] sm:$0xff] }
 0x410   :  { %1079 = vmatprep.subr.mxu1 %v1014_v53  ;;  %v1031_v53 = vld [vmem:[%s3003_s17 + $0x130] sm:$0xff] }
 0x411   :  { %1080 = vmatpush1.msra.mxu1 %v1013_v56  ;;  %v1030_v56 = vld [vmem:[%s3003_s17 + $0x128] sm:$0xff] }
 0x412   :  { %1081 = vmatprep.subr.mxu1 %v1012_v57  ;;  %v1029_v57 = vld [vmem:[%s3003_s17 + $0x120] sm:$0xff] }
 0x413   :  { %1082 = vmatpush1.msra.mxu1 %v1011_v58  ;;  %v1028_v58 = vld [vmem:[%s3003_s17 + $0x118] sm:$0xff] }
 0x414   :  { %1083 = vmatprep.subr.mxu1 %v1010_v59  ;;  %v1027_v59 = vld [vmem:[%s3003_s17 + $0x110] sm:$0xff] }
 0x415   :  { %1084 = vmatpush1.msra.mxu1 %v1009_v60  ;;  %v1026_v60 = vld [vmem:[%s3003_s17 + $0x108] sm:$0xff] }
 0x416   :  { %1085 = vmatprep.subr.mxu1 %v1008_v61  ;;  %v1025_v61 = vld [vmem:[%s3003_s17 + $0x100] sm:$0xff] }
 0x417   :  { %1086 = vmatpush1.msra.mxu1 %v1007_v62  ;;  %v900_v62 = vld [vmem:[%s3004_s16] sm:$0x3] }
 0x418   :  { %1087 = vmatprep.subr.mxu1 %v1006_v63  ;;  %v905_v63 = vrot.slane %v900_v62, %v2014_v13 }
 0x419   :  { %1088 = vmatpush1.msra.mxu1 %v1005_v0  ;;  %v909_v0 = vrot.slane %v900_v62, %v2019_v15  ;;  %v1286_v62 = vld [vmem:[%s3005_s19 + $0x1b8] sm:$0xff] }
 0x41a   :  { %1089 = vmatprep.subr.mxu1 %v1004_v1 }
 0x41b   :  { %1090 = vmatpush1.msra.mxu1 %v1003_v2 }
 0x41c   :  { %1091 = vmatprep.subr.mxu1 %v1002_v3 }
 0x41d   :  { %1092 = vmatpush1.msra.mxu1 %v1001_v5 }
 0x41e   :  { %1093 = vmatprep.subr.mxu1 %v1000_v6 }
 0x41f   :  { %1094 = vmatpush1.msra.mxu1 %v999_v7 }
 0x420   :  { %1095 = vmatprep.subr.mxu1 %v998_v8 }
 0x421   :  { %1096 = vmatpush1.msra.mxu1 %v997_v9 }
 0x422   :  { %1097 = vmatprep.subr.mxu1 %v996_v10 }
 0x423   :  { %1098 = vmatpush1.msra.mxu1 %v995_v11 }
 0x424   :  { %1099 = vmatprep.subr.mxu1 %v994_v12 }
 0x425   :  { %1100 = vmatpush1.msra.mxu1 %v993_v14 }
 0x426   :  { %1101 = vmatprep.subr.mxu1 %v1056_v16  ;;  %v1262_v16 = vld [vmem:[%s3005_s19 + $0xf8] sm:$0xff] }
 0x427   :  { %1102 = vmatpush2.msra.mxu1 %v1055_v17  ;;  %v1261_v17 = vld [vmem:[%s3005_s19 + $0xf0] sm:$0xff] }
 0x428   :  { %1103 = vmatprep.subr.mxu1 %v1054_v18  ;;  %v1260_v18 = vld [vmem:[%s3005_s19 + $0xe8] sm:$0xff] }
 0x429   :  { %1104 = vmatpush2.msra.mxu1 %v1053_v19  ;;  %v1259_v19 = vld [vmem:[%s3005_s19 + $0xe0] sm:$0xff] }
 0x42a   :  { %1105 = vmatprep.subr.mxu1 %v1052_v20  ;;  %v1258_v20 = vld [vmem:[%s3005_s19 + $0xd8] sm:$0xff] }
 0x42b   :  { %1106 = vmatpush2.msra.mxu1 %v1051_v22  ;;  %v1257_v22 = vld [vmem:[%s3005_s19 + $0xd0] sm:$0xff] }
 0x42c   :  { %1107 = vmatprep.subr.mxu1 %v1050_v26  ;;  %v1256_v26 = vld [vmem:[%s3005_s19 + $0xc8] sm:$0xff] }
 0x42d   :  { %1108 = vmatpush2.msra.mxu1 %v1049_v27  ;;  %v1255_v27 = vld [vmem:[%s3005_s19 + $0xc0] sm:$0xff] }
 0x42e   :  { %1109 = vmatprep.subr.mxu1 %v1048_v28  ;;  %v1254_v28 = vld [vmem:[%s3005_s19 + $0xb8] sm:$0xff] }
 0x42f   :  { %1110 = vmatpush2.msra.mxu1 %v1047_v29  ;;  %v1253_v29 = vld [vmem:[%s3005_s19 + $0xb0] sm:$0xff] }
 0x430   :  { %1111 = vmatprep.subr.mxu1 %v1046_v30  ;;  %v1252_v30 = vld [vmem:[%s3005_s19 + $0xa8] sm:$0xff] }
 0x431   :  { %1112 = vmatpush2.msra.mxu1 %v1045_v31  ;;  %v1251_v31 = vld [vmem:[%s3005_s19 + $0xa0] sm:$0xff] }
 0x432   :  { %1113 = vmatprep.subr.mxu1 %v1044_v32  ;;  %v1250_v32 = vld [vmem:[%s3005_s19 + $0x98] sm:$0xff] }
 0x433   :  { %1114 = vmatpush2.msra.mxu1 %v1043_v33  ;;  %v1249_v33 = vld [vmem:[%s3005_s19 + $0x90] sm:$0xff] }
 0x434   :  { %1115 = vmatprep.subr.mxu1 %v1042_v34  ;;  %v1248_v34 = vld [vmem:[%s3005_s19 + $0x88] sm:$0xff] }
 0x435   :  { %1116 = vmatpush2.msra.mxu1 %v1041_v35  ;;  %v1247_v35 = vld [vmem:[%s3005_s19 + $0x80] sm:$0xff] }
 0x436   :  { %1117 = vmatprep.subr.mxu1 %v1040_v37  ;;  %v1246_v37 = vld [vmem:[%s3005_s19 + $0x78] sm:$0xff] }
 0x437   :  { %1118 = vmatpush2.msra.mxu1 %v1039_v39  ;;  %v1245_v39 = vld [vmem:[%s3005_s19 + $0x70] sm:$0xff] }
 0x438   :  { %1119 = vmatprep.subr.mxu1 %v1038_v54  ;;  %v1244_v54 = vld [vmem:[%s3005_s19 + $0x68] sm:$0xff] }
 0x439   :  { %1120 = vmatpush2.msra.mxu1 %v1037_v40  ;;  %v1243_v40 = vld [vmem:[%s3005_s19 + $0x60] sm:$0xff] }
 0x43a   :  { %1121 = vmatprep.subr.mxu1 %v1036_v55  ;;  %v1242_v55 = vld [vmem:[%s3005_s19 + $0x58] sm:$0xff] }
 0x43b   :  { %1122 = vmatpush2.msra.mxu1 %v1035_v41  ;;  %v1241_v41 = vld [vmem:[%s3005_s19 + $0x50] sm:$0xff] }
 0x43c   :  { %1123 = vmatprep.subr.mxu1 %v1034_v42  ;;  %v1240_v42 = vld [vmem:[%s3005_s19 + $0x48] sm:$0xff] }
 0x43d   :  { %1124 = vmatpush2.msra.mxu1 %v1033_v43  ;;  %v1239_v43 = vld [vmem:[%s3005_s19 + $0x40] sm:$0xff] }
 0x43e   :  { %1125 = vmatprep.subr.mxu1 %v1032_v52  ;;  %v1294_v52 = vld [vmem:[%s3005_s19 + $0x1f8] sm:$0xff] }
 0x43f   :  { %1126 = vmatpush2.msra.mxu1 %v1031_v53  ;;  %v1293_v53 = vld [vmem:[%s3005_s19 + $0x1f0] sm:$0xff] }
 0x440   :  { %1127 = vmatprep.subr.mxu1 %v1030_v56  ;;  %v1292_v56 = vld [vmem:[%s3005_s19 + $0x1e8] sm:$0xff] }
 0x441   :  { %1128 = vmatpush2.msra.mxu1 %v1029_v57  ;;  %v1291_v57 = vld [vmem:[%s3005_s19 + $0x1e0] sm:$0xff] }
 0x442   :  { %1129 = vmatprep.subr.mxu1 %v1028_v58  ;;  %v1290_v58 = vld [vmem:[%s3005_s19 + $0x1d8] sm:$0xff] }
 0x443   :  { %1130 = vmatpush2.msra.mxu1 %v1027_v59  ;;  %v1289_v59 = vld [vmem:[%s3005_s19 + $0x1d0] sm:$0xff] }
 0x444   :  { %1131 = vmatprep.subr.mxu1 %v1026_v60  ;;  %v1288_v60 = vld [vmem:[%s3005_s19 + $0x1c8] sm:$0xff] }
 0x445   :  { %1132 = vmatpush2.msra.mxu1 %v1025_v61  ;;  %v1287_v61 = vld [vmem:[%s3005_s19 + $0x1c0] sm:$0xff] }
 0x446   :  { %1307 = vmatprep.subr.mxu1 %v1262_v16  ;;  %v1271_v16 = vld [vmem:[%s3005_s19 + $0x140] sm:$0xff] }
 0x4c4   :  { %v821_v44 = vpop.f32.mrf.mxu1 }
 0x4c5   :  { %v832_v47 = vadd.f32 %v821_v44, %v2029_v25  ;;  %v1238_v44 = vld [vmem:[%s3005_s19 + $0x38] sm:$0xff] }
 0x4c6   :  { %v823_v45 = vpop.f32.mrf.mxu1 }
 0x4c7   :  { %v833_v46 = vadd.f32 %v823_v45, %v2025_v23  ;;  %v1237_v45 = vld [vmem:[%s3005_s19 + $0x30] sm:$0xff] }
 0x4c8   :  { %v827_v48 = vpop.f32.mrf.mxu1 }
 0x4c9   :  { %976 = vmatprep.mubr.f32.mxu0 %v833_v46  ;;  %v834_v51 = vadd.f32 %v827_v48, %v2023_v21  ;;  %v1236_v46 = vld [vmem:[%s3005_s19 + $0x28] sm:$0xff]  ;;  %v1234_v48 = vld [vmem:[%s3005_s19 + $0x18] sm:$0xff] }
 0x4ca   :  { %v829_v49 = vpop.f32.mrf.mxu1  ;;  %977 = vmatmul.mubr.f32.vlgmr.msra.gmra.mxu0 %v832_v47  ;;  %v1235_v47 = vld [vmem:[%s3005_s19 + $0x20] sm:$0xff] }
 0x4cb   :  { %v835_v50 = vadd.f32 %v829_v49, %v2027_v24  ;;  %v1233_v49 = vld [vmem:[%s3005_s19 + $0x10] sm:$0xff] }
 0x4cd   :  { %982 = vmatprep.mubr.f32.mxu0 %v835_v50  ;;  %v1232_v50 = vld [vmem:[%s3005_s19 + $0x8] sm:$0xff] }
 0x4ce   :  { %983 = vmatmul.mubr.f32.gmra.mxu0 %v834_v51  ;;  %v1231_v51 = vld [vmem:[%s3005_s19] sm:$0xff] }
 0x4cf   :  { %1214 = vmatprep.mubr.f32.mxu0 %v1793_v4 }
 0x58a   :  { %v978_v1 = vpop.f32.mrf.mxu0 }
 0x58b   :  { %v979_v2 = vadd.f32 %v978_v1, %v905_v63  ;;  %v1283_v1 = vld [vmem:[%s3005_s19 + $0x1a0] sm:$0xff] }
 0x58c   :  { %v980_v3 = vpop.f32.mrf.mxu0 }
 0x58d   :  { %v981_v5 = vadd.f32 %v980_v3, %v909_v0  ;;  %v989_v8 = vmax.f32 %v979_v2, 0.0  ;;  %v1282_v2 = vld [vmem:[%s3005_s19 + $0x198] sm:$0xff]  ;;  %v1281_v3 = vld [vmem:[%s3005_s19 + $0x190] sm:$0xff] }
 0x58e   :  { %v984_v6 = vpop.f32.mrf.mxu0 }
 0x58f   :  { %v990_v7 = vmax.f32 %v981_v5, 0.0  ;;  %v985_v9 = vadd.f32 %v984_v6, %v905_v63  ;;  %v1285_v63 = vld [vmem:[%s3005_s19 + $0x1b0] sm:$0xff]  ;;  %v1280_v5 = vld [vmem:[%s3005_s19 + $0x188] sm:$0xff]  ;;  %v1279_v6 = vld [vmem:[%s3005_s19 + $0x180] sm:$0xff] }
 0x590   :  { %v986_v10 = vpop.f32.mrf.mxu0 }
 0x591   :  { %v987_v11 = vadd.f32 %v986_v10, %v909_v0  ;;  %1133 = vmatprep.mubr.f32.mxu1 %v990_v7  ;;  %v991_v14 = vmax.f32 %v985_v9, 0.0  ;;  %v1284_v0 = vld [vmem:[%s3005_s19 + $0x1a8] sm:$0xff]  ;;  %v1278_v7 = vld [vmem:[%s3005_s19 + $0x178] sm:$0xff]  ;;  %v1275_v10 = vld [vmem:[%s3005_s19 + $0x160] sm:$0xff] }
 0x592   :  { %1134 = vmatmul.mubr.f32.vlgmr.msra.gmra.mxu1 %v989_v8  ;;  %v1277_v8 = vld [vmem:[%s3005_s19 + $0x170] sm:$0xff]  ;;  %v1276_v9 = vld [vmem:[%s3005_s19 + $0x168] sm:$0xff] }
 0x593   :  { %v992_v12 = vmax.f32 %v987_v11, 0.0  ;;  %1308 = vmatpush1.msra.mxu1 %v1261_v17  ;;  %v1274_v11 = vld [vmem:[%s3005_s19 + $0x158] sm:$0xff] }
 0x594   :  { %1309 = vmatprep.subr.mxu1 %v1260_v18  ;;  %v1270_v17 = vld [vmem:[%s3005_s19 + $0x138] sm:$0xff]  ;;  %v1269_v18 = vld [vmem:[%s3005_s19 + $0x130] sm:$0xff] }
 0x595   :  { %1139 = vmatprep.mubr.f32.mxu1 %v992_v12  ;;  %1310 = vmatpush1.msra.mxu1 %v1259_v19  ;;  %v1273_v12 = vld [vmem:[%s3005_s19 + $0x150] sm:$0xff] }
 0x596   :  { %1140 = vmatmul.mubr.f32.gmra.mxu1 %v991_v14  ;;  %1311 = vmatprep.subr.mxu1 %v1258_v20  ;;  %v1272_v14 = vld [vmem:[%s3005_s19 + $0x148] sm:$0xff]  ;;  %v1057_v20 = vld [vmem:[%s3006_s18] sm:$0x3] }
 0x597   :  { %1312 = vmatpush1.msra.mxu1 %v1257_v22 }
 0x598   :  { %1313 = vmatprep.subr.mxu1 %v1256_v26  ;;  %v1066_v26 = vrot.slane %v1057_v20, %v2019_v15 }
 0x599   :  { %1314 = vmatpush1.msra.mxu1 %v1255_v27  ;;  %v1062_v27 = vrot.slane %v1057_v20, %v2014_v13  ;;  %v1445_v20 = vld [vmem:[%s3007_s21 + $0x1c8] sm:$0xff] }
 0x59a   :  { %1315 = vmatprep.subr.mxu1 %v1254_v28 }
 0x59b   :  { %1316 = vmatpush1.msra.mxu1 %v1253_v29 }
 0x59c   :  { %1317 = vmatprep.subr.mxu1 %v1252_v30 }
 0x59d   :  { %1318 = vmatpush1.msra.mxu1 %v1251_v31 }
 0x59e   :  { %1319 = vmatprep.subr.mxu1 %v1250_v32 }
 0x59f   :  { %1320 = vmatpush1.msra.mxu1 %v1249_v33 }
 0x5a0   :  { %1321 = vmatprep.subr.mxu1 %v1248_v34 }
 0x5a1   :  { %1322 = vmatpush1.msra.mxu1 %v1247_v35 }
 0x5a2   :  { %1323 = vmatprep.subr.mxu1 %v1246_v37 }
 0x5a3   :  { %1324 = vmatpush1.msra.mxu1 %v1245_v39 }
 0x5a4   :  { %1325 = vmatprep.subr.mxu1 %v1244_v54  ;;  %v1268_v54 = vld [vmem:[%s3005_s19 + $0x128] sm:$0xff] }
 0x5a5   :  { %1326 = vmatpush1.msra.mxu1 %v1243_v40  ;;  %v1267_v40 = vld [vmem:[%s3005_s19 + $0x120] sm:$0xff] }
 0x5a6   :  { %1327 = vmatprep.subr.mxu1 %v1242_v55  ;;  %v1266_v55 = vld [vmem:[%s3005_s19 + $0x118] sm:$0xff] }
 0x5a7   :  { %1328 = vmatpush1.msra.mxu1 %v1241_v41  ;;  %v1419_v41 = vld [vmem:[%s3007_s21 + $0xf8] sm:$0xff] }
 0x5a8   :  { %1329 = vmatprep.subr.mxu1 %v1240_v42  ;;  %v1418_v42 = vld [vmem:[%s3007_s21 + $0xf0] sm:$0xff] }
 0x5a9   :  { %1330 = vmatpush1.msra.mxu1 %v1239_v43  ;;  %v1417_v43 = vld [vmem:[%s3007_s21 + $0xe8] sm:$0xff] }
 0x5aa   :  { %1331 = vmatprep.subr.mxu1 %v1238_v44  ;;  %v1416_v44 = vld [vmem:[%s3007_s21 + $0xe0] sm:$0xff] }
 0x5ab   :  { %1332 = vmatpush1.msra.mxu1 %v1237_v45  ;;  %v1415_v45 = vld [vmem:[%s3007_s21 + $0xd8] sm:$0xff] }
 0x5ac   :  { %1333 = vmatprep.subr.mxu1 %v1236_v46  ;;  %v1414_v46 = vld [vmem:[%s3007_s21 + $0xd0] sm:$0xff] }
 0x5ad   :  { %1334 = vmatpush1.msra.mxu1 %v1235_v47  ;;  %v1413_v47 = vld [vmem:[%s3007_s21 + $0xc8] sm:$0xff] }
 0x5ae   :  { %1335 = vmatprep.subr.mxu1 %v1234_v48  ;;  %v1412_v48 = vld [vmem:[%s3007_s21 + $0xc0] sm:$0xff] }
 0x5af   :  { %1336 = vmatpush1.msra.mxu1 %v1233_v49  ;;  %v1411_v49 = vld [vmem:[%s3007_s21 + $0xb8] sm:$0xff] }
 0x5b0   :  { %1337 = vmatprep.subr.mxu1 %v1232_v50  ;;  %v1410_v50 = vld [vmem:[%s3007_s21 + $0xb0] sm:$0xff] }
 0x5b1   :  { %1338 = vmatpush1.msra.mxu1 %v1231_v51  ;;  %v1409_v51 = vld [vmem:[%s3007_s21 + $0xa8] sm:$0xff] }
 0x5b2   :  { %1339 = vmatprep.subr.mxu1 %v1294_v52  ;;  %v1408_v52 = vld [vmem:[%s3007_s21 + $0xa0] sm:$0xff] }
 0x5b3   :  { %1340 = vmatpush2.msra.mxu1 %v1293_v53  ;;  %v1407_v53 = vld [vmem:[%s3007_s21 + $0x98] sm:$0xff] }
 0x5b4   :  { %1341 = vmatprep.subr.mxu1 %v1292_v56  ;;  %v1406_v56 = vld [vmem:[%s3007_s21 + $0x90] sm:$0xff] }
 0x5b5   :  { %1342 = vmatpush2.msra.mxu1 %v1291_v57  ;;  %v1405_v57 = vld [vmem:[%s3007_s21 + $0x88] sm:$0xff] }
 0x5b6   :  { %1343 = vmatprep.subr.mxu1 %v1290_v58  ;;  %v1404_v58 = vld [vmem:[%s3007_s21 + $0x80] sm:$0xff] }
 0x5b7   :  { %1344 = vmatpush2.msra.mxu1 %v1289_v59  ;;  %v1403_v59 = vld [vmem:[%s3007_s21 + $0x78] sm:$0xff] }
 0x5b8   :  { %1345 = vmatprep.subr.mxu1 %v1288_v60  ;;  %v1402_v60 = vld [vmem:[%s3007_s21 + $0x70] sm:$0xff] }
 0x5b9   :  { %1346 = vmatpush2.msra.mxu1 %v1287_v61  ;;  %v1401_v61 = vld [vmem:[%s3007_s21 + $0x68] sm:$0xff] }
 0x5ba   :  { %1347 = vmatprep.subr.mxu1 %v1286_v62  ;;  %v1400_v62 = vld [vmem:[%s3007_s21 + $0x60] sm:$0xff] }
 0x5bb   :  { %1348 = vmatpush2.msra.mxu1 %v1285_v63  ;;  %v1399_v63 = vld [vmem:[%s3007_s21 + $0x58] sm:$0xff] }
 0x5bc   :  { %1349 = vmatprep.subr.mxu1 %v1284_v0  ;;  %v1398_v0 = vld [vmem:[%s3007_s21 + $0x50] sm:$0xff] }
 0x5bd   :  { %1350 = vmatpush2.msra.mxu1 %v1283_v1  ;;  %v1397_v1 = vld [vmem:[%s3007_s21 + $0x48] sm:$0xff] }
 0x5be   :  { %1351 = vmatprep.subr.mxu1 %v1282_v2  ;;  %v1396_v2 = vld [vmem:[%s3007_s21 + $0x40] sm:$0xff] }
 0x5bf   :  { %1352 = vmatpush2.msra.mxu1 %v1281_v3  ;;  %v1395_v3 = vld [vmem:[%s3007_s21 + $0x38] sm:$0xff] }
 0x5c0   :  { %1353 = vmatprep.subr.mxu1 %v1280_v5  ;;  %v1394_v5 = vld [vmem:[%s3007_s21 + $0x30] sm:$0xff] }
 0x5c1   :  { %1354 = vmatpush2.msra.mxu1 %v1279_v6  ;;  %v1393_v6 = vld [vmem:[%s3007_s21 + $0x28] sm:$0xff] }
 0x5c2   :  { %1355 = vmatprep.subr.mxu1 %v1278_v7  ;;  %v1392_v7 = vld [vmem:[%s3007_s21 + $0x20] sm:$0xff] }
 0x5c3   :  { %1356 = vmatpush2.msra.mxu1 %v1277_v8  ;;  %v1391_v8 = vld [vmem:[%s3007_s21 + $0x18] sm:$0xff] }
 0x5c4   :  { %1357 = vmatprep.subr.mxu1 %v1276_v9  ;;  %v1390_v9 = vld [vmem:[%s3007_s21 + $0x10] sm:$0xff] }
 0x5c5   :  { %1358 = vmatpush2.msra.mxu1 %v1275_v10  ;;  %v1389_v10 = vld [vmem:[%s3007_s21 + $0x8] sm:$0xff] }
 0x5c6   :  { %1359 = vmatprep.subr.mxu1 %v1274_v11  ;;  %v1388_v11 = vld [vmem:[%s3007_s21] sm:$0xff] }
 0x5c7   :  { %1360 = vmatpush2.msra.mxu1 %v1273_v12  ;;  %v1451_v12 = vld [vmem:[%s3007_s21 + $0x1f8] sm:$0xff] }
 0x5c8   :  { %1361 = vmatprep.subr.mxu1 %v1272_v14  ;;  %v1450_v14 = vld [vmem:[%s3007_s21 + $0x1f0] sm:$0xff] }
 0x5c9   :  { %1362 = vmatpush2.msra.mxu1 %v1271_v16  ;;  %v1449_v16 = vld [vmem:[%s3007_s21 + $0x1e8] sm:$0xff] }
 0x5ca   :  { %1363 = vmatprep.subr.mxu1 %v1270_v17  ;;  %v1448_v17 = vld [vmem:[%s3007_s21 + $0x1e0] sm:$0xff] }
 0x5cb   :  { %1364 = vmatpush2.msra.mxu1 %v1269_v18  ;;  %v1447_v18 = vld [vmem:[%s3007_s21 + $0x1d8] sm:$0xff] }
 0x5cc   :  { %1365 = vmatprep.subr.mxu1 %v1268_v54  ;;  %v1439_v54 = vld [vmem:[%s3007_s21 + $0x198] sm:$0xff] }
 0x5cd   :  { %1366 = vmatpush2.msra.mxu1 %v1267_v40  ;;  %v1438_v40 = vld [vmem:[%s3007_s21 + $0x190] sm:$0xff] }
 0x5ce   :  { %1367 = vmatprep.subr.mxu1 %v1266_v55  ;;  %v1437_v55 = vld [vmem:[%s3007_s21 + $0x188] sm:$0xff] }
 0x652   :  { %v1135_v19 = vpop.f32.mrf.mxu1 }
 0x653   :  { %v2629_v33 = vadd.f32 %v1135_v19, %v1062_v27  ;;  %v1446_v19 = vld [vmem:[%s3007_s21 + $0x1d0] sm:$0xff] }
 0x654   :  { %v1137_v22 = vpop.f32.mrf.mxu1 }
 0x655   :  { %v2625_v31 = vadd.f32 %v1137_v22, %v1066_v26  ;;  %v1146_v39 = vmax.f32 %v2629_v33, 0.0  ;;  %v1444_v22 = vld [vmem:[%s3007_s21 + $0x1c0] sm:$0xff]  ;;  %v1426_v33 = vld [vmem:[%s3007_s21 + $0x130] sm:$0xff] }
 0x656   :  { %v1141_v28 = vpop.f32.mrf.mxu1 }
 0x657   :  { %v2623_v29 = vadd.f32 %v1141_v28, %v1062_v27  ;;  %v1147_v37 = vmax.f32 %v2625_v31, 0.0  ;;  %v1442_v27 = vld [vmem:[%s3007_s21 + $0x1b0] sm:$0xff]  ;;  %v1441_v28 = vld [vmem:[%s3007_s21 + $0x1a8] sm:$0xff]  ;;  %v1427_v31 = vld [vmem:[%s3007_s21 + $0x138] sm:$0xff] }
 0x658   :  { %v1143_v30 = vpop.f32.mrf.mxu1 }
 0x659   :  { %v2627_v32 = vadd.f32 %v1143_v30, %v1066_v26  ;;  %v1148_v35 = vmax.f32 %v2623_v29, 0.0  ;;  %v1443_v26 = vld [vmem:[%s3007_s21 + $0x1b8] sm:$0xff]  ;;  %v1440_v30 = vld [vmem:[%s3007_s21 + $0x1a0] sm:$0xff] }
 0x65a   :  { %v1424_v29 = vld [vmem:[%s3007_s21 + $0x120] sm:$0xff] }
 0x65b   :  { %v1149_v34 = vmax.f32 %v2627_v32, 0.0  ;;  %v1425_v32 = vld [vmem:[%s3007_s21 + $0x128] sm:$0xff] }
 0x65d   :  { %1178 = vmatprep.subr.mxu0 %v1149_v34 }
 0x65e   :  { %1179 = vmatpush1.msra.mxu0 %v1148_v35 }
 0x65f   :  { %1180 = vmatprep.subr.mxu0 %v1147_v37 }
 0x660   :  { %1181 = vmatpush1.msra.mxu0 %v1146_v39 }
 0x661   :  { %1684 = vmatmul.mubr.msk.f32.vlgmr.msra.gmra.mxu0 %vm609_vm2, %v2213_v36  ;;  %v1264_v36 = vld [vmem:[%s3005_s19 + $0x108] sm:$0xff]  ;;  %1464 = vmatprep.subr.mxu0 %v1419_v41 }
 0x662   :  { %1220 = vmatprep.mubr.f32.mxu0 %v1793_v4  ;;  %v1265_v4 = vld [vmem:[%s3005_s19 + $0x110] sm:$0xff]  ;;  %1465 = vmatpush1.msra.mxu0 %v1418_v42  ;;  %v1433_v41 = vld [vmem:[%s3007_s21 + $0x168] sm:$0xff]  ;;  %v1432_v42 = vld [vmem:[%s3007_s21 + $0x160] sm:$0xff] }
 0x663   :  { %1368 = vmatpush2.msra.mxu1 %v1265_v4  ;;  %1466 = vmatprep.subr.mxu0 %v1417_v43  ;;  %v1436_v4 = vld [vmem:[%s3007_s21 + $0x180] sm:$0xff]  ;;  %v1431_v43 = vld [vmem:[%s3007_s21 + $0x158] sm:$0xff] }
 0x664   :  { %1369 = vmatprep.subr.mxu1 %v1264_v36  ;;  %1467 = vmatpush1.msra.mxu0 %v1416_v44  ;;  %v1435_v36 = vld [vmem:[%s3007_s21 + $0x178] sm:$0xff]  ;;  %v1430_v44 = vld [vmem:[%s3007_s21 + $0x150] sm:$0xff] }
 0x665   :  { %1685 = vmatmul.mubr.msk.f32.gmra.mxu0 %vm609_vm2, %v2220_v38  ;;  %v1263_v38 = vld [vmem:[%s3005_s19 + $0x100] sm:$0xff]  ;;  %1468 = vmatprep.subr.mxu0 %v1415_v45  ;;  %v1429_v45 = vld [vmem:[%s3007_s21 + $0x148] sm:$0xff] }
 0x666   :  { %1370 = vmatpush2.msra.mxu1 %v1263_v38  ;;  %1469 = vmatpush1.msra.mxu0 %v1414_v46  ;;  %v1434_v38 = vld [vmem:[%s3007_s21 + $0x170] sm:$0xff]  ;;  %v1428_v46 = vld [vmem:[%s3007_s21 + $0x140] sm:$0xff] }
 0x667   :  { %1470 = vmatprep.subr.mxu0 %v1413_v47 }
 0x668   :  { %1471 = vmatpush1.msra.mxu0 %v1412_v48 }
 0x669   :  { %1472 = vmatprep.subr.mxu0 %v1411_v49 }
 0x66a   :  { %1473 = vmatpush1.msra.mxu0 %v1410_v50 }
 0x66b   :  { %1474 = vmatprep.subr.mxu0 %v1409_v51 }
 0x66c   :  { %1475 = vmatpush1.msra.mxu0 %v1408_v52 }
 0x66d   :  { %1476 = vmatprep.subr.mxu0 %v1407_v53 }
 0x66e   :  { %1477 = vmatpush1.msra.mxu0 %v1406_v56 }
 0x66f   :  { %1478 = vmatprep.subr.mxu0 %v1405_v57  ;;  %v1576_v57 = vld [vmem:[%s3008_s23 + $0xf8] sm:$0xff] }
 0x670   :  { %1479 = vmatpush1.msra.mxu0 %v1404_v58  ;;  %v1560_v58 = vld [vmem:[%s3008_s23 + $0x78] sm:$0xff]  ;;  %1703 = vmatprep.subr.mxu1 %v1576_v57 }
 0x671   :  { %1480 = vmatprep.subr.mxu0 %v1403_v59  ;;  %v1575_v59 = vld [vmem:[%s3008_s23 + $0xf0] sm:$0xff] }
 0x672   :  { %1481 = vmatpush1.msra.mxu0 %v1402_v60  ;;  %v1559_v60 = vld [vmem:[%s3008_s23 + $0x70] sm:$0xff] }
 0x673   :  { %1482 = vmatprep.subr.mxu0 %v1401_v61  ;;  %v1574_v61 = vld [vmem:[%s3008_s23 + $0xe8] sm:$0xff] }
 0x674   :  { %1483 = vmatpush1.msra.mxu0 %v1400_v62  ;;  %v1558_v62 = vld [vmem:[%s3008_s23 + $0x68] sm:$0xff] }
 0x675   :  { %1484 = vmatprep.subr.mxu0 %v1399_v63  ;;  %v1573_v63 = vld [vmem:[%s3008_s23 + $0xe0] sm:$0xff] }
 0x676   :  { %1485 = vmatpush1.msra.mxu0 %v1398_v0  ;;  %v1557_v0 = vld [vmem:[%s3008_s23 + $0x60] sm:$0xff] }
 0x677   :  { %1486 = vmatprep.subr.mxu0 %v1397_v1  ;;  %v1572_v1 = vld [vmem:[%s3008_s23 + $0xd8] sm:$0xff] }
 0x678   :  { %1487 = vmatpush1.msra.mxu0 %v1396_v2  ;;  %v1556_v2 = vld [vmem:[%s3008_s23 + $0x58] sm:$0xff] }
 0x679   :  { %1488 = vmatprep.subr.mxu0 %v1395_v3  ;;  %v1571_v3 = vld [vmem:[%s3008_s23 + $0xd0] sm:$0xff] }
 0x67a   :  { %1489 = vmatpush1.msra.mxu0 %v1394_v5  ;;  %v1555_v5 = vld [vmem:[%s3008_s23 + $0x50] sm:$0xff] }
 0x67b   :  { %1490 = vmatprep.subr.mxu0 %v1393_v6  ;;  %v1570_v6 = vld [vmem:[%s3008_s23 + $0xc8] sm:$0xff] }
 0x67c   :  { %1491 = vmatpush1.msra.mxu0 %v1392_v7  ;;  %v1554_v7 = vld [vmem:[%s3008_s23 + $0x48] sm:$0xff] }
 0x67d   :  { %1492 = vmatprep.subr.mxu0 %v1391_v8  ;;  %v1569_v8 = vld [vmem:[%s3008_s23 + $0xc0] sm:$0xff] }
 0x67e   :  { %1493 = vmatpush1.msra.mxu0 %v1390_v9  ;;  %v1553_v9 = vld [vmem:[%s3008_s23 + $0x40] sm:$0xff] }
 0x67f   :  { %1494 = vmatprep.subr.mxu0 %v1389_v10  ;;  %v1568_v10 = vld [vmem:[%s3008_s23 + $0xb8] sm:$0xff] }
 0x680   :  { %1495 = vmatpush1.msra.mxu0 %v1388_v11  ;;  %v1552_v11 = vld [vmem:[%s3008_s23 + $0x38] sm:$0xff] }
 0x681   :  { %1496 = vmatprep.subr.mxu0 %v1451_v12  ;;  %v1567_v12 = vld [vmem:[%s3008_s23 + $0xb0] sm:$0xff] }
 0x682   :  { %1497 = vmatpush2.msra.mxu0 %v1450_v14  ;;  %v1551_v14 = vld [vmem:[%s3008_s23 + $0x30] sm:$0xff] }
 0x683   :  { %1498 = vmatprep.subr.mxu0 %v1449_v16  ;;  %v1566_v16 = vld [vmem:[%s3008_s23 + $0xa8] sm:$0xff] }
 0x684   :  { %1499 = vmatpush2.msra.mxu0 %v1448_v17  ;;  %v1550_v17 = vld [vmem:[%s3008_s23 + $0x28] sm:$0xff] }
 0x685   :  { %1500 = vmatprep.subr.mxu0 %v1447_v18  ;;  %v1565_v18 = vld [vmem:[%s3008_s23 + $0xa0] sm:$0xff] }
 0x686   :  { %1501 = vmatpush2.msra.mxu0 %v1446_v19  ;;  %v1549_v19 = vld [vmem:[%s3008_s23 + $0x20] sm:$0xff] }
 0x687   :  { %1502 = vmatprep.subr.mxu0 %v1445_v20  ;;  %v1295_v20 = vld [vmem:[%s3009_s20] sm:$0x3] }
 0x688   :  { %1503 = vmatpush2.msra.mxu0 %v1444_v22  ;;  %v1300_v22 = vrot.slane %v1295_v20, %v2014_v13 }
 0x689   :  { %1504 = vmatprep.subr.mxu0 %v1443_v26  ;;  %v1304_v26 = vrot.slane %v1295_v20, %v2019_v15 }
 0x68a   :  { %1505 = vmatpush2.msra.mxu0 %v1442_v27 }
 0x68b   :  { %1506 = vmatprep.subr.mxu0 %v1441_v28 }
 0x68c   :  { %1507 = vmatpush2.msra.mxu0 %v1440_v30 }
 0x68d   :  { %1508 = vmatprep.subr.mxu0 %v1439_v54 }
 0x68e   :  { %1509 = vmatpush2.msra.mxu0 %v1438_v40 }
 0x68f   :  { %1510 = vmatprep.subr.mxu0 %v1437_v55 }
 0x690   :  { %1511 = vmatpush2.msra.mxu0 %v1436_v4 }
 0x691   :  { %1512 = vmatprep.subr.mxu0 %v1435_v36 }
 0x692   :  { %1513 = vmatpush2.msra.mxu0 %v1434_v38 }
 0x693   :  { %1514 = vmatprep.subr.mxu0 %v1433_v41 }
 0x694   :  { %1515 = vmatpush2.msra.mxu0 %v1432_v42 }
 0x695   :  { %1516 = vmatprep.subr.mxu0 %v1431_v43 }
 0x696   :  { %1517 = vmatpush2.msra.mxu0 %v1430_v44  ;;  %v1564_v44 = vld [vmem:[%s3008_s23 + $0x98] sm:$0xff] }
 0x697   :  { %1518 = vmatprep.subr.mxu0 %v1429_v45  ;;  %v1548_v45 = vld [vmem:[%s3008_s23 + $0x18] sm:$0xff] }
 0x698   :  { %1519 = vmatpush2.msra.mxu0 %v1428_v46  ;;  %v1563_v46 = vld [vmem:[%s3008_s23 + $0x90] sm:$0xff] }
 0x699   :  { %1520 = vmatprep.subr.mxu0 %v1427_v31 }
 0x69a   :  { %1521 = vmatpush2.msra.mxu0 %v1426_v33 }
 0x69b   :  { %1522 = vmatprep.subr.mxu0 %v1425_v32 }
 0x69c   :  { %1523 = vmatpush2.msra.mxu0 %v1424_v29 }
 0x721   :  { %v1216_v47 = vpop.f32.mrf.mxu0 }
 0x722   :  { %v1227_v50 = vadd.f32 %v1216_v47, %v1146_v39  ;;  %v1420_v39 = vld [vmem:[%s3007_s21 + $0x100] sm:$0xff]  ;;  %v1547_v47 = vld [vmem:[%s3008_s23 + $0x10] sm:$0xff] }
 0x723   :  { %v1218_v48 = vpop.f32.mrf.mxu0 }
 0x724   :  { %v1228_v49 = vadd.f32 %v1218_v48, %v1147_v37  ;;  %v1421_v37 = vld [vmem:[%s3007_s21 + $0x108] sm:$0xff] }
 0x725   :  { %v1222_v51 = vpop.f32.mrf.mxu0  ;;  %v1562_v48 = vld [vmem:[%s3008_s23 + $0x88] sm:$0xff] }
 0x726   :  { %1371 = vmatprep.mubr.f32.mxu1 %v1228_v49  ;;  %v1229_v56 = vadd.f32 %v1222_v51, %v1148_v35  ;;  %v1422_v35 = vld [vmem:[%s3007_s21 + $0x110] sm:$0xff]  ;;  %v1546_v49 = vld [vmem:[%s3008_s23 + $0x8] sm:$0xff]  ;;  %v1545_v51 = vld [vmem:[%s3008_s23] sm:$0xff] }
 0x727   :  { %v1224_v52 = vpop.f32.mrf.mxu0  ;;  %1372 = vmatmul.mubr.f32.vlgmr.msra.gmra.mxu1 %v1227_v50  ;;  %v1561_v50 = vld [vmem:[%s3008_s23 + $0x80] sm:$0xff] }
 0x728   :  { %v1230_v53 = vadd.f32 %v1224_v52, %v1149_v34  ;;  %v1423_v34 = vld [vmem:[%s3007_s21 + $0x118] sm:$0xff]  ;;  %1704 = vmatpush3.msra.mxu1 %v1560_v58  ;;  %v30_v52 = vstv %s3010_s24 }
 0x729   :  { %1524 = vmatprep.subr.mxu0 %v1423_v34  ;;  %1705 = vmatprep.subr.mxu1 %v1575_v59  ;;  %31 = vst [vmem:[#allocation2] sm:$0x1] %v30_v52 }
 0x72a   :  { %1377 = vmatprep.mubr.f32.mxu1 %v1230_v53  ;;  %1525 = vmatpush2.msra.mxu0 %v1422_v35 }
 0x72b   :  { %1378 = vmatmul.mubr.f32.gmra.mxu1 %v1229_v56  ;;  %1526 = vmatprep.subr.mxu0 %v1421_v37  ;;  %v1452_v56 = vld [vmem:[%s3011_s22] sm:$0x3] }
 0x72c   :  { %1527 = vmatpush2.msra.mxu0 %v1420_v39  ;;  %1706 = vmatpush3.msra.mxu1 %v1559_v60  ;;  %v1457_v31 = vrot.slane %v1452_v56, %v2014_v13  ;;  %v1461_v33 = vrot.slane %v1452_v56, %v2019_v15 }
 0x72d   :  { %1707 = vmatprep.subr.mxu1 %v1574_v61 }
 0x72e   :  { %1708 = vmatpush3.msra.mxu1 %v1558_v62 }
 0x72f   :  { %1709 = vmatprep.subr.mxu1 %v1573_v63 }
 0x730   :  { %1710 = vmatpush3.msra.mxu1 %v1557_v0  ;;  %v1686_v53 = vld [vmem:[#allocation2] ss:$0 sm:$0xff] }
 0x731   :  { %1711 = vmatprep.subr.mxu1 %v1572_v1  ;;  %1584 = vperm.xlu1 %1775, %v1686_v53  }
 0x732   :  { %1712 = vmatpush3.msra.mxu1 %v1556_v2 }
 0x733   :  { %1713 = vmatprep.subr.mxu1 %v1571_v3 }
 0x734   :  { %1714 = vmatpush3.msra.mxu1 %v1555_v5 }
 0x735   :  { %1715 = vmatprep.subr.mxu1 %v1570_v6 }
 0x736   :  { %1716 = vmatpush3.msra.mxu1 %v1554_v7 }
 0x737   :  { %1717 = vmatprep.subr.mxu1 %v1569_v8 }
 0x738   :  { %1718 = vmatpush3.msra.mxu1 %v1553_v9 }
 0x739   :  { %1719 = vmatprep.subr.mxu1 %v1568_v10 }
 0x73a   :  { %1720 = vmatpush3.msra.mxu1 %v1552_v11 }
 0x73b   :  { %1721 = vmatprep.subr.mxu1 %v1567_v12 }
 0x73c   :  { %1722 = vmatpush3.msra.mxu1 %v1551_v14 }
 0x73d   :  { %1723 = vmatprep.subr.mxu1 %v1566_v16 }
 0x73e   :  { %1724 = vmatpush3.msra.mxu1 %v1550_v17 }
 0x73f   :  { %1725 = vmatprep.subr.mxu1 %v1565_v18 }
 0x740   :  { %1726 = vmatpush3.msra.mxu1 %v1549_v19 }
 0x741   :  { %1727 = vmatprep.subr.mxu1 %v1564_v44 }
 0x742   :  { %1728 = vmatpush3.msra.mxu1 %v1548_v45 }
 0x743   :  { %1729 = vmatprep.subr.mxu1 %v1563_v46 }
 0x744   :  { %1730 = vmatpush3.msra.mxu1 %v1547_v47 }
 0x745   :  { %1731 = vmatprep.subr.mxu1 %v1562_v48 }
 0x746   :  { %1732 = vmatpush3.msra.mxu1 %v1546_v49 }
 0x747   :  { %1733 = vmatprep.subr.mxu1 %v1561_v50 }
 0x748   :  { %1734 = vmatpush3.msra.mxu1 %v1545_v51 }
 0x7ac   :  { %v1585_v63 = vpop.permute.xlu1 %1584 }
 0x7e7   :  { %v1373_v27 = vpop.f32.mrf.mxu1 }
 0x7e8   :  { %v1374_v28 = vadd.f32 %v1373_v27, %v1300_v22 }
 0x7e9   :  { %v1375_v30 = vpop.f32.mrf.mxu1 }
 0x7ea   :  { %v1376_v54 = vadd.f32 %v1375_v30, %v1304_v26  ;;  %v1384_v4 = vmax.f32 %v1374_v28, 0.0 }
 0x7eb   :  { %v1379_v40 = vpop.f32.mrf.mxu1 }
 0x7ec   :  { %v1385_v55 = vmax.f32 %v1376_v54, 0.0  ;;  %v1380_v36 = vadd.f32 %v1379_v40, %v1300_v22 }
 0x7ed   :  { %v1381_v38 = vpop.f32.mrf.mxu1 }
 0x7ee   :  { %v1382_v41 = vadd.f32 %v1381_v38, %v1304_v26  ;;  %1528 = vmatprep.mubr.f32.mxu0 %v1385_v55  ;;  %v1386_v43 = vmax.f32 %v1380_v36, 0.0 }
 0x7ef   :  { %1529 = vmatmul.mubr.f32.vlgmr.msra.gmra.mxu0 %v1384_v4 }
 0x7f0   :  { %v1387_v42 = vmax.f32 %v1382_v41, 0.0 }
 0x7f2   :  { %1534 = vmatprep.mubr.f32.mxu0 %v1387_v42 }
 0x7f3   :  { %1535 = vmatmul.mubr.f32.gmra.mxu0 %v1386_v43 }
 0x8af   :  { %v1530_v32 = vpop.f32.mrf.mxu0 }
 0x8b0   :  { %v1531_v29 = vadd.f32 %v1530_v32, %v1457_v31 }
 0x8b1   :  { %v1532_v34 = vpop.f32.mrf.mxu0 }
 0x8b2   :  { %v1533_v35 = vadd.f32 %v1532_v34, %v1461_v33  ;;  %v1541_v57 = vadd.f32 %v1531_v29, %v2029_v25 }
 0x8b3   :  { %v1536_v37 = vpop.f32.mrf.mxu0 }
 0x8b4   :  { %v1542_v39 = vadd.f32 %v1533_v35, %v2025_v23  ;;  %v1537_v58 = vadd.f32 %v1536_v37, %v1457_v31 }
 0x8b5   :  { %v1538_v59 = vpop.f32.mrf.mxu0 }
 0x8b6   :  { %v1539_v60 = vadd.f32 %v1538_v59, %v1461_v33  ;;  %1651 = vmatprep.mubr.f32.mxu1 %v1542_v39  ;;  %v1543_v13 = vadd.f32 %v1537_v58, %v2023_v21 }
 0x8b7   :  { %1652 = vmatmul.mubr.f32.vlgmr.msra.gmra.mxu1 %v1541_v57 }
 0x8b8   :  { %v1544_v61 = vadd.f32 %v1539_v60, %v2027_v24 }
 0x8ba   :  { %1656 = vmatprep.mubr.f32.mxu1 %v1544_v61 }
 0x8bb   :  { %1657 = vmatmul.mubr.f32.gmra.mxu1 %v1543_v13 }
 0x977   :  { %v1735_v15 = vpop.f32.mrf.mxu1 }
 0x979   :  { %v1736_v62 = vpop.f32.mrf.mxu1 }
 0x97a   :  { %v1737_v0 = vadd.f32 %v1736_v62, %v1735_v15 }
 0x97b   :  { %v1738_v1 = vpop.f32.mrf.mxu1 }
 0x97c   :  { %v1654_v2 = vadd.f32 %v1737_v0, %v1585_v63 }
 0x97d   :  { %v1739_v23 = vpop.f32.mrf.mxu1 }
 0x97e   :  { %1662 = vst.msk [vmem:[%s3012_s25] sm:$0xff] %vm92_vm0, %v1654_v2  ;;  %v1740_v25 = vadd.f32 %v1739_v23, %v1738_v1 }
 0x980   :  { %v1659_v3 = vadd.f32 %v1740_v25, %v1585_v63 }
 0x982   :  { %1663 = vst.msk [vmem:[%s3012_s25 + $0x8] sm:$0xff] %vm92_vm0, %v1659_v3 }

// kernel: _lambda_.5
= control target key start
LH: loop header
LB: loop body
LE: loop exit
PB: predicated region body
PF: predicated region fallthrough
CT: control target
= control target key end

     0   :  { %v594_v0 = vmov 0.0   ;;  %vm595_vm0 = vmmov 0   ;;  %vm48_vm1 = vcmask 130048   ;;  %vm137_vm2 = vcmask 523264   ;;  %s804_s1 = inlined_call_operand.vmem [shape: f32[16,64], index: 1, kind: input, shape index: {}]   ;;  %s805_s0 = inlined_call_operand.vmem [shape: f32[8,16], index: 0, kind: input, shape index: {}]   ;;  %s806_s3 = inlined_call_operand.vmem [shape: f32[64,64], index: 3, kind: input, shape index: {}]   ;;  %s807_s5 = inlined_call_operand.vmem [shape: f32[64,64], index: 5, kind: input, shape index: {}]   ;;  %s808_s2 = inlined_call_operand.vmem [shape: f32[1,64], index: 2, kind: input, shape index: {}]   ;;  %s809_s7 = inlined_call_operand.vmem [shape: f32[64,16], index: 7, kind: input, shape index: {}]   ;;  %s810_s4 = inlined_call_operand.vmem [shape: f32[1,64], index: 4, kind: input, shape index: {}]   ;;  %s811_s9 = inlined_call_operand.vmem [shape: f32[16,8], index: 9, kind: input, shape index: {}]   ;;  %s812_s6 = inlined_call_operand.vmem [shape: f32[1,64], index: 6, kind: input, shape index: {}]   ;;  %s813_s8 = inlined_call_operand.vmem [shape: f32[1,16], index: 8, kind: input, shape index: {}]   ;;  %s814_s10 = inlined_call_operand.vmem [shape: f32[1,8], index: 10, kind: input, shape index: {}]   ;;  %s815_s11 = inlined_call_operand.vmem [shape: f32[8,8], index: 11, kind: output, shape index: {}]  }
   0x1   :  { %521 = vmatprep.subr.mxu0 %v594_v0  ;;  %v40_v1 = vld [vmem:[%s804_s1 + $0x8] sm:$0xff]  ;;  %v39_v2 = vld [vmem:[%s804_s1] sm:$0xff]  ;;  %525 = vmatprep.mubr.msk.f32.mxu0 %vm595_vm0, %v594_v0  ;;  %v129_v4 = vld [vmem:[%s806_s3 + $0x38] sm:$0xff]  ;;  %vm472_vm3 = vcmask 64512  }
   0x2   :  { %522 = vmatpush3.msra.mxu0 %v40_v1  ;;  %v38_v3 = vld [vmem:[%s805_s0] sm:$0xff]  ;;  %528 = vmatprep.subr.mxu1 %v594_v0  ;;  %v128_v5 = vld [vmem:[%s806_s3 + $0x30] sm:$0xff]  ;;  %v127_v6 = vld [vmem:[%s806_s3 + $0x28] sm:$0xff] }
   0x3   :  { %523 = vmatprep.subr.mxu0 %v594_v0  ;;  %529 = vmatpush3.msra.mxu1 %v129_v4  ;;  %v126_v7 = vld [vmem:[%s806_s3 + $0x20] sm:$0xff]  ;;  %v125_v8 = vld [vmem:[%s806_s3 + $0x18] sm:$0xff]  ;;  %v124_v9 = vld [vmem:[%s806_s3 + $0x10] sm:$0xff] }
   0x4   :  { %524 = vmatpush3.msra.mxu0 %v39_v2  ;;  %530 = vmatprep.subr.mxu1 %v594_v0  ;;  %v123_v10 = vld [vmem:[%s806_s3 + $0x8] sm:$0xff]  ;;  %v122_v11 = vld [vmem:[%s806_s3] sm:$0xff]  ;;  %v219_v12 = vld [vmem:[%s807_s5 + $0x38] sm:$0xff] }
   0x5   :  { %526 = vmatmul.mubr.msk.f32.vlgmr.msra.gmra.mxu0 %vm48_vm1, %v38_v3  ;;  %531 = vmatpush3.msra.mxu1 %v128_v5  ;;  %v218_v13 = vld [vmem:[%s807_s5 + $0x30] sm:$0xff]  ;;  %v217_v14 = vld [vmem:[%s807_s5 + $0x28] sm:$0xff]  ;;  %v216_v15 = vld [vmem:[%s807_s5 + $0x20] sm:$0xff] }
   0x6   :  { %532 = vmatprep.subr.mxu1 %v594_v0  ;;  %544 = vmatprep.mubr.msk.f32.mxu1 %vm595_vm0, %v594_v0  ;;  %v215_v16 = vld [vmem:[%s807_s5 + $0x18] sm:$0xff]  ;;  %v478_v17 = vld [vmem:[%s808_s2] ss:$0 sm:$0xff]  ;;  %v214_v21 = vld [vmem:[%s807_s5 + $0x10] sm:$0xff] }
   0x7   :  { %533 = vmatpush3.msra.mxu1 %v127_v6  ;;  %547 = vmatprep.subr.mxu0 %v594_v0  ;;  %v213_v22 = vld [vmem:[%s807_s5 + $0x8] sm:$0xff]  ;;  %v212_v23 = vld [vmem:[%s807_s5] sm:$0xff]  ;;  %v309_v24 = vld [vmem:[%s809_s7 + $0x38] sm:$0xff] }
   0x8   :  { %534 = vmatprep.subr.mxu1 %v594_v0  ;;  %563 = vmatprep.mubr.msk.f32.mxu0 %vm595_vm0, %v594_v0  ;;  %v308_v25 = vld [vmem:[%s809_s7 + $0x30] sm:$0xff]  ;;  %v307_v26 = vld [vmem:[%s809_s7 + $0x28] sm:$0xff]  ;;  %v306_v27 = vld [vmem:[%s809_s7 + $0x20] sm:$0xff] }
   0x9   :  { %535 = vmatpush3.msra.mxu1 %v126_v7  ;;  %548 = vmatpush3.msra.mxu0 %v219_v12  ;;  %v305_v28 = vld [vmem:[%s809_s7 + $0x18] sm:$0xff]  ;;  %v480_v29 = vld [vmem:[%s810_s4] ss:$0 sm:$0xff]  ;;  %v304_v34 = vld [vmem:[%s809_s7 + $0x10] sm:$0xff] }
   0xa   :  { %536 = vmatprep.subr.mxu1 %v594_v0  ;;  %549 = vmatprep.subr.mxu0 %v594_v0  ;;  %v303_v35 = vld [vmem:[%s809_s7 + $0x8] sm:$0xff]  ;;  %v302_v36 = vld [vmem:[%s809_s7] sm:$0xff] }
   0xb   :  { %537 = vmatpush3.msra.mxu1 %v125_v8  ;;  %550 = vmatpush3.msra.mxu0 %v218_v13  ;;  %v391_v37 = vld [vmem:[%s811_s9 + $0x8] sm:$0xff]  ;;  %v483_v39 = vld [vmem:[%s812_s6] ss:$0 sm:$0xff] }
   0xc   :  { %538 = vmatprep.subr.mxu1 %v594_v0  ;;  %551 = vmatprep.subr.mxu0 %v594_v0  ;;  %v390_v43 = vld [vmem:[%s811_s9] sm:$0xff] }
   0xd   :  { %539 = vmatpush3.msra.mxu1 %v124_v9  ;;  %552 = vmatpush3.msra.mxu0 %v217_v14  ;;  %v484_v44 = vld [vmem:[%s813_s8] ss:$0 sm:$0xff] }
   0xe   :  { %540 = vmatprep.subr.mxu1 %v594_v0  ;;  %553 = vmatprep.subr.mxu0 %v594_v0  ;;  %v486_v48 = vld [vmem:[%s814_s10] ss:$0 sm:$0xff] }
   0xf   :  { %541 = vmatpush3.msra.mxu1 %v123_v10  ;;  %554 = vmatpush3.msra.mxu0 %v216_v15 }
  0x10   :  { %542 = vmatprep.subr.mxu1 %v594_v0  ;;  %555 = vmatprep.subr.mxu0 %v594_v0 }
  0x11   :  { %543 = vmatpush3.msra.mxu1 %v122_v11  ;;  %556 = vmatpush3.msra.mxu0 %v215_v16 }
  0x12   :  { %566 = vmatprep.subr.mxu1 %v594_v0  ;;  %557 = vmatprep.subr.mxu0 %v594_v0 }
  0x13   :  { %558 = vmatpush3.msra.mxu0 %v214_v21 }
  0x14   :  { %559 = vmatprep.subr.mxu0 %v594_v0 }
  0x15   :  { %560 = vmatpush3.msra.mxu0 %v213_v22 }
  0x16   :  { %561 = vmatprep.subr.mxu0 %v594_v0 }
  0x17   :  { %562 = vmatpush3.msra.mxu0 %v212_v23 }
  0x18   :  { %585 = vmatprep.subr.mxu0 %v594_v0 }
  0xc5   :  { %v118_v18 = vpop.f32.mrf.mxu0 }
  0xc6   :  { %v119_v19 = vadd.f32 %v478_v17, %v118_v18 }
  0xc7   :  { %v527_v20 = vpop.f32.mrf.mxu0 }
  0xc8   :  { %545 = vmatmul.mubr.msk.f32.vlgmr.msra.gmra.mxu1 %vm137_vm2, %v119_v19 }
  0xc9   :  { %582 = vmatprep.mubr.msk.f32.mxu1 %vm595_vm0, %v594_v0  ;;  %567 = vmatpush3.msra.mxu1 %v309_v24 }
  0xca   :  { %568 = vmatprep.subr.mxu1 %v594_v0 }
  0xcb   :  { %569 = vmatpush3.msra.mxu1 %v308_v25 }
  0xcc   :  { %570 = vmatprep.subr.mxu1 %v594_v0 }
  0xcd   :  { %571 = vmatpush3.msra.mxu1 %v307_v26 }
  0xce   :  { %572 = vmatprep.subr.mxu1 %v594_v0 }
  0xcf   :  { %573 = vmatpush3.msra.mxu1 %v306_v27 }
  0xd0   :  { %574 = vmatprep.subr.mxu1 %v594_v0 }
  0xd1   :  { %575 = vmatpush3.msra.mxu1 %v305_v28 }
  0xd2   :  { %576 = vmatprep.subr.mxu1 %v594_v0 }
  0xd3   :  { %577 = vmatpush3.msra.mxu1 %v304_v34 }
  0xd4   :  { %578 = vmatprep.subr.mxu1 %v594_v0 }
  0xd5   :  { %579 = vmatpush3.msra.mxu1 %v303_v35 }
  0xd6   :  { %580 = vmatprep.subr.mxu1 %v594_v0 }
  0xd7   :  { %581 = vmatpush3.msra.mxu1 %v302_v36 }
 0x188   :  { %v207_v30 = vpop.f32.mrf.mxu1 }
 0x189   :  { %v208_v31 = vadd.f32 %v480_v29, %v207_v30 }
 0x18a   :  { %v546_v32 = vpop.f32.mrf.mxu1 }
 0x18b   :  { %v211_v33 = vmax.f32 %v208_v31, 0.0 }
 0x18d   :  { %564 = vmatmul.mubr.msk.f32.vlgmr.msra.gmra.mxu0 %vm137_vm2, %v211_v33 }
 0x18e   :  { %589 = vmatprep.mubr.msk.f32.mxu0 %vm595_vm0, %v594_v0  ;;  %586 = vmatpush3.msra.mxu0 %v391_v37 }
 0x18f   :  { %587 = vmatprep.subr.mxu0 %v594_v0 }
 0x190   :  { %588 = vmatpush3.msra.mxu0 %v390_v43 }
 0x24d   :  { %v289_v38 = vpop.f32.mrf.mxu0 }
 0x24e   :  { %v293_v40 = vadd.f32 %v289_v38, %v119_v19 }
 0x24f   :  { %v565_v41 = vpop.f32.mrf.mxu0 }
 0x250   :  { %v301_v42 = vadd.f32 %v483_v39, %v293_v40 }
 0x252   :  { %583 = vmatmul.mubr.msk.f32.vlgmr.msra.gmra.mxu1 %vm137_vm2, %v301_v42 }
 0x312   :  { %v386_v45 = vpop.f32.mrf.mxu1 }
 0x313   :  { %v387_v46 = vadd.f32 %v484_v44, %v386_v45 }
 0x314   :  { %v584_v47 = vpop.f32.mrf.mxu1 }
 0x315   :  { %590 = vmatmul.mubr.msk.f32.vlgmr.msra.gmra.mxu0 %vm48_vm1, %v387_v46 }
 0x3d5   :  { %v468_v49 = vpop.f32.mrf.mxu0 }
 0x3d6   :  { %v469_v50 = vadd.f32 %v486_v48, %v468_v49 }
 0x3d7   :  { %v591_v51 = vpop.f32.mrf.mxu0 }
 0x3d8   :  { %473 = vst.msk [vmem:[%s815_s11] sm:$0xff] %vm472_vm3, %v469_v50 }

</bundles_post_ra>
